<compile_context>
chip_gen: v6e
topology: v6e:2x2x1
jax: 0.10.0
libtpu: 0.0.40
codegen_flags: <defaults>
</compile_context>

<pallas_src>
import functools

import jax
import jax.numpy as jnp
from jax import lax
from jax.experimental import pallas as pl
from jax.experimental.pallas import tpu as pltpu


def _bottleneck_kernel(x_ref, w1_ref, b1_ref, w2_ref, b2_ref, w3_ref, b3_ref,
                       out_ref, hpad_ref, *, H, W, pad_rows):
    """x_ref: (1, HW, Cp) bf16; weights bf16 (BN scale folded); biases (1, Cp) f32."""
    HW = H * W
    Cp = x_ref.shape[-1]

    # ---- conv1 (1x1) + bn1(bias) + relu ----
    h1 = jnp.dot(x_ref[0], w1_ref[...], preferred_element_type=jnp.float32)
    h1 = jnp.maximum(h1 + b1_ref[...], 0.0)                      # (HW, Cp) f32

    # ---- conv2 (3x3, stride=1, pad=1) + bn2(bias) + relu ----
    # NOTE: halos are re-zeroed every grid step on purpose: under "parallel"
    # megacore sharding each core has its own scratch, so gating the zeroing on
    # program_id==0 would leave the other core's halo uninitialized.  ~16 KiB
    # of stores per image, negligible.
    zeros_halo = jnp.zeros((pad_rows, Cp), jnp.bfloat16)
    hpad_ref[pl.ds(0, pad_rows), :] = zeros_halo
    hpad_ref[pl.ds(pad_rows + HW, pad_rows), :] = zeros_halo
    hpad_ref[pl.ds(pad_rows, HW), :] = h1.astype(jnp.bfloat16)

    # Column-wrap masks (row wrap is handled by the zero halo); avoid integer
    # division -- use a bitwise AND when W is a power of two.
    pos = lax.broadcasted_iota(jnp.int32, (HW, 1), 0)
    col = (pos & (W - 1)) if (W & (W - 1)) == 0 else (pos % W)
    left_ok = col != 0           # tap dw=-1 wraps to previous row when col==0
    right_ok = col != (W - 1)    # tap dw=+1 wraps to next row when col==W-1

    acc = None
    for kh in range(3):
        for kw in range(3):
            dh, dw = kh - 1, kw - 1
            d = dh * W + dw
            k = kh * 3 + kw
            tap = hpad_ref[pl.ds(pad_rows + d, HW), :]           # (HW, Cp) bf16
            if dw == -1:
                tap = jnp.where(left_ok, tap, jnp.zeros_like(tap))
            elif dw == 1:
                tap = jnp.where(right_ok, tap, jnp.zeros_like(tap))
            contrib = jnp.dot(tap, w2_ref[pl.ds(k * Cp, Cp), :],
                              preferred_element_type=jnp.float32)
            acc = contrib if acc is None else acc + contrib
    h2 = jnp.maximum(acc + b2_ref[...], 0.0)                     # (HW, Cp) f32

    # ---- conv3 (1x1) + bn3(bias) + residual + relu ----
    h3 = jnp.dot(h2.astype(jnp.bfloat16), w3_ref[...],
                 preferred_element_type=jnp.float32)
    resid = x_ref[0].astype(jnp.float32)     # re-read from VMEM: short live range
    out_ref[0] = jnp.maximum(h3 + b3_ref[...] + resid, 0.0).astype(out_ref.dtype)


def bottleneck_forward(x_nchw, kernel_params, cout):
    """x_nchw: (B, Cin, H, W) float32. Returns (B, cout, H, W) float32."""
    w1, b1, w2, b2, w3, b3 = kernel_params
    B, cin, H, W = x_nchw.shape
    cp = w1.shape[1]
    HW = H * W
    pad_rows = ((W + 1 + 15) // 16) * 16     # bf16-packing-aligned zero halo

    # Wrapper-side layout plumbing: NCHW -> (B, HW, cp), lane-dense channels,
    # bf16 activation DMA (x is already bf16-representable).
    x_flat = jnp.transpose(x_nchw, (0, 2, 3, 1)).reshape(B, HW, cin)
    x_flat = jnp.pad(x_flat, ((0, 0), (0, 0), (0, cp - cin))).astype(jnp.bfloat16)

    const2 = lambda a: pl.BlockSpec(a.shape, lambda b: (0, 0))
    kernel = functools.partial(_bottleneck_kernel, H=H, W=W, pad_rows=pad_rows)

    out_flat = pl.pallas_call(
        kernel,
        out_shape=jax.ShapeDtypeStruct((B, HW, cp), jnp.bfloat16),
        grid=(B,),
        in_specs=[
            pl.BlockSpec((1, HW, cp), lambda b: (b, 0, 0)),
            const2(w1), const2(b1), const2(w2), const2(b2), const2(w3), const2(b3),
        ],
        out_specs=pl.BlockSpec((1, HW, cp), lambda b: (b, 0, 0)),
        scratch_shapes=[
            pltpu.VMEM((HW + 2 * pad_rows, cp), jnp.bfloat16),   # zero-haloed h1
        ],
        compiler_params=pltpu.CompilerParams(
            dimension_semantics=("parallel",)),
    )(x_flat, w1, b1, w2, b2, w3, b3)

    out = out_flat[:, :, :cout].astype(jnp.float32).reshape(B, H, W, cout)
    return jnp.transpose(out, (0, 3, 1, 2))


# ----------------------------- parameter setup ------------------------------

def make_params(key, inplanes, planes, base_width=64, groups=1, cp=128):
    expansion = 4
    width = int(planes * (base_width / 64.0)) * groups
    cout = planes * expansion
    eps = 1e-5
    ks = jax.random.split(key, 15)

    def bn(kg, kb, km, kv, c):
        gamma = jax.random.uniform(kg, (c,), jnp.float32, 0.5, 1.5)
        beta = 0.1 * jax.random.normal(kb, (c,), jnp.float32)
        mean = 0.1 * jax.random.normal(km, (c,), jnp.float32)
        var = jax.random.uniform(kv, (c,), jnp.float32, 0.5, 1.5)
        scale = gamma / jnp.sqrt(var + eps)
        bias = beta - mean * scale
        return scale, bias

    # PyTorch conv weights in OIHW.
    w1_oihw = 0.2 * jax.random.normal(ks[0], (width, inplanes, 1, 1), jnp.float32)
    w2_oihw = 0.2 * jax.random.normal(ks[1], (width, width, 3, 3), jnp.float32)
    w3_oihw = 0.2 * jax.random.normal(ks[2], (cout, width, 1, 1), jnp.float32)

    s1, b1 = bn(ks[3], ks[4], ks[5], ks[6], width)
    s2, b2 = bn(ks[7], ks[8], ks[9], ks[10], width)
    s3, b3 = bn(ks[11], ks[12], ks[13], ks[14], cout)

    # Fold BN (inference-mode) scale into the conv weights, then round to bf16
    # once so the kernel and the reference consume identical weight values.
    rb = lambda a: a.astype(jnp.bfloat16).astype(jnp.float32)
    w1_f = rb(w1_oihw * s1.reshape(-1, 1, 1, 1))
    w2_f = rb(w2_oihw * s2.reshape(-1, 1, 1, 1))
    w3_f = rb(w3_oihw * s3.reshape(-1, 1, 1, 1))

    # ---- kernel-layout params: channel axes zero-padded to cp, bf16 ----
    def pad2(a):
        return jnp.pad(a, ((0, cp - a.shape[0]), (0, cp - a.shape[1])))

    w1_k = pad2(jnp.transpose(w1_f[:, :, 0, 0], (1, 0))).astype(jnp.bfloat16)
    # (O,I,kh,kw) -> (kh,kw,I,O) -> tap-major layout (9*cp, cp)
    w2_kio = jnp.transpose(w2_f, (2, 3, 1, 0)).reshape(9, width, width)
    w2_k = jnp.pad(w2_kio, ((0, 0), (0, cp - width), (0, cp - width)))
    w2_k = w2_k.reshape(9 * cp, cp).astype(jnp.bfloat16)
    w3_k = pad2(jnp.transpose(w3_f[:, :, 0, 0], (1, 0))).astype(jnp.bfloat16)

    padb = lambda v: jnp.pad(v, (0, cp - v.shape[0])).reshape(1, cp).astype(jnp.float32)

    kernel_params = (w1_k, padb(b1), w2_k, padb(b2), w3_k, padb(b3))
    ref_params = (w1_f, b1, w2_f, b2, w3_f, b3)
    return kernel_params, ref_params, (width, cout)


# ---------------------------- pure-JAX reference ----------------------------

def ref_forward(x, ref_params):
    """f32 reference; operands rounded to bf16 before each conv to mirror the
    kernel's MXU precision (bf16 inputs, f32 accumulation)."""
    w1, b1, w2, b2, w3, b3 = ref_params
    dn = ('NCHW', 'OIHW', 'NCHW')
    bc = lambda v: v.reshape(1, -1, 1, 1)
    r = lambda a: a.astype(jnp.bfloat16).astype(jnp.float32)
    hp = lax.Precision.HIGHEST

    y = lax.conv_general_dilated(r(x), w1, (1, 1), 'VALID',
                                 dimension_numbers=dn, precision=hp)
    y = jnp.maximum(y + bc(b1), 0.0)
    y = lax.conv_general_dilated(r(y), w2, (1, 1), ((1, 1), (1, 1)),
                                 dimension_numbers=dn, precision=hp)
    y = jnp.maximum(y + bc(b2), 0.0)
    y = lax.conv_general_dilated(r(y), w3, (1, 1), 'VALID',
                                 dimension_numbers=dn, precision=hp)
    y = y + bc(b3)
    return jnp.maximum(y + x, 0.0)


if __name__ == "__main__":
    key = jax.random.PRNGKey(0)
    k_x, k_p = jax.random.split(key)

    # Bottleneck(inplanes=16, planes=4): width=4, output channels = 4*4 = 16,
    # stride=1, downsample=None (identity residual), groups=1, dilation=1.
    B, inplanes, planes, H, W = 2, 16, 4, 16, 16
    x = jax.random.normal(k_x, (B, inplanes, H, W), jnp.float32)
    x = x.astype(jnp.bfloat16).astype(jnp.float32)   # kernel uses bf16 MXU operands

    kernel_params, ref_params, (width, cout) = make_params(k_p, inplanes, planes)

    out = bottleneck_forward(x, kernel_params, cout)
    out = jax.block_until_ready(out)

    ref = ref_forward(x, ref_params)
    assert out.shape == (B, cout, H, W), out.shape
    if not bool(jnp.allclose(out, ref, atol=2e-2, rtol=2e-2)):
        max_err = float(jnp.max(jnp.abs(out - ref)))
        raise AssertionError(f"Pallas output mismatch vs reference, max_err={max_err}")

    print("KERNEL_OK")
</pallas_src>

<mosaic_0001>
module attributes {stable_mosaic.version = 11 : i64} {
  func.func @_bottleneck_kernel(%arg0: i32, %arg1: memref<1x256x128xbf16, #tpu.memory_space<vmem>>, %arg2: memref<128x128xbf16, #tpu.memory_space<vmem>>, %arg3: memref<1x128xf32, #tpu.memory_space<vmem>>, %arg4: memref<1152x128xbf16, #tpu.memory_space<vmem>>, %arg5: memref<1x128xf32, #tpu.memory_space<vmem>>, %arg6: memref<128x128xbf16, #tpu.memory_space<vmem>>, %arg7: memref<1x128xf32, #tpu.memory_space<vmem>>, %arg8: memref<1x256x128xbf16, #tpu.memory_space<vmem>>, %arg9: memref<320x128xbf16, #tpu.memory_space<vmem>>) attributes {dimension_semantics = [#tpu.dimension_semantics<parallel>], iteration_bounds = array<i64: 2>, scalar_prefetch = 0 : i64, scratch_operands = 1 : i64, tpu.core_type = #tpu.core_type<tc>, window_params = [{transform_indices = @transform_0, window_bounds = array<i64: 1, 256, 128>}, {pipeline_mode = #tpu.pipeline_mode<synchronous>, transform_indices = @transform_1, window_bounds = array<i64: 128, 128>}, {pipeline_mode = #tpu.pipeline_mode<synchronous>, transform_indices = @transform_2, window_bounds = array<i64: 1, 128>}, {pipeline_mode = #tpu.pipeline_mode<synchronous>, transform_indices = @transform_3, window_bounds = array<i64: 1152, 128>}, {pipeline_mode = #tpu.pipeline_mode<synchronous>, transform_indices = @transform_4, window_bounds = array<i64: 1, 128>}, {pipeline_mode = #tpu.pipeline_mode<synchronous>, transform_indices = @transform_5, window_bounds = array<i64: 128, 128>}, {pipeline_mode = #tpu.pipeline_mode<synchronous>, transform_indices = @transform_6, window_bounds = array<i64: 1, 128>}, {transform_indices = @transform_7, window_bounds = array<i64: 1, 256, 128>}]} {
    %c0 = arith.constant 0 : index
    %c0_0 = arith.constant 0 : index
    %c0_1 = arith.constant 0 : index
    %0 = vector.load %arg1[%c0, %c0_0, %c0_1] : memref<1x256x128xbf16, #tpu.memory_space<vmem>>, vector<1x256x128xbf16>
    %1 = vector.shape_cast %0 : vector<1x256x128xbf16> to vector<256x128xbf16>
    %c0_2 = arith.constant 0 : index
    %c0_3 = arith.constant 0 : index
    %2 = vector.load %arg2[%c0_2, %c0_3] : memref<128x128xbf16, #tpu.memory_space<vmem>>, vector<128x128xbf16>
    %cst = arith.constant dense<0.000000e+00> : vector<256x128xf32>
    %3 = tpu.matmul %1, %2, %cst {dimension_numbers = #tpu.dot_dimension_numbers<[1], [0], [0], [1], [0, 0, 1, 1], [], []>} : vector<256x128xbf16>, vector<128x128xbf16>, vector<256x128xf32> -> vector<256x128xf32>
    %c0_4 = arith.constant 0 : index
    %c0_5 = arith.constant 0 : index
    %4 = vector.load %arg3[%c0_4, %c0_5] : memref<1x128xf32, #tpu.memory_space<vmem>>, vector<1x128xf32>
    %5 = vector.broadcast %4 : vector<1x128xf32> to vector<256x128xf32>
    %6 = arith.addf %3, %5 : vector<256x128xf32>
    %cst_6 = arith.constant 0.000000e+00 : f32
    %7 = vector.broadcast %cst_6 : f32 to vector<256x128xf32>
    %8 = arith.maximumf %6, %7 : vector<256x128xf32>
    %cst_7 = arith.constant 0.000000e+00 : bf16
    %9 = vector.broadcast %cst_7 : bf16 to vector<32x128xbf16>
    %c0_8 = arith.constant 0 : index
    %c0_9 = arith.constant 0 : index
    %10 = vector.load %arg9[%c0_8, %c0_9] : memref<320x128xbf16, #tpu.memory_space<vmem>>, vector<32x128xbf16>
    tpu.vector_store %arg9[%c0_8, %c0_9], %9 {strides = array<i32>} : memref<320x128xbf16, #tpu.memory_space<vmem>>, vector<32x128xbf16>,
    %c288 = arith.constant 288 : index
    %c0_10 = arith.constant 0 : index
    %11 = vector.load %arg9[%c288, %c0_10] : memref<320x128xbf16, #tpu.memory_space<vmem>>, vector<32x128xbf16>
    tpu.vector_store %arg9[%c288, %c0_10], %9 {strides = array<i32>} : memref<320x128xbf16, #tpu.memory_space<vmem>>, vector<32x128xbf16>,
    %12 = arith.truncf %8 : vector<256x128xf32> to vector<256x128xbf16>
    %c32 = arith.constant 32 : index
    %c0_11 = arith.constant 0 : index
    %13 = vector.load %arg9[%c32, %c0_11] : memref<320x128xbf16, #tpu.memory_space<vmem>>, vector<256x128xbf16>
    tpu.vector_store %arg9[%c32, %c0_11], %12 {strides = array<i32>} : memref<320x128xbf16, #tpu.memory_space<vmem>>, vector<256x128xbf16>,
    %14 = tpu.iota {dimensions = array<i32: 0>} : vector<256x1xi32>
    %c15_i32 = arith.constant 15 : i32
    %15 = vector.broadcast %c15_i32 : i32 to vector<256x1xi32>
    %16 = arith.andi %14, %15 : vector<256x1xi32>
    %c0_i32 = arith.constant 0 : i32
    %17 = vector.broadcast %c0_i32 : i32 to vector<256x1xi32>
    %18 = arith.cmpi ne, %16, %17 : vector<256x1xi32>
    %c15_i32_12 = arith.constant 15 : i32
    %19 = vector.broadcast %c15_i32_12 : i32 to vector<256x1xi32>
    %20 = arith.cmpi ne, %16, %19 : vector<256x1xi32>
    %c15 = arith.constant 15 : index
    %c0_13 = arith.constant 0 : index
    %21 = vector.load %arg9[%c15, %c0_13] : memref<320x128xbf16, #tpu.memory_space<vmem>>, vector<256x128xbf16>
    %cst_14 = arith.constant 0.000000e+00 : bf16
    %22 = vector.broadcast %cst_14 : bf16 to vector<256x128xbf16>
    %23 = vector.shape_cast %18 : vector<256x1xi1> to vector<256x1xi1>
    %24 = vector.broadcast %23 : vector<256x1xi1> to vector<256x128xi1>
    %25 = arith.select %24, %21, %22 : vector<256x128xi1>, vector<256x128xbf16>
    %c0_15 = arith.constant 0 : index
    %c0_16 = arith.constant 0 : index
    %26 = vector.load %arg4[%c0_15, %c0_16] : memref<1152x128xbf16, #tpu.memory_space<vmem>>, vector<128x128xbf16>
    %cst_17 = arith.constant dense<0.000000e+00> : vector<256x128xf32>
    %27 = tpu.matmul %25, %26, %cst_17 {dimension_numbers = #tpu.dot_dimension_numbers<[1], [0], [0], [1], [0, 0, 1, 1], [], []>} : vector<256x128xbf16>, vector<128x128xbf16>, vector<256x128xf32> -> vector<256x128xf32>
    %c16 = arith.constant 16 : index
    %c0_18 = arith.constant 0 : index
    %28 = vector.load %arg9[%c16, %c0_18] : memref<320x128xbf16, #tpu.memory_space<vmem>>, vector<256x128xbf16>
    %c128 = arith.constant 128 : index
    %c0_19 = arith.constant 0 : index
    %29 = vector.load %arg4[%c128, %c0_19] : memref<1152x128xbf16, #tpu.memory_space<vmem>>, vector<128x128xbf16>
    %cst_20 = arith.constant dense<0.000000e+00> : vector<256x128xf32>
    %30 = tpu.matmul %28, %29, %cst_20 {dimension_numbers = #tpu.dot_dimension_numbers<[1], [0], [0], [1], [0, 0, 1, 1], [], []>} : vector<256x128xbf16>, vector<128x128xbf16>, vector<256x128xf32> -> vector<256x128xf32>
    %31 = arith.addf %27, %30 : vector<256x128xf32>
    %c17 = arith.constant 17 : index
    %c0_21 = arith.constant 0 : index
    %32 = vector.load %arg9[%c17, %c0_21] : memref<320x128xbf16, #tpu.memory_space<vmem>>, vector<256x128xbf16>
    %cst_22 = arith.constant 0.000000e+00 : bf16
    %33 = vector.broadcast %cst_22 : bf16 to vector<256x128xbf16>
    %34 = vector.shape_cast %20 : vector<256x1xi1> to vector<256x1xi1>
    %35 = vector.broadcast %34 : vector<256x1xi1> to vector<256x128xi1>
    %36 = arith.select %35, %32, %33 : vector<256x128xi1>, vector<256x128xbf16>
    %c256 = arith.constant 256 : index
    %c0_23 = arith.constant 0 : index
    %37 = vector.load %arg4[%c256, %c0_23] : memref<1152x128xbf16, #tpu.memory_space<vmem>>, vector<128x128xbf16>
    %cst_24 = arith.constant dense<0.000000e+00> : vector<256x128xf32>
    %38 = tpu.matmul %36, %37, %cst_24 {dimension_numbers = #tpu.dot_dimension_numbers<[1], [0], [0], [1], [0, 0, 1, 1], [], []>} : vector<256x128xbf16>, vector<128x128xbf16>, vector<256x128xf32> -> vector<256x128xf32>
    %39 = arith.addf %31, %38 : vector<256x128xf32>
    %c31 = arith.constant 31 : index
    %c0_25 = arith.constant 0 : index
    %40 = vector.load %arg9[%c31, %c0_25] : memref<320x128xbf16, #tpu.memory_space<vmem>>, vector<256x128xbf16>
    %cst_26 = arith.constant 0.000000e+00 : bf16
    %41 = vector.broadcast %cst_26 : bf16 to vector<256x128xbf16>
    %42 = vector.shape_cast %18 : vector<256x1xi1> to vector<256x1xi1>
    %43 = vector.broadcast %42 : vector<256x1xi1> to vector<256x128xi1>
    %44 = arith.select %43, %40, %41 : vector<256x128xi1>, vector<256x128xbf16>
    %c384 = arith.constant 384 : index
    %c0_27 = arith.constant 0 : index
    %45 = vector.load %arg4[%c384, %c0_27] : memref<1152x128xbf16, #tpu.memory_space<vmem>>, vector<128x128xbf16>
    %cst_28 = arith.constant dense<0.000000e+00> : vector<256x128xf32>
    %46 = tpu.matmul %44, %45, %cst_28 {dimension_numbers = #tpu.dot_dimension_numbers<[1], [0], [0], [1], [0, 0, 1, 1], [], []>} : vector<256x128xbf16>, vector<128x128xbf16>, vector<256x128xf32> -> vector<256x128xf32>
    %47 = arith.addf %39, %46 : vector<256x128xf32>
    %c32_29 = arith.constant 32 : index
    %c0_30 = arith.constant 0 : index
    %48 = vector.load %arg9[%c32_29, %c0_30] : memref<320x128xbf16, #tpu.memory_space<vmem>>, vector<256x128xbf16>
    %c512 = arith.constant 512 : index
    %c0_31 = arith.constant 0 : index
    %49 = vector.load %arg4[%c512, %c0_31] : memref<1152x128xbf16, #tpu.memory_space<vmem>>, vector<128x128xbf16>
    %cst_32 = arith.constant dense<0.000000e+00> : vector<256x128xf32>
    %50 = tpu.matmul %48, %49, %cst_32 {dimension_numbers = #tpu.dot_dimension_numbers<[1], [0], [0], [1], [0, 0, 1, 1], [], []>} : vector<256x128xbf16>, vector<128x128xbf16>, vector<256x128xf32> -> vector<256x128xf32>
    %51 = arith.addf %47, %50 : vector<256x128xf32>
    %c33 = arith.constant 33 : index
    %c0_33 = arith.constant 0 : index
    %52 = vector.load %arg9[%c33, %c0_33] : memref<320x128xbf16, #tpu.memory_space<vmem>>, vector<256x128xbf16>
    %cst_34 = arith.constant 0.000000e+00 : bf16
    %53 = vector.broadcast %cst_34 : bf16 to vector<256x128xbf16>
    %54 = vector.shape_cast %20 : vector<256x1xi1> to vector<256x1xi1>
    %55 = vector.broadcast %54 : vector<256x1xi1> to vector<256x128xi1>
    %56 = arith.select %55, %52, %53 : vector<256x128xi1>, vector<256x128xbf16>
    %c640 = arith.constant 640 : index
    %c0_35 = arith.constant 0 : index
    %57 = vector.load %arg4[%c640, %c0_35] : memref<1152x128xbf16, #tpu.memory_space<vmem>>, vector<128x128xbf16>
    %cst_36 = arith.constant dense<0.000000e+00> : vector<256x128xf32>
    %58 = tpu.matmul %56, %57, %cst_36 {dimension_numbers = #tpu.dot_dimension_numbers<[1], [0], [0], [1], [0, 0, 1, 1], [], []>} : vector<256x128xbf16>, vector<128x128xbf16>, vector<256x128xf32> -> vector<256x128xf32>
    %59 = arith.addf %51, %58 : vector<256x128xf32>
    %c47 = arith.constant 47 : index
    %c0_37 = arith.constant 0 : index
    %60 = vector.load %arg9[%c47, %c0_37] : memref<320x128xbf16, #tpu.memory_space<vmem>>, vector<256x128xbf16>
    %cst_38 = arith.constant 0.000000e+00 : bf16
    %61 = vector.broadcast %cst_38 : bf16 to vector<256x128xbf16>
    %62 = vector.shape_cast %18 : vector<256x1xi1> to vector<256x1xi1>
    %63 = vector.broadcast %62 : vector<256x1xi1> to vector<256x128xi1>
    %64 = arith.select %63, %60, %61 : vector<256x128xi1>, vector<256x128xbf16>
    %c768 = arith.constant 768 : index
    %c0_39 = arith.constant 0 : index
    %65 = vector.load %arg4[%c768, %c0_39] : memref<1152x128xbf16, #tpu.memory_space<vmem>>, vector<128x128xbf16>
    %cst_40 = arith.constant dense<0.000000e+00> : vector<256x128xf32>
    %66 = tpu.matmul %64, %65, %cst_40 {dimension_numbers = #tpu.dot_dimension_numbers<[1], [0], [0], [1], [0, 0, 1, 1], [], []>} : vector<256x128xbf16>, vector<128x128xbf16>, vector<256x128xf32> -> vector<256x128xf32>
    %67 = arith.addf %59, %66 : vector<256x128xf32>
    %c48 = arith.constant 48 : index
    %c0_41 = arith.constant 0 : index
    %68 = vector.load %arg9[%c48, %c0_41] : memref<320x128xbf16, #tpu.memory_space<vmem>>, vector<256x128xbf16>
    %c896 = arith.constant 896 : index
    %c0_42 = arith.constant 0 : index
    %69 = vector.load %arg4[%c896, %c0_42] : memref<1152x128xbf16, #tpu.memory_space<vmem>>, vector<128x128xbf16>
    %cst_43 = arith.constant dense<0.000000e+00> : vector<256x128xf32>
    %70 = tpu.matmul %68, %69, %cst_43 {dimension_numbers = #tpu.dot_dimension_numbers<[1], [0], [0], [1], [0, 0, 1, 1], [], []>} : vector<256x128xbf16>, vector<128x128xbf16>, vector<256x128xf32> -> vector<256x128xf32>
    %71 = arith.addf %67, %70 : vector<256x128xf32>
    %c49 = arith.constant 49 : index
    %c0_44 = arith.constant 0 : index
    %72 = vector.load %arg9[%c49, %c0_44] : memref<320x128xbf16, #tpu.memory_space<vmem>>, vector<256x128xbf16>
    %cst_45 = arith.constant 0.000000e+00 : bf16
    %73 = vector.broadcast %cst_45 : bf16 to vector<256x128xbf16>
    %74 = vector.shape_cast %20 : vector<256x1xi1> to vector<256x1xi1>
    %75 = vector.broadcast %74 : vector<256x1xi1> to vector<256x128xi1>
    %76 = arith.select %75, %72, %73 : vector<256x128xi1>, vector<256x128xbf16>
    %c1024 = arith.constant 1024 : index
    %c0_46 = arith.constant 0 : index
    %77 = vector.load %arg4[%c1024, %c0_46] : memref<1152x128xbf16, #tpu.memory_space<vmem>>, vector<128x128xbf16>
    %cst_47 = arith.constant dense<0.000000e+00> : vector<256x128xf32>
    %78 = tpu.matmul %76, %77, %cst_47 {dimension_numbers = #tpu.dot_dimension_numbers<[1], [0], [0], [1], [0, 0, 1, 1], [], []>} : vector<256x128xbf16>, vector<128x128xbf16>, vector<256x128xf32> -> vector<256x128xf32>
    %79 = arith.addf %71, %78 : vector<256x128xf32>
    %c0_48 = arith.constant 0 : index
    %c0_49 = arith.constant 0 : index
    %80 = vector.load %arg5[%c0_48, %c0_49] : memref<1x128xf32, #tpu.memory_space<vmem>>, vector<1x128xf32>
    %81 = vector.broadcast %80 : vector<1x128xf32> to vector<256x128xf32>
    %82 = arith.addf %79, %81 : vector<256x128xf32>
    %cst_50 = arith.constant 0.000000e+00 : f32
    %83 = vector.broadcast %cst_50 : f32 to vector<256x128xf32>
    %84 = arith.maximumf %82, %83 : vector<256x128xf32>
    %85 = arith.truncf %84 : vector<256x128xf32> to vector<256x128xbf16>
    %c0_51 = arith.constant 0 : index
    %c0_52 = arith.constant 0 : index
    %86 = vector.load %arg6[%c0_51, %c0_52] : memref<128x128xbf16, #tpu.memory_space<vmem>>, vector<128x128xbf16>
    %cst_53 = arith.constant dense<0.000000e+00> : vector<256x128xf32>
    %87 = tpu.matmul %85, %86, %cst_53 {dimension_numbers = #tpu.dot_dimension_numbers<[1], [0], [0], [1], [0, 0, 1, 1], [], []>} : vector<256x128xbf16>, vector<128x128xbf16>, vector<256x128xf32> -> vector<256x128xf32>
    %c0_54 = arith.constant 0 : index
    %c0_55 = arith.constant 0 : index
    %c0_56 = arith.constant 0 : index
    %88 = vector.load %arg1[%c0_54, %c0_55, %c0_56] : memref<1x256x128xbf16, #tpu.memory_space<vmem>>, vector<1x256x128xbf16>
    %89 = vector.shape_cast %88 : vector<1x256x128xbf16> to vector<256x128xbf16>
    %90 = arith.extf %89 : vector<256x128xbf16> to vector<256x128xf32>
    %c0_57 = arith.constant 0 : index
    %c0_58 = arith.constant 0 : index
    %91 = vector.load %arg7[%c0_57, %c0_58] : memref<1x128xf32, #tpu.memory_space<vmem>>, vector<1x128xf32>
    %92 = vector.broadcast %91 : vector<1x128xf32> to vector<256x128xf32>
    %93 = arith.addf %87, %92 : vector<256x128xf32>
    %94 = arith.addf %93, %90 : vector<256x128xf32>
    %cst_59 = arith.constant 0.000000e+00 : f32
    %95 = vector.broadcast %cst_59 : f32 to vector<256x128xf32>
    %96 = arith.maximumf %94, %95 : vector<256x128xf32>
    %97 = arith.truncf %96 : vector<256x128xf32> to vector<256x128xbf16>
    %c0_60 = arith.constant 0 : index
    %c0_61 = arith.constant 0 : index
    %c0_62 = arith.constant 0 : index
    %98 = vector.load %arg8[%c0_60, %c0_61, %c0_62] : memref<1x256x128xbf16, #tpu.memory_space<vmem>>, vector<1x256x128xbf16>
    %99 = vector.shape_cast %98 : vector<1x256x128xbf16> to vector<256x128xbf16>
    %100 = vector.shape_cast %97 : vector<256x128xbf16> to vector<1x256x128xbf16>
    tpu.vector_store %arg8[%c0_60, %c0_61, %c0_62], %100 {strides = array<i32>} : memref<1x256x128xbf16, #tpu.memory_space<vmem>>, vector<1x256x128xbf16>,
    return
  }
  func.func @transform_0(%arg0: i32) -> (i32, i32, i32) {
    %c0_i32 = arith.constant 0 : i32
    %c0_i32_0 = arith.constant 0 : i32
    %c0_i32_1 = arith.constant 0 : i32
    return %arg0, %c0_i32, %c0_i32_0 : i32, i32, i32
  }
  func.func @transform_1(%arg0: i32) -> (i32, i32) {
    %c0_i32 = arith.constant 0 : i32
    %c0_i32_0 = arith.constant 0 : i32
    %c0_i32_1 = arith.constant 0 : i32
    return %c0_i32, %c0_i32_0 : i32, i32
  }
  func.func @transform_2(%arg0: i32) -> (i32, i32) {
    %c0_i32 = arith.constant 0 : i32
    %c0_i32_0 = arith.constant 0 : i32
    %c0_i32_1 = arith.constant 0 : i32
    return %c0_i32, %c0_i32_0 : i32, i32
  }
  func.func @transform_3(%arg0: i32) -> (i32, i32) {
    %c0_i32 = arith.constant 0 : i32
    %c0_i32_0 = arith.constant 0 : i32
    %c0_i32_1 = arith.constant 0 : i32
    return %c0_i32, %c0_i32_0 : i32, i32
  }
  func.func @transform_4(%arg0: i32) -> (i32, i32) {
    %c0_i32 = arith.constant 0 : i32
    %c0_i32_0 = arith.constant 0 : i32
    %c0_i32_1 = arith.constant 0 : i32
    return %c0_i32, %c0_i32_0 : i32, i32
  }
  func.func @transform_5(%arg0: i32) -> (i32, i32) {
    %c0_i32 = arith.constant 0 : i32
    %c0_i32_0 = arith.constant 0 : i32
    %c0_i32_1 = arith.constant 0 : i32
    return %c0_i32, %c0_i32_0 : i32, i32
  }
  func.func @transform_6(%arg0: i32) -> (i32, i32) {
    %c0_i32 = arith.constant 0 : i32
    %c0_i32_0 = arith.constant 0 : i32
    %c0_i32_1 = arith.constant 0 : i32
    return %c0_i32, %c0_i32_0 : i32, i32
  }
  func.func @transform_7(%arg0: i32) -> (i32, i32, i32) {
    %c0_i32 = arith.constant 0 : i32
    %c0_i32_0 = arith.constant 0 : i32
    %c0_i32_1 = arith.constant 0 : i32
    return %arg0, %c0_i32, %c0_i32_0 : i32, i32, i32
  }
}

</mosaic_0001>

<bundles_post_ra>
// kernel: tpu_custom_call.1
= control target key start
LH: loop header
LB: loop body
LE: loop exit
PB: predicated region body
PF: predicated region fallthrough
CT: control target
= control target key end

     0   :  { %s12535_s0 = inlined_call_operand.hbm [shape: bf16[2,256,128], index: 0, kind: input, shape index: {}]   ;;  %s12536_s1 = inlined_call_operand.hbm [shape: bf16[128,128], index: 1, kind: input, shape index: {}]   ;;  %s12537_s2 = inlined_call_operand.vmem [shape: f32[1,128], index: 2, kind: input, shape index: {}]   ;;  %s12538_s3 = inlined_call_operand.hbm [shape: bf16[1152,128], index: 3, kind: input, shape index: {}]   ;;  %s12539_s4 = inlined_call_operand.vmem [shape: f32[1,128], index: 4, kind: input, shape index: {}]   ;;  %s12540_s5 = inlined_call_operand.hbm [shape: bf16[128,128], index: 5, kind: input, shape index: {}]   ;;  %s12541_s6 = inlined_call_operand.vmem [shape: f32[1,128], index: 6, kind: input, shape index: {}]   ;;  %s12542_s7 = inlined_call_operand.hbm [shape: bf16[2,256,128], index: 7, kind: output, shape index: {}]  }
   0x1   :  { %12786 = sst [smem:[#allocation98_spill]] %s12536_s1 }
   0x2   :  { %12 = vsyncpa [#allocation4], 0 }
   0x3   :  { %14 = vsyncpa [#allocation4 + $0x1], 0 }
   0x4   :  { %15 = vsyncpa [#allocation7], 0 }
   0x5   :  { %16 = vsyncpa [#allocation10], 0 }
   0x6   :  { %17 = vsyncpa [#allocation5], 0 }
   0x7   :  { %19 = vsyncpa [#allocation5 + $0x1], 0  ;;  %s9071_s24 = smov 0   ;;  %s9073_s25 = smov 0  }
   0x8   :  { %s9075_s26 = smov 0   ;;  %s9077_s27 = smov 0  }
   0x9 LB: > { %s9092_s28 = sadd.s32 4294967295, %s9018_s27   ;;  %s7071_s29 = sadd.s32 4294967294, %s9018_s27   ;;  %s9018_s27 = sphi %s9077_s27, %s13604_s27   ;;  %s9014_s26 = sphi %s9075_s26, %s13603_s26   ;;  %s9010_s25 = sphi %s9073_s25, %s13602_s25   ;;  %s9006_s24 = sphi %s9071_s24, %s13601_s24  }
   0xa   : > { %p45_p0 = scmp.ne.s32.totalorder %s9010_s25, %s9006_s24  ;;  %p12543_p1 = scmp.eq.s32.totalorder %s9092_s28, 0 }
   0xb   : > { %p195_p2 = scmp.eq.s32.totalorder %s9092_s28, 1  ;;  %p201_p3 = scmp.eq.s32.totalorder %s7071_s29, 1 }
   0xc   : > { %p9101_p4 = por %p12543_p1, %p45_p0  ;;  %p7072_p5 = scmp.ge.s32.totalorder %s9018_s27, 1 }
   0xd   : > { %p9106_p6 = por %p201_p3, %p45_p0  ;;  %p208_p7 = scmp.lt.s32.totalorder %s9018_s27, 3 }
   0xe   : > { %s12787_s30 = scalar_select %p9101_p4, 1, 0 }
   0xf   : > { %s12788_s8 = scalar_select %p9106_p6, 1, 0 }
  0x10   : > { %p9111_p8 = pnand %p7072_p5, %p208_p7  ;;  %s9020_s10 = smov [#allocation6]  }
  0x11   : > { %s220_s11 = sshll.u32 %s9020_s10, 4  ;;  %s9021_s13 = smov [#allocation8]   ;;  %s221_s11 = int_to_ptr.vmem [resolvable:$true] %s220_s11 }
  0x12   : > { %s12789_s9 = scalar_select %p9111_p8, 1, 0 }
  0x13   : > { %p8572_p9 = pneg %p9111_p8  ;;  %s236_s14 = sshll.u32 %s9021_s13, 4  ;;  %s237_s14 = int_to_ptr.vmem [resolvable:$true] %s236_s14 }
  0x14   : > { %s9022_s15 = smov [#allocation9]   ;;  %s8851_s17 = scalar_lea.vmem %s221_s11, 1024 }
  0x15   : > { %p9120_p11 = pnand %p8572_p9, %p12543_p1  ;;  %s252_s16 = sshll.u32 %s9022_s15, 4  ;;  %s253_s16 = int_to_ptr.vmem [resolvable:$true] %s252_s16 }
  0x16   : > { %p8852_p13 = scmp.ne.s32.totalorder %s221_s11, %s8851_s17  ;;  %p8859_p5 = scmp.lt.s32.totalorder %s221_s11, %s221_s11 }
  0x17   : > { %p8842_p12 = pneg %p9120_p11  ;;  %p8860_p7 = scmp.lt.s32.totalorder %s8851_s17, %s8851_s17 }
  0x19   : > { %p8854_p0 = pnand %p8852_p13, %p8842_p12  ;;  %p8861_p9 = por %p8860_p7, %p8859_p5 }
  0x1b   : > { %p8855_p3 = pneg %p8854_p0 }
  0x1d   : > { %p8862_p10 = pnand %p8861_p9, %p8855_p3 }
  0x1f   : > { %8865 = shalt.err (!%p8862_p10)
}
  0x20   : > { %s12544_s18 = smov 64   ;;  %s12545_s19 = smov 4  }
  0x21   : > { %s12791_s1 = sld [smem:[#allocation98_spill]]  ;;  %s8877_s22 = scalar_lea.vmem %s237_s14, 9216 }
  0x22   : > { %p8878_p13 = scmp.ne.s32.totalorder %s237_s14, %s8877_s22  ;;  %p8885_p3 = scmp.lt.s32.totalorder %s237_s14, %s237_s14 }
  0x23   : > { %p8886_p10 = scmp.lt.s32.totalorder %s8877_s22, %s8877_s22 }
  0x24   : > { %p8880_p0 = pnand %p8878_p13, %p8842_p12 }
  0x25   : > { %p8887_p7 = por %p8886_p10, %p8885_p3 }
  0x26   : > { %p8881_p5 = pneg %p8880_p0 }
  0x27   : > { %8575 = dma.hbm_to_vmem [thread:$0]  (!%p9120_p11), %s12791_s1, 1024, %s221_s11, [#allocation7], %s12544_s18, %s12544_s18, %s12545_s19  }
  0x28   : > { %p8888_p9 = pnand %p8887_p7, %p8881_p5 }
  0x2a   : > { %8891 = shalt.err (!%p8888_p9)
}
  0x2b   : > { %8578 = dma.hbm_to_vmem [thread:$0]  (!%p9120_p11), %s12538_s3, 9216, %s237_s14, [#allocation7], %s12544_s18, %s12544_s18, %s12545_s19  }
  0x2c   : > { %s8903_s10 = scalar_lea.vmem %s253_s16, 1024  ;;  %p8911_p3 = scmp.lt.s32.totalorder %s253_s16, %s253_s16 }
  0x2d   : > { %p8904_p1 = scmp.ne.s32.totalorder %s253_s16, %s8903_s10  ;;  %p8912_p5 = scmp.lt.s32.totalorder %s8903_s10, %s8903_s10 }
  0x2f   : > { %p8906_p13 = pnand %p8904_p1, %p8842_p12  ;;  %p8913_p10 = por %p8912_p5, %p8911_p3 }
  0x31   : > { %p8907_p0 = pneg %p8906_p13 }
  0x33   : > { %p8914_p7 = pnand %p8913_p10, %p8907_p0 }
  0x35   : > { %8917 = shalt.err (!%p8914_p7)
}
  0x36   : > { %8581 = dma.hbm_to_vmem [thread:$0]  (!%p9120_p11), %s12540_s5, 1024, %s253_s16, [#allocation10], %s12544_s18, %s12544_s18, %s12545_s19  }
  0x37   : > { %s9160_s14 = sadd.s32 1, %s9018_s27   ;;  %s32_s15 = sadd.s32 1, %s9014_s26 }
  0x38   : > { %s29_s12 = ssub.s32 %s9018_s27, %s9160_s14  ;;  %p39_p12 = scmp.ne.s32.totalorder %s9014_s26, %s9010_s25 }
  0x39   : > { %p30_p1 = scmp.eq.s32.totalorder %s29_s12, 0  ;;  %p40_p9 = scmp.eq.s32.totalorder %s9018_s27, 0 }
  0x3a   : > { %p8593_p13 = scmp.lt.s32.totalorder %s9018_s27, 2  ;;  %p9174_p3 = por %p195_p2, %p39_p12 }
  0x3b   : > { %s9170_s17 = scalar_select %p30_p1, %s9014_s26, %s32_s15  }
  0x3c   : > { %p41_p0 = por %p40_p9, %p39_p12  ;;  %s269_s21 = sand.u32 1, %s9014_s26  }
  0x3d   : > { %s12792_s20 = scalar_select %p9174_p3, 1, 0 }
  0x3e   : > { %s7412_s22 = sshll.u32 %s9018_s27, 11  ;;  %s7077_s16 = sshll.u32 %s269_s21, 7 }
  0x3f   : > { %s9183_s10 = scalar_lea.hbm %s12535_s0, %s7412_s22  ;;  %s273_s11 = scalar_lea.vmem [#allocation3], %s7077_s16 }
  0x40   : > { %s280_s13 = sshll.u32 %s273_s11, 4  ;;  %p9185_p11 = pnand %p8593_p13, %p41_p0  ;;  %s9189_s13 = int_to_ptr.vmem [resolvable:$true] %s280_s13 }
  0x41   : > { %s9191_s15 = scalar_lea.sflag [#allocation4], %s269_s21  ;;  %s8918_s18 = scalar_lea.hbm %s9183_s10, 2048 }
  0x42   : > { %p8919_p2 = scmp.ne.s32.totalorder %s9183_s10, %s8918_s18  ;;  %p8920_p5 = pneg %p9185_p11 }
  0x43   : > { %s8923_s16 = scalar_lea.hbm %s12535_s0, 4096  ;;  %p8924_p1 = scmp.lt.s32.totalorder %s9183_s10, %s12535_s0 }
  0x44   : > { %p8921_p10 = pnand %p8920_p5, %p8919_p2  ;;  %p8925_p12 = scmp.lt.s32.totalorder %s8923_s16, %s8918_s18 }
  0x46   : > { %p8922_p7 = pneg %p8921_p10  ;;  %p8926_p9 = por %p8925_p12, %p8924_p1 }
  0x48   : > { %p8927_p13 = pnand %p8926_p9, %p8922_p7 }
  0x4a   : > { %8930 = shalt.err (!%p8927_p13)
}
  0x4b   : > { %s8931_s21 = scalar_lea.vmem %s9189_s13, 2048  ;;  %s9025_s19 = smov [#allocation3]  }
  0x4c   : > { %p8932_p0 = scmp.ne.s32.totalorder %s9189_s13, %s8931_s21  ;;  %s8936_s1 = sshll.u32 %s9025_s19, 4  ;;  %s8937_s1 = int_to_ptr.vmem [resolvable:$false] %s8936_s1 }
  0x4d   : > { %s8938_s22 = scalar_lea.vmem %s8937_s1, 4096  ;;  %p8939_p10 = scmp.lt.s32.totalorder %s9189_s13, %s8937_s1 }
  0x4e   : > { %p8934_p6 = pnand %p8932_p0, %p8920_p5  ;;  %p8940_p3 = scmp.lt.s32.totalorder %s8938_s22, %s8931_s21 }
  0x50   : > { %p8935_p2 = pneg %p8934_p6  ;;  %p8941_p4 = por %p8940_p3, %p8939_p10 }
  0x52   : > { %p8942_p8 = pnand %p8941_p4, %p8935_p2 }
  0x54   : > { %8945 = shalt.err (!%p8942_p8)
}
  0x55   : > { %s12794_s18 = smov 4   ;;  %s12795_s23 = smov 64  }
  0x56   : > { %8585 = dma.hbm_to_vmem [thread:$0]  (!%p9185_p11), %s9183_s10, 2048, %s9189_s13, %s9191_s15, %s12795_s23, %s12795_s23, %s12794_s18  }
  0x57   : > { %p12796_p6 = scmp.ne.s32.totalorder %s12789_s9, 0 }
  0x59   : > { %292 = sbr.rel (%p12796_p6) target bundleno = 1174 (0x496), region = 48 }
  0x5e   : > { %s9218_s19 = sand.u32 1, %s9010_s25   ;;  %p12797_p4 = scmp.ne.s32.totalorder %s12787_s30, 0 }
  0x5f   : > { %s7081_s1 = sshll.u32 %s9218_s19, 7  ;;  %s295_s16 = scalar_lea.sflag [#allocation4], %s9218_s19 }
  0x60   : > { %s9224_s12 = scalar_lea.vmem [#allocation3], %s7081_s1 }
  0x61   : > { %8989 = dma.done.wait (%p12797_p4), %s295_s16, 2048  }
  0x62   : > { %8991 = vsyncadd (%p12797_p4), %s295_s16, 4294965248  ;;  %p12798_p8 = scmp.eq.s32.totalorder %s9092_s28, 0 }
  0x64   : > { %8993 = dma.done.wait (%p12798_p8), [#allocation7], 10240   ;;  %p12799_p3 = pmov %p12798_p8 }
  0x66   : > { %8995 = vsyncadd (%p12799_p3), [#allocation7], 4294957056  ;;  %p12800_p11 = pmov %p12799_p3 }
  0x67   : > { %p12801_p5 = pmov %p12799_p3 }
  0x68   : > { %8997 = dma.done.wait (%p12800_p11), [#allocation10], 1024  }
  0x69   : > { %8999 = vsyncadd (%p12801_p5), [#allocation10], 4294966272  ;;  %v12560_v0 = vmov 0   ;;  %v8639_v1 = vld [vmem:[#allocation6 + $0x38] sm:$0xff]   ;;  %v8640_v2 = vld [vmem:[#allocation6 + $0x30] sm:$0xff]   ;;  %v904_v38 = vlaneseq  ;;  %vm9027_vm2 = vmmov 1  }
  0x6a   : > { %737 = vst [vmem:[#allocation2 + $0x4] sm:$0xf] %v12560_v0  ;;  %738 = vst [vmem:[#allocation2 + $0x8] sm:$0xf] %v12560_v0  ;;  %8012 = vmatprep.subr.bf16.mxu0 %v8639_v1  ;;  %8540 = vmatprep.subr.bf16.mxu1 %v8639_v1  ;;  %v8641_v3 = vld [vmem:[#allocation6 + $0x28] sm:$0xff]   ;;  %v8642_v4 = vld [vmem:[#allocation6 + $0x20] sm:$0xff]  }
  0x6b   : > { %739 = vst [vmem:[#allocation2 + $0xc] sm:$0xf] %v12560_v0  ;;  %740 = vst [vmem:[#allocation2 + $0x90] sm:$0xf] %v12560_v0  ;;  %8013 = vmatpush3.bf16.msra.mxu0 %v8639_v1  ;;  %8548 = vmatpush3.bf16.msra.mxu1 %v8639_v1  ;;  %v8647_v5 = vld [vmem:[%s9224_s12] sm:$0xff]   ;;  %v8643_v6 = vld [vmem:[#allocation6 + $0x18] sm:$0xff]  }
  0x6c   : > { %741 = vst [vmem:[#allocation2 + $0x94] sm:$0xf] %v12560_v0  ;;  %742 = vst [vmem:[#allocation2 + $0x98] sm:$0xf] %v12560_v0  ;;  %8014 = vmatprep.subr.bf16.mxu0 %v8640_v2  ;;  %8541 = vmatprep.subr.bf16.mxu1 %v8640_v2  ;;  %v8653_v7 = vld [vmem:[%s9224_s12 + $0x40] sm:$0xff]   ;;  %v8644_v8 = vld [vmem:[#allocation6 + $0x10] sm:$0xff]  }
  0x6d   : > { %8028 = vmatprep.mubr.bf16.mxu0 %v8647_v5  ;;  %8044 = vmatprep.mubr.bf16.mxu1 %v8653_v7  ;;  %v8645_v9 = vld [vmem:[#allocation6 + $0x8] sm:$0xff]   ;;  %v8646_v10 = vld [vmem:[#allocation6] sm:$0xff]   ;;  %v8663_v11 = vld [vmem:[#allocation8 + $0x78] sm:$0xff]   ;;  %v9266_v43 = vshrl.u32 %v904_v38, 7  ;;  %vm1194_vm10 = vsmask.f32 3328 }
  0x6e   : > { %v8648_v12 = vld [vmem:[%s9224_s12 + $0x8] sm:$0xff]   ;;  %v8649_v14 = vld [vmem:[%s9224_s12 + $0x10] sm:$0xff]   ;;  %v8650_v18 = vld [vmem:[%s9224_s12 + $0x18] sm:$0xff]   ;;  %vm1195_vm11 = vsmask.f32 7440  ;;  %s12429_s11 = scalar_lea.vmem [#allocation11], %s7081_s1 }
  0x6f   : > { %8015 = vmatpush3.bf16.msra.mxu0 %v8640_v2  ;;  %8549 = vmatpush3.bf16.msra.mxu1 %v8640_v2  ;;  %v8654_v13 = vld [vmem:[%s9224_s12 + $0x48] sm:$0xff]   ;;  %v8657_v15 = vld [vmem:[%s9224_s12 + $0x50] sm:$0xff]   ;;  %v8658_v19 = vld [vmem:[%s9224_s12 + $0x58] sm:$0xff]   ;;  %v937_v44 = vand.u32 15, %v9266_v43  ;;  %v907_v45 = vadd.s32 16, %v9266_v43  ;;  %v909_v49 = vadd.s32 32, %v9266_v43 }
  0x70   : > { %8016 = vmatprep.subr.bf16.mxu0 %v8641_v3  ;;  %8542 = vmatprep.subr.bf16.mxu1 %v8641_v3  ;;  %v8664_v16 = vld [vmem:[#allocation8 + $0x70] sm:$0xff]   ;;  %v8665_v17 = vld [vmem:[#allocation8 + $0x68] sm:$0xff]   ;;  %v8651_v20 = vld [vmem:[%s9224_s12 + $0x20] sm:$0xff]   ;;  %v911_v52 = vadd.s32 48, %v9266_v43  ;;  %v913_v7 = vadd.s32 64, %v9266_v43  ;;  %s7477_s21 = sshll.u32 %s9092_s28, 11 }
  0x71   : > { %v8659_v21 = vld [vmem:[%s9224_s12 + $0x60] sm:$0xff]   ;;  %v8652_v22 = vld [vmem:[%s9224_s12 + $0x28] sm:$0xff]   ;;  %v8655_v24 = vld [vmem:[%s9224_s12 + $0x30] sm:$0xff]   ;;  %vm969_vm0 = vcmp.ne.s32.totalorder %v937_v44, 0  ;;  %v939_v48 = vand.u32 15, %v907_v45  ;;  %v941_v53 = vand.u32 15, %v909_v49  ;;  %s12488_s1 = scalar_lea.hbm %s12542_s7, %s7477_s21 }
  0x72   : > { %v8660_v23 = vld [vmem:[%s9224_s12 + $0x68] sm:$0xff]   ;;  %v8661_v25 = vld [vmem:[%s9224_s12 + $0x70] sm:$0xff]   ;;  %v8656_v26 = vld [vmem:[%s9224_s12 + $0x38] sm:$0xff]   ;;  %v943_v57 = vand.u32 15, %v911_v52  ;;  %v925_v52 = vadd.s32 160, %v9266_v43  ;;  %s6969_s22 = sshll.u32 %s12429_s11, 4  ;;  %s12490_s22 = int_to_ptr.vmem [resolvable:$true] %s6969_s22 }
  0x73   : > { %8017 = vmatpush3.bf16.msra.mxu0 %v8641_v3  ;;  %8550 = vmatpush3.bf16.msra.mxu1 %v8641_v3  ;;  %v8662_v27 = vld [vmem:[%s9224_s12 + $0x78] sm:$0xff]   ;;  %v8667_v29 = vld [vmem:[#allocation8 + $0x60] sm:$0xff]   ;;  %v8668_v30 = vld [vmem:[#allocation8 + $0x30] sm:$0xff]   ;;  %vm971_vm4 = vcmp.ne.s32.totalorder %v939_v48, 0  ;;  %vm973_vm6 = vcmp.ne.s32.totalorder %v941_v53, 0  ;;  %s6956_s16 = scalar_lea.sflag [#allocation5], %s9218_s19 }
  0x74   : > { %8018 = vmatprep.subr.bf16.mxu0 %v8642_v4  ;;  %8543 = vmatprep.subr.bf16.mxu1 %v8642_v4  ;;  %v8666_v28 = vld [vmem:[#allocation8 + $0x38] sm:$0xff]   ;;  %v8670_v32 = vld [vmem:[#allocation8 + $0x28] sm:$0xff]   ;;  %v8671_v33 = vld [vmem:[#allocation8 + $0x50] sm:$0xff]   ;;  %vm9281_vm8 = vcmp.ne.s32.totalorder %v943_v57, 0  ;;  %p13598_p1 = scmp.ne.s32.totalorder %s12792_s20, 0  ;;  %s9028_s28 = smov [#allocation11]  }
  0x75   : > { %v8669_v31 = vld [vmem:[#allocation8 + $0x58] sm:$0xff]   ;;  %v8672_v34 = vld [vmem:[#allocation8 + $0x20] sm:$0xff]   ;;  %v8673_v35 = vld [vmem:[#allocation8 + $0x48] sm:$0xff]   ;;  %s8950_s30 = sshll.u32 %s9028_s28, 4  ;;  %s8951_s30 = int_to_ptr.vmem [resolvable:$false] %s8950_s30 }
  0x76   : > { %v8674_v36 = vld [vmem:[#allocation8 + $0x18] sm:$0xff]   ;;  %v8675_v37 = vld [vmem:[#allocation8 + $0x40] sm:$0xff]   ;;  %v8676_v39 = vld [vmem:[#allocation8 + $0x10] sm:$0xff]   ;;  %s8952_s9 = scalar_lea.vmem %s8951_s30, 4096  ;;  %p8953_p13 = scmp.lt.s32.totalorder %s12490_s22, %s8951_s30 }
  0x77   : > { %8019 = vmatpush3.bf16.msra.mxu0 %v8642_v4  ;;  %8551 = vmatpush3.bf16.msra.mxu1 %v8642_v4  ;;  %v9260_v40 = vld [vmem:[#allocation2 + $0x8] sm:$0xf]  ;;  %v9262_v41 = vld [vmem:[#allocation2 + $0xc] sm:$0xf]  ;;  %v8679_v47 = vld [vmem:[#allocation8 + $0xb8] sm:$0xff]  }
  0x78   : > { %8020 = vmatprep.subr.bf16.mxu0 %v8643_v6  ;;  %8544 = vmatprep.subr.bf16.mxu1 %v8643_v6  ;;  %v7143_v42 = vcombine.low %v9260_v40, %v9262_v41  ;;  %v8681_v46 = vld [vmem:[#allocation8 + $0x8] sm:$0xff]   ;;  %vm1130_vm1 = vmpackc.low %vm969_vm0, %vm969_vm0  ;;  %v8682_v50 = vld [vmem:[#allocation8] sm:$0xff]  }
  0x79   : > { %vm1131_vm3 = vmpackc.low %vm9027_vm2, %vm9027_vm2  ;;  %v1162_v51 = vsel %vm1130_vm1, 65537, %v12560_v0 }
  0x7a   : > { %v9274_v54 = vsel %vm1131_vm3, 65537, %v12560_v0  ;;  %v1198_v55 = vshll.u32 %v1162_v51, 16  ;;  %v1201_v56 = vshrl.u32 %v1162_v51, 16  ;;  %vm1132_vm5 = vmpackc.low %vm971_vm4, %vm971_vm4 }
  0x7b   : > { %8021 = vmatpush3.bf16.msra.mxu0 %v8643_v6  ;;  %8552 = vmatpush3.bf16.msra.mxu1 %v8643_v6  ;;  %v1207_v58 = vshll.u32 %v9274_v54, 16  ;;  %v1164_v59 = vsel %vm1132_vm5, 65537, %v12560_v0  ;;  %v1211_v62 = vshrl.u32 %v9274_v54, 16  ;;  %vm1134_vm7 = vmpackc.low %vm973_vm6, %vm973_vm6 }
  0x7c   : > { %8022 = vmatprep.subr.bf16.mxu0 %v8644_v8  ;;  %8545 = vmatprep.subr.bf16.mxu1 %v8644_v8  ;;  %v9278_v60 = vrot.slane %v1198_v55, 5  ;;  %v1203_v61 = vrot.slane %v1201_v56, 4  ;;  %v1217_v2 = vshll.u32 %v1164_v59, 16  ;;  %v1221_v3 = vshrl.u32 %v1164_v59, 16  ;;  %vm1136_vm9 = vmpackc.low %vm9281_vm8, %vm9281_vm8 }
  0x7d   : > { %v9287_v1 = vrot.slane %v1207_v58, 5  ;;  %v1213_v5 = vrot.slane %v1211_v62, 4  ;;  %v1166_v6 = vsel %vm1134_vm7, 65537, %v12560_v0  ;;  %vm9299_vm12 = vmor %vm1194_vm10, %vm1195_vm11 }
  0x7e   : > { %12802 = vst [vmem:[#allocation16_spill] sm:$0xff] %v9278_v60  ;;  %v1204_v4 = vor.u32 %v1203_v61, %v9278_v60  ;;  %vm12596_vm14 = vcmp.ne.s16.totalorder %v9278_v60, 0 }
  0x7f   : > { %8023 = vmatpush3.bf16.msra.mxu0 %v8644_v8  ;;  %8553 = vmatpush3.bf16.msra.mxu1 %v8644_v8  ;;  %v1219_v8 = vrot.slane %v1217_v2, 5 }
  0x80   : > { %8024 = vmatprep.subr.bf16.mxu0 %v8645_v9  ;;  %8546 = vmatprep.subr.bf16.mxu1 %v8645_v9 }
  0x83   : > { %8025 = vmatpush3.bf16.msra.mxu0 %v8645_v9  ;;  %8554 = vmatpush3.bf16.msra.mxu1 %v8645_v9  ;;  %v1223_v9 = vrot.slane %v1221_v3, 4 }
  0x84   : > { %8026 = vmatprep.subr.bf16.mxu0 %v8646_v10  ;;  %8547 = vmatprep.subr.bf16.mxu1 %v8646_v10 }
  0x87   : > { %8027 = vmatpush3.bf16.msra.mxu0 %v8646_v10  ;;  %8555 = vmatpush3.bf16.msra.mxu1 %v8646_v10  ;;  %v1237_v10 = vshll.u32 %v1166_v6, 16 }
  0x88   : > { %8060 = vmatprep.subr.bf16.mxu1 %v8663_v11  ;;  %8108 = vmatprep.subr.bf16.mxu0 %v8666_v28 }
  0x8a   : > { %8029 = vmatmul.mubr.bf16.vlgmr.msra.gmra.mxu0 %v8648_v12  ;;  %8045 = vmatmul.mubr.bf16.vlgmr.msra.gmra.mxu1 %v8654_v13  ;;  %v1214_v12 = vor.u32 %v1213_v5, %v9287_v1  ;;  %v1168_v13 = vsel %vm1136_vm9, 65537, %v12560_v0 }
  0x8b   : > { %8032 = vmatprep.mubr.bf16.mxu0 %v8649_v14  ;;  %8048 = vmatprep.mubr.bf16.mxu1 %v8657_v15  ;;  %v945_v14 = vand.u32 15, %v913_v7  ;;  %v10662_v15 = vld [vmem:[#allocation8 + $0x178] sm:$0xff]  }
  0x8c   : > { %8061 = vmatpush3.bf16.msra.mxu1 %v8663_v11  ;;  %8109 = vmatpush3.bf16.msra.mxu0 %v8666_v28  ;;  %v1205_v11 = vrot.slane %v1204_v4, 4 }
  0x8d   : > { %8062 = vmatprep.subr.bf16.mxu1 %v8664_v16  ;;  %8110 = vmatprep.subr.bf16.mxu0 %v8668_v30  ;;  %vm9312_vm13 = vcmp.ne.s32.totalorder %v945_v14, 0 }
  0x8e   : > { %vm1138_vm0 = vmpackc.low %vm9312_vm13, %vm9312_vm13 }
  0x8f   : > { %v1170_v45 = vsel %vm1138_vm0, 65537, %v12560_v0 }
  0x90   : > { %8063 = vmatpush3.bf16.msra.mxu1 %v8664_v16  ;;  %8111 = vmatpush3.bf16.msra.mxu0 %v8668_v30  ;;  %v1241_v16 = vshrl.u32 %v1166_v6, 16  ;;  %v1277_v56 = vshll.u32 %v1170_v45, 16  ;;  %v1281_v57 = vshrl.u32 %v1170_v45, 16  ;;  %v906_v6 = vadd.s32 8, %v9266_v43 }
  0x91   : > { %8064 = vmatprep.subr.bf16.mxu1 %v8665_v17  ;;  %8112 = vmatprep.subr.bf16.mxu0 %v8670_v32 }
  0x92   : > { %8033 = vmatmul.mubr.bf16.gmra.mxu0 %v8650_v18  ;;  %8049 = vmatmul.mubr.bf16.gmra.mxu1 %v8658_v19  ;;  %v917_v18 = vadd.s32 96, %v9266_v43  ;;  %v915_v19 = vadd.s32 80, %v9266_v43  ;;  %v1283_v14 = vrot.slane %v1281_v57, 4 }
  0x93   : > { %8036 = vmatprep.mubr.bf16.mxu0 %v8651_v20  ;;  %8052 = vmatprep.mubr.bf16.mxu1 %v8659_v21  ;;  %v1224_v20 = vor.u32 %v1223_v9, %v1219_v8  ;;  %v1257_v21 = vshll.u32 %v1168_v13, 16 }
  0x94   : > { %8065 = vmatpush3.bf16.msra.mxu1 %v8665_v17  ;;  %8113 = vmatpush3.bf16.msra.mxu0 %v8670_v32  ;;  %v1261_v17 = vshrl.u32 %v1168_v13, 16  ;;  %v947_v30 = vand.u32 15, %v915_v19  ;;  %v9399_v13 = vrot.slane %v1277_v56, 5 }
  0x95   : > { %8066 = vmatprep.subr.bf16.mxu1 %v8667_v29  ;;  %8114 = vmatprep.subr.bf16.mxu0 %v8672_v34  ;;  %v9321_v32 = vrot.slane %v1257_v21, 5 }
  0x96   : > { %v1263_v28 = vrot.slane %v1261_v17, 4  ;;  %vm9345_vm2 = vcmp.ne.s32.totalorder %v947_v30, 0  ;;  %v1284_v30 = vor.u32 %v1283_v14, %v9399_v13  ;;  %v933_v14 = vadd.s32 224, %v9266_v43 }
  0x97   : > { %vm1140_vm5 = vmpackc.low %vm9345_vm2, %vm9345_vm2 }
  0x98   : > { %8067 = vmatpush3.bf16.msra.mxu1 %v8667_v29  ;;  %8115 = vmatpush3.bf16.msra.mxu0 %v8672_v34  ;;  %v949_v29 = vand.u32 15, %v917_v18  ;;  %v9327_v34 = vrot.slane %v1224_v20, 4  ;;  %v9447_v57 = vrot.slane %v1284_v30, 4 }
  0x99   : > { %8068 = vmatprep.subr.bf16.mxu1 %v8669_v31  ;;  %8116 = vmatprep.subr.bf16.mxu0 %v8674_v36 }
  0x9a   : > { %8037 = vmatmul.mubr.bf16.gmra.mxu0 %v8652_v22  ;;  %8053 = vmatmul.mubr.bf16.gmra.mxu1 %v8660_v23  ;;  %v1210_v22 = vsel %vm9299_vm12, %v1205_v11, %v9287_v1  ;;  %v9308_v23 = vrot.slane %v1214_v12, 4  ;;  %vm9340_vm1 = vcmp.ne.s32.totalorder %v949_v29, 0  ;;  %v929_v29 = vadd.s32 192, %v9266_v43 }
  0x9b   : > { %8040 = vmatprep.mubr.bf16.mxu0 %v8655_v24  ;;  %8056 = vmatprep.mubr.bf16.mxu1 %v8661_v25  ;;  %v9310_v24 = vrot.slane %v1237_v10, 5  ;;  %vm9317_vm15 = vcmp.ne.s16.totalorder %v1210_v22, 0  ;;  %vm1142_vm4 = vmpackc.low %vm9340_vm1, %vm9340_vm1  ;;  %v957_v10 = vand.u32 15, %v925_v52  ;;  %v927_v22 = vadd.s32 176, %v9266_v43 }
  0x9c   : > { %8069 = vmatpush3.bf16.msra.mxu1 %v8669_v31  ;;  %8117 = vmatpush3.bf16.msra.mxu0 %v8674_v36  ;;  %12807 = vst [vmem:[#allocation17_spill] sm:$0xff] %v9308_v23  ;;  %v1550_v36 = vsel %vm9317_vm15, %v9260_v40, 0  ;;  %v1220_v38 = vsel %vm9299_vm12, %v9308_v23, %v1219_v8  ;;  %v923_v40 = vadd.s32 144, %v9266_v43  ;;  %v1174_v4 = vsel %vm1142_vm4, 65537, %v12560_v0 }
  0x9d   : > { %8070 = vmatprep.subr.bf16.mxu1 %v8671_v33  ;;  %8118 = vmatprep.subr.bf16.mxu0 %v8676_v39  ;;  %vm9354_vm3 = vcmp.ne.s16.totalorder %v1220_v38, 0  ;;  %v1172_v8 = vsel %vm1140_vm5, 65537, %v12560_v0  ;;  %v1317_v17 = vshll.u32 %v1174_v4, 16  ;;  %v1321_v18 = vshrl.u32 %v1174_v4, 16 }
  0x9e   : > { %v955_v2 = vand.u32 15, %v923_v40  ;;  %v1297_v21 = vshll.u32 %v1172_v8, 16  ;;  %v938_v25 = vand.u32 15, %v906_v6  ;;  %vm9420_vm11 = vcmp.ne.s32.totalorder %v957_v10, 0 }
  0x9f   : > { %v9432_v38 = vrot.slane %v1317_v17, 5  ;;  %vm1150_vm0 = vmpackc.low %vm9420_vm11, %vm9420_vm11  ;;  %v961_v52 = vand.u32 15, %v929_v29  ;;  %v935_v40 = vadd.s32 240, %v9266_v43  ;;  %v2547_v10 = vrot.slane %v1211_v62, 7 }
  0xa0   : > { %8071 = vmatpush3.bf16.msra.mxu1 %v8671_v33  ;;  %8119 = vmatpush3.bf16.msra.mxu0 %v8676_v39  ;;  %v921_v33 = vadd.s32 128, %v9266_v43  ;;  %vm9404_vm9 = vcmp.ne.s32.totalorder %v955_v2, 0  ;;  %v9435_v44 = vrot.slane %v1297_v21, 5  ;;  %vm9440_vm1 = vcmp.ne.s32.totalorder %v938_v25, 15 }
  0xa1   : > { %8072 = vmatprep.subr.bf16.mxu1 %v8673_v35  ;;  %8120 = vmatprep.subr.bf16.mxu0 %v8681_v46  ;;  %vm1148_vm13 = vmpackc.low %vm9404_vm9, %vm9404_vm9  ;;  %vm9462_vm5 = vcmp.ne.s32.totalorder %v961_v52, 0 }
  0xa2   : > { %8041 = vmatmul.mubr.bf16.gmra.mxu0 %v8656_v26  ;;  %8057 = vmatmul.mubr.bf16.gmra.mxu1 %v8662_v27  ;;  %v1033_v26 = vld [vmem:[#allocation2 + $0x4] sm:$0x8]  ;;  %v1243_v27 = vrot.slane %v1241_v16, 4  ;;  %v953_v48 = vand.u32 15, %v921_v33  ;;  %v1301_v16 = vshrl.u32 %v1172_v8, 16  ;;  %vm2478_vm2 = vmpackc.low %vm9440_vm1, %vm9440_vm1 }
  0xa3   : > { %8076 = vmatprep.mubr.bf16.mxu1 %v7143_v42  ;;  %v1264_v42 = vor.u32 %v1263_v28, %v9321_v32  ;;  %v2510_v28 = vsel %vm2478_vm2, 65537, %v12560_v0  ;;  %vm2542_vm1 = vsmask.f32 4368 }
  0xa4   : > { %8073 = vmatpush3.bf16.msra.mxu1 %v8673_v35  ;;  %8121 = vmatpush3.bf16.msra.mxu0 %v8681_v46  ;;  %v1549_v35 = vsel %vm12596_vm14, %v1033_v26, 0  ;;  %v1244_v39 = vor.u32 %v1243_v27, %v9310_v24  ;;  %vm9381_vm6 = vcmp.ne.s32.totalorder %v953_v48, 0  ;;  %v959_v46 = vand.u32 15, %v927_v22 }
  0xa5   : > { %8074 = vmatprep.subr.bf16.mxu1 %v8675_v37  ;;  %8122 = vmatprep.subr.bf16.mxu0 %v8682_v50  ;;  %v9364_v55 = vrot.slane %v1264_v42, 4  ;;  %vm1146_vm8 = vmpackc.low %vm9381_vm6, %vm9381_vm6  ;;  %v1323_v42 = vrot.slane %v1321_v18, 4 }
  0xa6   : > { %v9362_v53 = vrot.slane %v1244_v39, 4  ;;  %v1178_v33 = vsel %vm1146_vm8, 65537, %v12560_v0  ;;  %vm9455_vm4 = vcmp.ne.s32.totalorder %v959_v46, 0  ;;  %vm1154_vm8 = vmpackc.low %vm9462_vm5, %vm9462_vm5 }
  0xa7   : > { %v1361_v48 = vshrl.u32 %v1178_v33, 16  ;;  %v1324_v5 = vor.u32 %v1323_v42, %v9432_v38 }
  0xa8   : > { %8075 = vmatpush3.bf16.msra.mxu1 %v8675_v37  ;;  %8123 = vmatpush3.bf16.msra.mxu0 %v8682_v50  ;;  %v919_v37 = vadd.s32 112, %v9266_v43  ;;  %v12816_v50 = vmov 0 }
  0xa9   : > { %8156 = vmatprep.subr.bf16.mxu1 %v8679_v47  ;;  %v7167_v47 = vcombine.low %v1549_v35, %v1550_v36  ;;  %v12817_v50 = vsel %vm9354_vm3, 4294967295, %v12816_v50  ;;  %v931_v35 = vadd.s32 208, %v9266_v43  ;;  %v908_v36 = vadd.s32 24, %v9266_v43 }
  0xaa   : > { %v951_v51 = vand.u32 15, %v919_v37  ;;  %v1303_v37 = vrot.slane %v1301_v16, 4  ;;  %v1363_v18 = vrot.slane %v1361_v48, 4  ;;  %v2553_v48 = vshrl.u32 %v2510_v28, 16 }
  0xab   : > { %v2004_v3 = vshrl.u32 %v7167_v47, 16  ;;  %v2007_v7 = vshll.u32 %v7167_v47, 16  ;;  %v1357_v47 = vshll.u32 %v1178_v33, 16  ;;  %v963_v2 = vand.u32 15, %v931_v35 }
  0xac   : > { %vm9387_vm7 = vcmp.ne.s32.totalorder %v951_v51, 0  ;;  %v1180_v51 = vsel %vm1148_vm13, 65537, %v12560_v0  ;;  %v1304_v4 = vor.u32 %v1303_v37, %v9435_v44  ;;  %v9477_v33 = vrot.slane %v1324_v5, 4 }
  0xad   : > { %v9408_v20 = vrot.slane %v2004_v3, 3  ;;  %vm1144_vm10 = vmpackc.low %vm9387_vm7, %vm9387_vm7  ;;  %v9418_v27 = vrot.slane %v2007_v7, 4  ;;  %v940_v3 = vand.u32 15, %v908_v36  ;;  %v1182_v7 = vsel %vm1150_vm0, 65537, %v12560_v0  ;;  %v9484_v36 = vld [vmem:[#allocation8 + $0xf8] sm:$0xff]  }
  0xae   : > { %v1176_v39 = vsel %vm1144_vm10, 65537, %v12560_v0  ;;  %v1377_v8 = vshll.u32 %v1180_v51, 16  ;;  %v1381_v9 = vshrl.u32 %v1180_v51, 16  ;;  %v9460_v17 = vrot.slane %v1357_v47, 5  ;;  %vm1152_vm7 = vmpackc.low %vm9455_vm4, %vm9455_vm4  ;;  %8204 = vmatprep.subr.bf16.mxu0 %v9484_v36 }
  0xaf   : > { %v1341_v45 = vshrl.u32 %v1176_v39, 16  ;;  %v1337_v6 = vshll.u32 %v1176_v39, 16  ;;  %v1397_v21 = vshll.u32 %v1182_v7, 16  ;;  %v1401_v22 = vshrl.u32 %v1182_v7, 16 }
  0xb0   : > { %vm9466_vm6 = vcmp.ne.s32.totalorder %v963_v2, 0  ;;  %v9475_v30 = vrot.slane %v1304_v4, 4  ;;  %v9490_v39 = vrot.slane %v1377_v8, 5  ;;  %v1383_v42 = vrot.slane %v1381_v9, 4 }
  0xb1   : > { %v1343_v16 = vrot.slane %v1341_v45, 4  ;;  %v9479_v35 = vrot.slane %v1337_v6, 5  ;;  %v965_v45 = vand.u32 15, %v933_v14  ;;  %vm1156_vm9 = vmpackc.low %vm9466_vm6, %vm9466_vm6  ;;  %vm9504_vm10 = vcmp.ne.s32.totalorder %v940_v3, 15 }
  0xb2   : > { %v1364_v52 = vor.u32 %v1363_v18, %v9460_v17  ;;  %v9510_v2 = vrot.slane %v1397_v21, 5  ;;  %v1403_v4 = vrot.slane %v1401_v22, 4  ;;  %v1184_v7 = vsel %vm1152_vm7, 65537, %v12560_v0  ;;  %vm2480_vm5 = vmpackc.low %vm9504_vm10, %vm9504_vm10 }
  0xb3   : > { %v1344_v51 = vor.u32 %v1343_v16, %v9479_v35  ;;  %v1384_v8 = vor.u32 %v1383_v42, %v9490_v39  ;;  %v1186_v9 = vsel %vm1154_vm8, 65537, %v12560_v0  ;;  %v1188_v14 = vsel %vm1156_vm9, 65537, %v12560_v0 }
  0xb4   : > { %12836 = vst [vmem:[#allocation18_spill] sm:$0xff] %v9510_v2  ;;  %vm9538_vm11 = vcmp.ne.s32.totalorder %v965_v45, 0  ;;  %v967_v18 = vand.u32 15, %v935_v40  ;;  %v9544_v21 = vrot.slane %v2553_v48, 7  ;;  %v2556_v22 = vshll.u32 %v2510_v28, 16 }
  0xb5   : > { %v9546_v25 = vrot.slane %v1344_v51, 4  ;;  %v9548_v42 = vrot.slane %v1364_v52, 4  ;;  %v1404_v19 = vor.u32 %v1403_v4, %v9510_v2  ;;  %v1417_v6 = vshll.u32 %v1184_v7, 16  ;;  %vm1158_vm13 = vmpackc.low %vm9538_vm11, %vm9538_vm11  ;;  %v2380_v51 = vld [vmem:[#allocation2 + $0x8] sm:$0xf] }
  0xb6   : > { %v1421_v56 = vshrl.u32 %v1184_v7, 16  ;;  %v1437_v3 = vshll.u32 %v1186_v9, 16  ;;  %vm2541_vm0 = vsmask.f32 256  ;;  %v1441_v28 = vshrl.u32 %v1186_v9, 16 }
  0xb7   : > { %v1457_v45 = vshll.u32 %v1188_v14, 16  ;;  %v910_v40 = vadd.s32 40, %v9266_v43  ;;  %v1461_v48 = vshrl.u32 %v1188_v14, 16  ;;  %vm9559_vm2 = vcmp.ne.s32.totalorder %v967_v18, 0  ;;  %vm9577_vm4 = vmor %vm2541_vm0, %vm2542_vm1 }
  0xb8   : > { %v9563_v52 = vrot.slane %v2547_v10, 4  ;;  %v2558_v4 = vor.u32 %v2556_v22, %v9544_v21  ;;  %v9574_v16 = vrot.slane %v1384_v8, 4  ;;  %v1190_v14 = vsel %vm1158_vm13, 65537, %v12560_v0  ;;  %vm1160_vm6 = vmpackc.low %vm9559_vm2, %vm9559_vm2 }
  0xb9   : > { %v9581_v62 = vrot.slane %v1404_v19, 4  ;;  %v9583_v22 = vrot.slane %v1417_v6, 5  ;;  %v1423_v46 = vrot.slane %v1421_v56, 4  ;;  %v9585_v5 = vrot.slane %v1437_v3, 5 }
  0xba   : > { %v1443_v9 = vrot.slane %v1441_v28, 4  ;;  %v9590_v8 = vrot.slane %v1457_v45, 5  ;;  %v9597_v19 = vor.u32 %v2547_v10, %v1207_v58  ;;  %v942_v6 = vand.u32 15, %v910_v40 }
  0xbb   : > { %12843 = vst [vmem:[#allocation19_spill] sm:$0xff] %v9581_v62  ;;  %12844 = vst [vmem:[#allocation20_spill] sm:$0xff] %v9583_v22  ;;  %v1463_v7 = vrot.slane %v1461_v48, 4  ;;  %v1477_v56 = vshll.u32 %v1190_v14, 16  ;;  %v1481_v3 = vshrl.u32 %v1190_v14, 16  ;;  %v2559_v29 = vsel %vm9577_vm4, %v9563_v52, %v2558_v4 }
  0xbc   : > { %12845 = vst [vmem:[#allocation21_spill] sm:$0xff] %v9585_v5  ;;  %12846 = vst [vmem:[#allocation22_spill] sm:$0xff] %v9590_v8  ;;  %v912_v10 = vadd.s32 56, %v9266_v43  ;;  %v1424_v40 = vor.u32 %v1423_v46, %v9583_v22  ;;  %v1192_v48 = vsel %vm1160_vm6, 65537, %v12560_v0  ;;  %v2512_v4 = vsel %vm2480_vm5, 65537, %v12560_v0 }
  0xbd   : > { %12847 = vst [vmem:[#allocation23_spill] sm:$0xff] %v9597_v19  ;;  %v2381_v14 = vld [vmem:[#allocation2 + $0xc] sm:$0xf]  ;;  %vm12597_vm7 = vcmp.ne.s16.totalorder %v9597_v19, 0  ;;  %vm9628_vm8 = vcmp.ne.s16.totalorder %v2559_v29, 0  ;;  %v12848_v58 = vmov 0  ;;  %v1444_v54 = vor.u32 %v1443_v9, %v9585_v5 }
  0xbe   : > { %v12849_v58 = vsel %vm9628_vm8, 4294967295, %v12848_v58  ;;  %vm9632_vm9 = vcmp.ne.s32.totalorder %v942_v6, 15  ;;  %v914_v46 = vadd.s32 72, %v9266_v43  ;;  %v1464_v28 = vor.u32 %v1463_v7, %v9590_v8 }
  0xbf   : > { %12850 = vst [vmem:[#allocation24_spill] sm:$0xff] %v12849_v58  ;;  %v9639_v47 = vrot.slane %v1477_v56, 5  ;;  %v1483_v37 = vrot.slane %v1481_v3, 4  ;;  %v2571_v26 = vshrl.u32 %v2512_v4, 16  ;;  %v944_v12 = vand.u32 15, %v912_v10  ;;  %vm2482_vm10 = vmpackc.low %vm9632_vm9, %vm9632_vm9 }
  0xc0   : > { %v1497_v59 = vshll.u32 %v1192_v48, 16  ;;  %v2864_v9 = vsel %vm12597_vm7, %v2380_v51, 0  ;;  %v2865_v7 = vsel %vm9628_vm8, %v2381_v14, 0  ;;  %v916_v56 = vadd.s32 88, %v9266_v43 }
  0xc1   : > { %12853 = vst [vmem:[#allocation25_spill] sm:$0xff] %v9639_v47  ;;  %v9657_v3 = vrot.slane %v1424_v40, 4  ;;  %v1501_v29 = vshrl.u32 %v1192_v48, 16  ;;  %v946_v63 = vand.u32 15, %v914_v46  ;;  %v918_v6 = vadd.s32 104, %v9266_v43 }
  0xc2   : > { %v9660_v10 = vrot.slane %v1444_v54, 4  ;;  %v9662_v61 = vrot.slane %v1464_v28, 4  ;;  %v1484_v51 = vor.u32 %v1483_v37, %v9639_v47  ;;  %v920_v14 = vadd.s32 120, %v9266_v43 }
  0xc3   : > { %12854 = vst [vmem:[#allocation26_spill] sm:$0xff] %v9657_v3  ;;  %v7192_v11 = vcombine.low %v2864_v9, %v2865_v7  ;;  %v2514_v45 = vsel %vm2482_vm10, 65537, %v12560_v0  ;;  %vm9667_vm11 = vcmp.ne.s32.totalorder %v944_v12, 15  ;;  %v922_v40 = vadd.s32 136, %v9266_v43 }
  0xc4   : > { %12855 = vst [vmem:[#allocation27_spill] sm:$0xff] %v9660_v10  ;;  %12856 = vst [vmem:[#allocation28_spill] sm:$0xff] %v9662_v61  ;;  %v9672_v48 = vrot.slane %v1497_v59, 5  ;;  %v2573_v46 = vrot.slane %v2571_v26, 7  ;;  %v2574_v54 = vshll.u32 %v2512_v4, 16  ;;  %v948_v58 = vand.u32 15, %v916_v56 }
  0xc5   : > { %v1503_v28 = vrot.slane %v1501_v29, 4  ;;  %vm9674_vm13 = vcmp.ne.s32.totalorder %v946_v63, 15  ;;  %v950_v37 = vand.u32 15, %v918_v6  ;;  %v924_v9 = vadd.s32 152, %v9266_v43  ;;  %vm2484_vm0 = vmpackc.low %vm9667_vm11, %vm9667_vm11 }
  0xc6   : > { %12859 = vst [vmem:[#allocation29_spill] sm:$0xff] %v9672_v48  ;;  %v2589_v26 = vshrl.u32 %v2514_v45, 16  ;;  %v952_v63 = vand.u32 15, %v920_v14  ;;  %v9694_v29 = vrot.slane %v1484_v51, 4  ;;  %v3000_v6 = vshll.u32 %v7192_v11, 16  ;;  %vm2486_vm1 = vmpackc.low %vm9674_vm13, %vm9674_vm13 }
  0xc7   : > { %v954_v7 = vand.u32 15, %v922_v40  ;;  %v2560_v59 = vrot.slane %v9544_v21, 4  ;;  %v9701_v49 = vor.u32 %v2574_v54, %v2573_v46  ;;  %vm9706_vm2 = vcmp.ne.s32.totalorder %v948_v58, 15 }
  0xc8   : > { %12862 = vst [vmem:[#allocation30_spill] sm:$0xff] %v9694_v29  ;;  %v1504_v51 = vor.u32 %v1503_v28, %v9672_v48  ;;  %v2516_v40 = vsel %vm2484_vm0, 65537, %v12560_v0  ;;  %vm9712_vm5 = vcmp.ne.s32.totalorder %v950_v37, 15  ;;  %v956_v56 = vand.u32 15, %v924_v9  ;;  %vm2488_vm9 = vmpackc.low %vm9706_vm2, %vm9706_vm2 }
  0xc9   : > { %12863 = vst [vmem:[#allocation31_spill] sm:$0xff] %v9701_v49  ;;  %v2578_v21 = vrot.slane %v2573_v46, 4  ;;  %v2591_v54 = vrot.slane %v2589_v26, 7  ;;  %v2592_v12 = vshll.u32 %v2514_v45, 16  ;;  %vm9716_vm6 = vcmp.ne.s32.totalorder %v952_v63, 15  ;;  %vm2490_vm11 = vmpackc.low %vm9712_vm5, %vm9712_vm5 }
  0xca   : > { %v2998_v58 = vshrl.u32 %v7192_v11, 16  ;;  %v3002_v61 = vrot.slane %v3000_v6, 1  ;;  %v2518_v8 = vsel %vm2486_vm1, 65537, %v12560_v0  ;;  %vm9724_vm10 = vcmp.ne.s32.totalorder %v954_v7, 15  ;;  %vm2492_vm13 = vmpackc.low %vm9716_vm6, %vm9716_vm6 }
  0xcb   : > { %v9739_v46 = vsel %vm9577_vm4, %v2560_v59, %v9597_v19  ;;  %v2607_v37 = vshrl.u32 %v2516_v40, 16  ;;  %v9748_v26 = vrot.slane %v1504_v51, 4  ;;  %vm9753_vm0 = vcmp.ne.s32.totalorder %v956_v56, 15  ;;  %vm2494_vm1 = vmpackc.low %vm9724_vm10, %vm9724_vm10 }
  0xcc   : > { %12872 = vst [vmem:[#allocation32_spill] sm:$0xff] %v9739_v46  ;;  %v926_v59 = vadd.s32 168, %v9266_v43  ;;  %v9762_v6 = vor.u32 %v2592_v12, %v2591_v54  ;;  %v2625_v7 = vshrl.u32 %v2518_v8, 16  ;;  %v2520_v14 = vsel %vm2488_vm9, 65537, %v12560_v0  ;;  %vm2496_vm2 = vmpackc.low %vm9753_vm0, %vm9753_vm0 }
  0xcd   : > { %12873 = vst [vmem:[#allocation33_spill] sm:$0xff] %v9748_v26  ;;  %v9768_v56 = vor.u32 %v3002_v61, %v2998_v58  ;;  %v9773_v51 = vsel %vm9577_vm4, %v2578_v21, %v9597_v19  ;;  %v2522_v5 = vsel %vm2490_vm11, 65537, %v12560_v0  ;;  %v928_v4 = vadd.s32 184, %v9266_v43  ;;  %v3386_v21 = vld [vmem:[#allocation2 + $0xc] sm:$0x8] }
  0xce   : > { %12876 = vst [vmem:[#allocation34_spill] sm:$0xff] %v9762_v6  ;;  %12878 = vst [vmem:[#allocation36_spill] sm:$0xff] %v9773_v51  ;;  %v2596_v12 = vrot.slane %v2591_v54, 4  ;;  %v2609_v9 = vrot.slane %v2607_v37, 7  ;;  %v2610_v11 = vshll.u32 %v2516_v40, 16  ;;  %v2524_v45 = vsel %vm2492_vm13, 65537, %v12560_v0 }
  0xcf   : > { %12877 = vst [vmem:[#allocation35_spill] sm:$0xff] %v9768_v56  ;;  %v2643_v58 = vshrl.u32 %v2520_v14, 16  ;;  %v2526_v28 = vsel %vm2494_vm1, 65537, %v12560_v0  ;;  %v958_v56 = vand.u32 15, %v926_v59  ;;  %v2627_v54 = vrot.slane %v2625_v7, 7 }
  0xd0   : > { %v2628_v37 = vshll.u32 %v2518_v8, 16  ;;  %v2661_v63 = vshrl.u32 %v2522_v5, 16  ;;  %v2679_v51 = vshrl.u32 %v2524_v45, 16  ;;  %v2528_v49 = vsel %vm2496_vm2, 65537, %v12560_v0 }
  0xd1   : > { %v960_v46 = vand.u32 15, %v928_v4  ;;  %v930_v48 = vadd.s32 200, %v9266_v43  ;;  %v9795_v61 = vsel %vm9577_vm4, %v2596_v12, %v9597_v19  ;;  %v9797_v59 = vor.u32 %v2610_v11, %v2609_v9 }
  0xd2   : > { %12879 = vst [vmem:[#allocation37_spill] sm:$0xff] %v9795_v61  ;;  %v9801_v26 = vsel %vm12596_vm14, %v3386_v21, 0  ;;  %v2697_v7 = vshrl.u32 %v2526_v28, 16  ;;  %v2614_v8 = vrot.slane %v2609_v9, 4  ;;  %v2645_v40 = vrot.slane %v2643_v58, 7 }
  0xd3   : > { %12880 = vst [vmem:[#allocation38_spill] sm:$0xff] %v9797_v59  ;;  %12881 = vst [vmem:[#allocation39_spill] sm:$0xff] %v9801_v26  ;;  %v2646_v6 = vshll.u32 %v2520_v14, 16  ;;  %vm9803_vm5 = vcmp.ne.s32.totalorder %v958_v56, 15  ;;  %v9807_v4 = vor.u32 %v2628_v37, %v2627_v54  ;;  %v2663_v29 = vrot.slane %v2661_v63, 7 }
  0xd4   : > { %v2664_v47 = vshll.u32 %v2522_v5, 16  ;;  %v2715_v12 = vshrl.u32 %v2528_v49, 16  ;;  %v2681_v61 = vrot.slane %v2679_v51, 7  ;;  %v2682_v11 = vshll.u32 %v2524_v45, 16  ;;  %vm2498_vm9 = vmpackc.low %vm9803_vm5, %vm9803_vm5 }
  0xd5   : > { %12884 = vst [vmem:[#allocation40_spill] sm:$0xff] %v9807_v4  ;;  %vm9809_vm6 = vcmp.ne.s32.totalorder %v960_v46, 15  ;;  %v962_v21 = vand.u32 15, %v930_v48  ;;  %v2632_v60 = vrot.slane %v2627_v54, 4  ;;  %v2699_v9 = vrot.slane %v2697_v7, 7 }
  0xd6   : > { %v2700_v58 = vshll.u32 %v2526_v28, 16  ;;  %v932_v14 = vadd.s32 216, %v9266_v43  ;;  %v9824_v45 = vsel %vm9577_vm4, %v2614_v8, %v9597_v19  ;;  %v9826_v48 = vor.u32 %v2646_v6, %v2645_v40  ;;  %vm2500_vm10 = vmpackc.low %vm9809_vm6, %vm9809_vm6 }
  0xd7   : > { %12887 = vst [vmem:[#allocation41_spill] sm:$0xff] %v9824_v45  ;;  %v2650_v46 = vrot.slane %v2645_v40, 4  ;;  %v9828_v51 = vor.u32 %v2664_v47, %v2663_v29  ;;  %v2668_v0 = vrot.slane %v2663_v29, 4  ;;  %v9830_v5 = vrot.slane %v2715_v12, 7 }
  0xd8   : > { %12888 = vst [vmem:[#allocation42_spill] sm:$0xff] %v9826_v48  ;;  %v2718_v28 = vshll.u32 %v2528_v49, 16  ;;  %v9835_v54 = vor.u32 %v2682_v11, %v2681_v61  ;;  %v2686_v37 = vrot.slane %v2681_v61, 4  ;;  %v12891_v63 = vmov 0   ;;  %v9858_v61 = vld [vmem:[%s12537_s2] ss:$0 sm:$0xff] }
  0xd9   : > { %12889 = vst [vmem:[#allocation43_spill] sm:$0xff] %v9828_v51  ;;  %v9838_v7 = vsel %vm2498_vm9, 65537, %v12891_v63  ;;  %vm9840_vm11 = vcmp.ne.s32.totalorder %v962_v21, 15  ;;  %v9851_v10 = vsel %vm9577_vm4, %v2632_v60, %v9597_v19  ;;  %v9853_v29 = vor.u32 %v2700_v58, %v2699_v9 }
  0xda   : > { %12890 = vst [vmem:[#allocation44_spill] sm:$0xff] %v9835_v54  ;;  %12894 = vst [vmem:[#allocation45_spill] sm:$0xff] %v9851_v10  ;;  %v964_v49 = vand.u32 15, %v932_v14  ;;  %v9867_v8 = vsel %vm9577_vm4, %v2650_v46, %v9597_v19  ;;  %v2704_v60 = vrot.slane %v2699_v9, 4  ;;  %v9870_v12 = vsel %vm2500_vm10, 65537, %v12891_v63 }
  0xdb   : > { %12895 = vst [vmem:[#allocation46_spill] sm:$0xff] %v9853_v29  ;;  %12896 = vst [vmem:[#allocation47_spill] sm:$0xff] %v9867_v8  ;;  %v9877_v14 = vor.u32 %v2718_v28, %v9830_v5  ;;  %v2733_v40 = vshrl.u32 %v9838_v7, 16  ;;  %v934_v9 = vadd.s32 232, %v9266_v43  ;;  %v9888_v47 = vsel %vm9577_vm4, %v2668_v0, %v9597_v19 }
  0xdc   : > { %vm2502_vm13 = vmpackc.low %vm9840_vm11, %vm9840_vm11  ;;  %12898 = vst [vmem:[#allocation49_spill] sm:$0xff] %v9888_v47  ;;  %v9897_v6 = vsel %vm9577_vm4, %v2686_v37, %v9597_v19  ;;  %vm9905_vm0 = vcmp.ne.s32.totalorder %v964_v49, 15  ;;  %v9912_v37 = vsel %vm9577_vm4, %v2704_v60, %v9597_v19  ;;  %v2736_v28 = vshll.u32 %v9838_v7, 16 }
  0xdd   : > { %12897 = vst [vmem:[#allocation48_spill] sm:$0xff] %v9877_v14  ;;  %12899 = vst [vmem:[#allocation50_spill] sm:$0xff] %v9897_v6  ;;  %v9917_v6 = vsel %vm2502_vm13, 65537, %v12891_v63  ;;  %v9924_v51 = vrot.slane %v2733_v40, 7  ;;  %v966_v60 = vand.u32 15, %v934_v9  ;;  %v2754_v40 = vshll.u32 %v9870_v12, 16 }
  0xde   : > { %12902 = vst [vmem:[#allocation51_spill] sm:$0xff] %v9912_v37  ;;  %vm2504_vm1 = vmpackc.low %vm9905_vm0, %vm9905_vm0  ;;  %v2769_v9 = vshrl.u32 %v9917_v6, 16  ;;  %v2772_v62 = vshll.u32 %v9917_v6, 16  ;;  %vm12969_vm8 = vsmask.f32 4352 }
  0xdf   : > { %v9939_v45 = vsel %vm2504_vm1, 65537, %v12891_v63  ;;  %vm9941_vm2 = vcmp.ne.s32.totalorder %v966_v60, 15 }
  0xe0   : > { %vm2506_vm5 = vmpackc.low %vm9941_vm2, %vm9941_vm2  ;;  %vm12598_vm2 = vsmask.f32 4352 }
 0x14a   : > { %v8030_v11 = vpop.f32.mrf.mxu0  ;;  %v8046_v21 = vpop.f32.mrf.mxu1 }
 0x14b   : > { %v650_v46 = vadd.f32 %v8046_v21, %v9858_v61  ;;  %v586_v58 = vadd.f32 %v8030_v11, %v9858_v61  ;;  %v2751_v21 = vshrl.u32 %v9870_v12, 16  ;;  %v2722_v11 = vrot.slane %v9830_v5, 4 }
 0x14c   : > { %v577_v56 = vpop.f32.mrf.mxu0  ;;  %v641_v26 = vpop.f32.mrf.mxu1  ;;  %v936_v12 = vadd.s32 248, %v9266_v43 }
 0x14d   : > { %v642_v0 = vadd.f32 %v9858_v61, %v641_v26  ;;  %v578_v37 = vadd.f32 %v9858_v61, %v577_v56  ;;  %v722_v7 = vmax.f32 %v650_v46, 0.0  ;;  %v706_v26 = vmax.f32 %v586_v58, 0.0 }
 0x14e   : > { %v8031_v54 = vpop.f32.mrf.mxu0  ;;  %v8047_v29 = vpop.f32.mrf.mxu1  ;;  %v9932_v4 = vrot.slane %v2751_v21, 7  ;;  %v9956_v43 = vsel %vm9577_vm4, %v2722_v11, %v9597_v19 }
 0x14f   : > { %v589_v5 = vadd.f32 %v8031_v54, %v9858_v61  ;;  %v653_v8 = vadd.f32 %v8047_v29, %v9858_v61  ;;  %v720_v14 = vmax.f32 %v642_v0, 0.0  ;;  %v704_v21 = vmax.f32 %v578_v37, 0.0  ;;  %12905 = vst [vmem:[#allocation52_spill] sm:$0xff] %v9956_v43 }
 0x150   : > { %v580_v48 = vpop.f32.mrf.mxu0  ;;  %v644_v10 = vpop.f32.mrf.mxu1  ;;  %v9949_v0 = vrot.slane %v2769_v9, 7  ;;  %v9959_v37 = vor.u32 %v2736_v28, %v9924_v51  ;;  %v2787_v28 = vshrl.u32 %v9939_v45, 16 }
 0x151   : > { %v707_v49 = vmax.f32 %v589_v5, 0.0  ;;  %v581_v56 = vadd.f32 %v9858_v61, %v580_v48  ;;  %v723_v54 = vmax.f32 %v653_v8, 0.0  ;;  %v645_v46 = vadd.f32 %v9858_v61, %v644_v10 }
 0x152   : > { %v8034_v29 = vpop.f32.mrf.mxu0  ;;  %v8050_v47 = vpop.f32.mrf.mxu1  ;;  %12906 = vst [vmem:[#allocation53_spill] sm:$0xff] %v9959_v37 }
 0x153   : > { %v7486_v59 = vpack.c.bf16 %v707_v49, %v706_v26  ;;  %v705_v5 = vmax.f32 %v581_v56, 0.0  ;;  %v7526_v3 = vpack.c.bf16 %v723_v54, %v722_v7  ;;  %v721_v8 = vmax.f32 %v645_v46, 0.0 }
 0x154   : > { %v593_v48 = vpop.f32.mrf.mxu0  ;;  %v666_v10 = vadd.f32 %v8050_v47, %v9858_v61  ;;  %v9947_v22 = vpop.f32.mrf.mxu1  ;;  %v602_v2 = vadd.f32 %v8034_v29, %v9858_v61  ;;  %v2740_v7 = vrot.slane %v9924_v51, 4  ;;  %v968_v26 = vand.u32 15, %v936_v12 }
 0x155   : > { %7703 = vst [vmem:[#allocation2 + $0x18] sm:$0xff] %v7486_v59   ;;  %v7481_v60 = vpack.c.bf16 %v705_v5, %v704_v21  ;;  %7711 = vst [vmem:[#allocation2 + $0x58] sm:$0xff] %v7526_v3   ;;  %v12907_v59 = vsel %vm9299_vm12, %v9327_v34, %v9287_v1  ;;  %v12908_v3 = vmov 0  ;;  %v7521_v6 = vpack.c.bf16 %v721_v8, %v720_v14 }
 0x156   : > { %v8035_v49 = vpop.f32.mrf.mxu0  ;;  %vm9969_vm6 = vcmp.ne.s16.totalorder %v12907_v59, 0  ;;  %v8051_v11 = vpop.f32.mrf.mxu1  ;;  %v594_v9 = vadd.f32 %v9858_v61, %v593_v48  ;;  %v12911_v34 = vsel %vm9299_vm12, %v9362_v53, %v9287_v1  ;;  %v726_v14 = vmax.f32 %v666_v10, 0.0 }
 0x157   : > { %v12909_v3 = vsel %vm9969_vm6, 4294967295, %v12908_v3  ;;  %7702 = vst [vmem:[#allocation2 + $0x10] sm:$0xff] %v7481_v60   ;;  %v605_v56 = vadd.f32 %v8035_v49, %v9858_v61  ;;  %vm9982_vm9 = vcmp.ne.s16.totalorder %v12911_v34, 0  ;;  %v669_v51 = vadd.f32 %v8051_v11, %v9858_v61  ;;  %7710 = vst [vmem:[#allocation2 + $0x50] sm:$0xff] %v7521_v6  }
 0x158   : > { %12910 = vst [vmem:[#allocation54_spill] sm:$0xff] %v12909_v3  ;;  %v596_v46 = vpop.f32.mrf.mxu0  ;;  %v12914_v29 = vsel %vm9299_vm12, %v9308_v23, %v9310_v24  ;;  %v9996_v12 = vpop.f32.mrf.mxu1  ;;  %v9999_v53 = vor.u32 %v2754_v40, %v9932_v4  ;;  %v2758_v21 = vrot.slane %v9932_v4, 4  ;;  %v10003_v5 = vor.u32 %v2772_v62, %v9949_v0 }
 0x159   : > { %vm9992_vm10 = vcmp.ne.s16.totalorder %v12914_v29, 0  ;;  %v10011_v24 = vsel %vm2506_vm5, 65537, %v12891_v63  ;;  %v710_v48 = vmax.f32 %v602_v2, 0.0  ;;  %v711_v8 = vmax.f32 %v605_v56, 0.0 }
 0x15a   : > { %12917 = vst [vmem:[#allocation55_spill] sm:$0xff] %v9999_v53  ;;  %12918 = vst [vmem:[#allocation56_spill] sm:$0xff] %v10003_v5  ;;  %v597_v10 = vadd.f32 %v9858_v61, %v596_v46  ;;  %v727_v60 = vmax.f32 %v669_v51, 0.0  ;;  %v8038_v40 = vpop.f32.mrf.mxu0  ;;  %v2776_v49 = vrot.slane %v9949_v0, 4  ;;  %v2789_v4 = vrot.slane %v2787_v28, 7  ;;  %v10020_v29 = vpop.f32.mrf.mxu1  ;;  %v8791_v5 = vld [vmem:[#allocation8 + $0xb8] sm:$0xff]  }
 0x15b   : > { %v2790_v62 = vshll.u32 %v9939_v45, 16  ;;  %vm10016_vm11 = vcmp.ne.s32.totalorder %v968_v26, 15  ;;  %v708_v6 = vmax.f32 %v594_v9, 0.0  ;;  %v7496_v58 = vpack.c.bf16 %v711_v8, %v710_v48 }
 0x15c   : > { %v709_v11 = vmax.f32 %v597_v10, 0.0  ;;  %v7536_v34 = vpack.c.bf16 %v727_v60, %v726_v14  ;;  %v609_v2 = vpop.f32.mrf.mxu0  ;;  %v10029_v45 = vsel %vm9577_vm4, %v2740_v7, %v9597_v19  ;;  %v2805_v28 = vshrl.u32 %v10011_v24, 16  ;;  %v1038_v14 = vld [vmem:[#allocation2 + $0x18] sm:$0xf]  ;;  %v10037_v51 = vld [vmem:[#allocation2 + $0x1c] sm:$0xf]  ;;  %vm2508_vm13 = vmpackc.low %vm10016_vm11, %vm10016_vm11 }
 0x15d   : > { %12921 = vst [vmem:[#allocation57_spill] sm:$0xff] %v10029_v45  ;;  %7705 = vst [vmem:[#allocation2 + $0x28] sm:$0xff] %v7496_v58   ;;  %v618_v9 = vadd.f32 %v8038_v40, %v9858_v61  ;;  %v10042_v7 = vsel %vm9577_vm4, %v2758_v21, %v9597_v19  ;;  %v10054_v60 = vsel %vm9577_vm4, %v2776_v49, %v9597_v19  ;;  %v2794_v21 = vrot.slane %v2789_v4, 4 }
 0x15e   : > { %v7491_v26 = vpack.c.bf16 %v709_v11, %v708_v6  ;;  %7713 = vst [vmem:[#allocation2 + $0x68] sm:$0xff] %v7536_v34   ;;  %12922 = vst [vmem:[#allocation58_spill] sm:$0xff] %v10042_v7  ;;  %v8039_v48 = vpop.f32.mrf.mxu0  ;;  %v1036_v8 = vld [vmem:[#allocation2 + $0x10] sm:$0xf]  ;;  %v1037_v10 = vld [vmem:[#allocation2 + $0x14] sm:$0xf]  ;;  %v10056_v40 = vor.u32 %v2790_v62, %v2789_v4  ;;  %v610_v58 = vadd.f32 %v9858_v61, %v609_v2 }
 0x15f   : > { %12923 = vst [vmem:[#allocation59_spill] sm:$0xff] %v10054_v60  ;;  %v2808_v6 = vshll.u32 %v10011_v24, 16  ;;  %v621_v11 = vadd.f32 %v8039_v48, %v9858_v61  ;;  %v1552_v34 = vsel %vm9969_vm6, %v1036_v8, 0  ;;  %v7144_v46 = vcombine.low %v1036_v8, %v1037_v10  ;;  %v8683_v4 = vld [vmem:[#allocation8 + $0xb0] sm:$0xff]   ;;  %v10072_v24 = vpop.f32.mrf.mxu1 }
 0x160   : > { %12924 = vst [vmem:[#allocation60_spill] sm:$0xff] %v10056_v40  ;;  %7704 = vst [vmem:[#allocation2 + $0x20] sm:$0xff] %v7491_v26   ;;  %v12925_v49 = vsel %vm9299_vm12, %v9308_v23, %v9321_v32  ;;  %v12926_v62 = vmov 0  ;;  %v612_v26 = vpop.f32.mrf.mxu0  ;;  %v7145_v2 = vcombine.low %v1038_v14, %v10037_v51  ;;  %v10077_v48 = vadd.f32 %v9858_v61, %v9947_v22 }
 0x161   : > { %vm10068_vm0 = vcmp.ne.s16.totalorder %v12925_v49, 0  ;;  %v10079_v8 = vrot.slane %v2805_v28, 7  ;;  %v10087_v32 = vsel %vm2508_vm13, 65537, %v12891_v63  ;;  %v714_v49 = vmax.f32 %v618_v9, 0.0  ;;  %8077 = vmatmul.mubr.bf16.vlgmr.msra.gmra.mxu1 %v7144_v46 }
 0x162   : > { %v12927_v62 = vsel %vm10068_vm0, 4294967295, %v12926_v62  ;;  %12929 = vst [vmem:[#allocation62_spill] sm:$0xff] %v10087_v32  ;;  %v715_v0 = vmax.f32 %v621_v11, 0.0  ;;  %v613_v56 = vadd.f32 %v9858_v61, %v612_v26  ;;  %v1553_v60 = vsel %vm9992_vm10, %v1037_v10, 0  ;;  %8157 = vmatpush3.bf16.msra.mxu1 %v8791_v5  ;;  %v8042_v59 = vpop.f32.mrf.mxu0  ;;  %8080 = vmatprep.mubr.bf16.mxu1 %v7145_v2  ;;  %v3390_v5 = vld [vmem:[#allocation2 + $0x1c] sm:$0xf]  ;;  %v10111_v26 = vpop.f32.mrf.mxu1 }
 0x163   : > { %12928 = vst [vmem:[#allocation61_spill] sm:$0xff] %v12927_v62  ;;  %v12930_v22 = vsel %vm9354_vm3, %v9262_v41, 0  ;;  %v1554_v63 = vsel %vm9982_vm9, %v1038_v14, 0  ;;  %v10107_v46 = vsel %vm9577_vm4, %v2794_v21, %v9597_v19  ;;  %v712_v41 = vmax.f32 %v610_v58, 0.0  ;;  %8158 = vmatprep.subr.bf16.mxu1 %v8683_v4  ;;  %v8686_v14 = vld [vmem:[#allocation8 + $0xa8] sm:$0xff]  }
 0x164   : > { %v10096_v28 = vcombine.low %v12930_v22, %v1552_v34  ;;  %12931 = vst [vmem:[#allocation63_spill] sm:$0xff] %v10107_v46  ;;  %v7506_v10 = vpack.c.bf16 %v715_v0, %v714_v49  ;;  %v713_v11 = vmax.f32 %v613_v56, 0.0  ;;  %v10109_v34 = vcombine.low %v1553_v60, %v1554_v63  ;;  %v625_v2 = vpop.f32.mrf.mxu0  ;;  %v10126_v49 = vld [vmem:[#allocation2 + $0x10] sm:$0xf]  ;;  %v10128_v63 = vld [vmem:[#allocation2 + $0x14] sm:$0xf]  ;;  %v676_v40 = vpop.f32.mrf.mxu1 }
 0x165   : > { %v12932_v9 = vsel %vm9299_vm12, %v9364_v55, %v9287_v1  ;;  %v12933_v21 = vmov 0  ;;  %v634_v22 = vadd.f32 %v8042_v59, %v9858_v61  ;;  %v4872_v46 = vld [vmem:[#allocation2 + $0x28] sm:$0xf]  ;;  %v10133_v55 = vadd.f32 %v9858_v61, %v9996_v12 }
 0x166   : > { %vm10119_vm1 = vcmp.ne.s16.totalorder %v12932_v9, 0  ;;  %7707 = vst [vmem:[#allocation2 + $0x38] sm:$0xff] %v7506_v10   ;;  %v7501_v58 = vpack.c.bf16 %v713_v11, %v712_v41  ;;  %v10136_v9 = vor.u32 %v2808_v6, %v10079_v8  ;;  %v3423_v10 = vsel %vm9992_vm10, %v3390_v5, 0  ;;  %v8043_v41 = vpop.f32.mrf.mxu0  ;;  %8159 = vmatpush3.bf16.msra.mxu1 %v8683_v4 }
 0x167   : > { %v12934_v21 = vsel %vm10119_vm1, 4294967295, %v12933_v21  ;;  %v3391_v0 = vld [vmem:[#allocation2 + $0x20] sm:$0xf]  ;;  %v12935_v11 = vsel %vm9299_vm12, %v9308_v23, %v9399_v13  ;;  %v12936_v59 = vmov 0  ;;  %v2012_v12 = vshrl.u32 %v10096_v28, 16  ;;  %8160 = vmatprep.subr.bf16.mxu1 %v8686_v14 }
 0x168   : > { %vm10145_vm5 = vcmp.ne.s16.totalorder %v12935_v11, 0  ;;  %v2015_v60 = vshll.u32 %v10096_v28, 16  ;;  %v12938_v6 = vsel %vm9299_vm12, %v9447_v57, %v9287_v1  ;;  %v12939_v5 = vmov 0  ;;  %v8689_v11 = vld [vmem:[#allocation8 + $0xa0] sm:$0xff]   ;;  %7706 = vst [vmem:[#allocation2 + $0x30] sm:$0xff] %v7501_v58   ;;  %v628_v45 = vpop.f32.mrf.mxu0 }
 0x169   : > { %v12937_v59 = vsel %vm10145_vm5, 4294967295, %v12936_v59  ;;  %vm10156_vm11 = vcmp.ne.s16.totalorder %v12938_v6, 0  ;;  %v10162_v13 = vadd.f32 %v10020_v29, %v9858_v61  ;;  %v2021_v56 = vshrl.u32 %v10109_v34, 16  ;;  %v4871_v28 = vld [vmem:[#allocation2 + $0x24] sm:$0xf] }
 0x16a   : > { %v12940_v5 = vsel %vm10156_vm11, 4294967295, %v12939_v5  ;;  %v3424_v4 = vsel %vm9982_vm9, %v3391_v0, 0  ;;  %v626_v32 = vadd.f32 %v9858_v61, %v625_v2  ;;  %v637_v57 = vadd.f32 %v8043_v41, %v9858_v61  ;;  %v1040_v6 = vld [vmem:[#allocation2 + $0x20] sm:$0xf]  ;;  %v10176_v0 = vld [vmem:[#allocation2 + $0x24] sm:$0xf]  ;;  %8161 = vmatpush3.bf16.msra.mxu1 %v8686_v14 }
 0x16b   : > { %v2024_v7 = vshll.u32 %v10109_v34, 16  ;;  %v10170_v53 = vcombine.low %v3423_v10, %v3424_v4  ;;  %v4904_v29 = vsel %vm9992_vm10, %v4871_v28, 0  ;;  %v4905_v58 = vsel %vm9982_vm9, %v4872_v46, 0  ;;  %v8692_v10 = vld [vmem:[#allocation8 + $0x98] sm:$0xff]   ;;  %v8058_v46 = vpop.f32.mrf.mxu1  ;;  %8162 = vmatprep.subr.bf16.mxu1 %v8689_v11 }
 0x16c   : > { %v718_v37 = vmax.f32 %v634_v22, 0.0  ;;  %v10178_v2 = vcombine.low %v4904_v29, %v4905_v58  ;;  %v719_v41 = vmax.f32 %v637_v57, 0.0  ;;  %v629_v43 = vadd.f32 %v9858_v61, %v628_v45  ;;  %v10199_v22 = vld [vmem:[#allocation2 + $0x24] sm:$0xf]  ;;  %v10202_v29 = vld [vmem:[#allocation2 + $0x28] sm:$0xf] }
 0x16d   : > { %12941 = vst [vmem:[#allocation64_spill] sm:$0xff] %v10170_v53  ;;  %v12943_v34 = vsel %vm9299_vm12, %v9308_v23, %v9435_v44  ;;  %v12944_v47 = vmov 0  ;;  %v1555_v45 = vsel %vm10068_vm0, %v10037_v51, 0  ;;  %v7146_v44 = vcombine.low %v1040_v6, %v10176_v0  ;;  %v10204_v58 = vld [vmem:[#allocation2 + $0x2c] sm:$0xf] }
 0x16e   : > { %12942 = vst [vmem:[#allocation65_spill] sm:$0xff] %v10178_v2  ;;  %vm10186_vm13 = vcmp.ne.s16.totalorder %v12943_v34, 0  ;;  %v716_v4 = vmax.f32 %v626_v32, 0.0  ;;  %v7516_v28 = vpack.c.bf16 %v719_v41, %v718_v37  ;;  %v717_v57 = vmax.f32 %v629_v43, 0.0  ;;  %v4876_v14 = vld [vmem:[#allocation2 + $0x38] sm:$0xf]  ;;  %8163 = vmatpush3.bf16.msra.mxu1 %v8689_v11 }
 0x16f   : > { %v12945_v47 = vsel %vm10186_vm13, 4294967295, %v12944_v47  ;;  %v10208_v34 = vadd.f32 %v9858_v61, %v10072_v24  ;;  %8081 = vmatmul.mubr.bf16.gmra.mxu1 %v7146_v44  ;;  %v2014_v51 = vrot.slane %v2012_v12, 3  ;;  %v2017_v54 = vrot.slane %v2015_v60, 4  ;;  %v10235_v44 = vld [vmem:[#allocation2 + $0x2c] sm:$0xf]  ;;  %8164 = vmatprep.subr.bf16.mxu1 %v8692_v10 }
 0x170   : > { %12946 = vst [vmem:[#allocation66_spill] sm:$0xff] %v12945_v47  ;;  %v725_v53 = vmax.f32 %v10133_v55, 0.0  ;;  %v685_v37 = vadd.f32 %v10111_v26, %v9858_v61  ;;  %v12947_v43 = vsel %vm9299_vm12, %v9475_v30, %v9287_v1  ;;  %v12948_v32 = vmov 0  ;;  %7709 = vst [vmem:[#allocation2 + $0x48] sm:$0xff] %v7516_v28   ;;  %v10224_v55 = vld [vmem:[#allocation2 + $0x28] sm:$0xf] }
 0x171   : > { %vm10218_vm9 = vcmp.ne.s16.totalorder %v12947_v43, 0  ;;  %v2023_v24 = vrot.slane %v2021_v56, 3  ;;  %v2026_v41 = vrot.slane %v2024_v7, 4  ;;  %v7511_v12 = vpack.c.bf16 %v717_v57, %v716_v4  ;;  %v4875_v56 = vld [vmem:[#allocation2 + $0x34] sm:$0xf] }
 0x172   : > { %v12949_v32 = vsel %vm10218_vm9, 4294967295, %v12948_v32  ;;  %v1556_v60 = vsel %vm10119_vm1, %v1040_v6, 0  ;;  %v12951_v26 = vsel %vm9299_vm12, %v9308_v23, %v9432_v38  ;;  %v12952_v30 = vmov 0  ;;  %8165 = vmatpush3.bf16.msra.mxu1 %v8692_v10 }
 0x173   : > { %12950 = vst [vmem:[#allocation67_spill] sm:$0xff] %v12949_v32  ;;  %vm10231_vm10 = vcmp.ne.s16.totalorder %v12951_v26, 0  ;;  %v2018_v7 = vor.u32 %v2017_v54, %v2014_v51  ;;  %v12955_v4 = vmax.f32 %v10077_v48, 0.0  ;;  %v7147_v6 = vcombine.low %v10202_v29, %v10204_v58  ;;  %7708 = vst [vmem:[#allocation2 + $0x40] sm:$0xff] %v7511_v12   ;;  %v689_v54 = vpop.f32.mrf.mxu1  ;;  %v8695_v51 = vld [vmem:[#allocation8 + $0x90] sm:$0xff]  }
 0x174   : > { %v12953_v30 = vsel %vm10231_vm10, 4294967295, %v12952_v30  ;;  %v10242_v57 = vadd.f32 %v9858_v61, %v676_v40  ;;  %v1557_v43 = vsel %vm10145_vm5, %v10176_v0, 0  ;;  %v4908_v48 = vsel %vm10145_vm5, %v4875_v56, 0  ;;  %v1044_v56 = vld [vmem:[#allocation2 + $0x30] sm:$0xf]  ;;  %8166 = vmatprep.subr.bf16.mxu1 %v8695_v51  ;;  %v13140_v3 = vld [vmem:[#allocation64_spill] sm:$0xff] }
 0x175   : > { %12954 = vst [vmem:[#allocation68_spill] sm:$0xff] %v12953_v30  ;;  %v7531_v28 = vpack.c.bf16 %v725_v53, %v12955_v4  ;;  %v4909_v53 = vsel %vm10156_vm11, %v4876_v14, 0  ;;  %v12956_v40 = vsel %vm9299_vm12, %v9477_v33, %v9287_v1  ;;  %v12957_v11 = vmov 0  ;;  %8084 = vmatprep.mubr.bf16.mxu1 %v7147_v6  ;;  %v10272_v4 = vld [vmem:[#allocation2 + $0x34] sm:$0xf] }
 0x176   : > { %vm10259_vm14 = vcmp.ne.s16.totalorder %v12956_v40, 0  ;;  %v7170_v12 = vcombine.low %v1555_v45, %v1556_v60  ;;  %v12959_v14 = vor.u32 %v9418_v27, %v9408_v20  ;;  %v10270_v33 = vcombine.low %v4908_v48, %v4909_v53  ;;  %v10308_v53 = vld [vmem:[#allocation8 + $0x88] sm:$0xff]   ;;  %8167 = vmatpush3.bf16.msra.mxu1 %v8695_v51 }
 0x177   : > { %v12958_v11 = vsel %vm10259_vm14, 4294967295, %v12957_v11  ;;  %7712 = vst [vmem:[#allocation2 + $0x60] sm:$0xff] %v7531_v28   ;;  %v10277_v60 = vor.u32 %v2026_v41, %v2023_v24  ;;  %v730_v40 = vmax.f32 %v10162_v13, 0.0  ;;  %v731_v38 = vmax.f32 %v685_v37, 0.0  ;;  %v10289_v28 = vld [vmem:[#allocation8 + $0xf0] sm:$0xff]   ;;  %8168 = vmatprep.subr.bf16.mxu1 %v10308_v53 }
 0x178   : > { %v2019_v26 = vsel %vm12598_vm2, %v12959_v14, %v2018_v7  ;;  %12960 = vst [vmem:[#allocation69_spill] sm:$0xff] %v10270_v33  ;;  %v12961_v20 = vsel %vm9299_vm12, %v9308_v23, %v9479_v35  ;;  %v12962_v27 = vmov 0  ;;  %v1558_v24 = vsel %vm10156_vm11, %v10202_v29, 0  ;;  %v10295_v41 = vld [vmem:[#allocation2 + $0x30] sm:$0xf] }
 0x179   : > { %8124 = vmatprep.mubr.bf16.mxu0 %v2019_v26  ;;  %vm10285_vm7 = vcmp.ne.s16.totalorder %v12961_v20, 0  ;;  %v728_v13 = vmax.f32 %v10208_v34, 0.0  ;;  %v7148_v37 = vcombine.low %v1044_v56, %v10272_v4  ;;  %v12965_v35 = vsel %vm9299_vm12, %v9546_v25, %v9287_v1  ;;  %v10310_v14 = vld [vmem:[#allocation2 + $0x34] sm:$0xf]  ;;  %v10314_v26 = vld [vmem:[#allocation2 + $0x38] sm:$0xf] }
 0x17a   : > { %v12963_v27 = vsel %vm10285_vm7, 4294967295, %v12962_v27  ;;  %vm10304_vm2 = vcmp.ne.s16.totalorder %v12965_v35, 0  ;;  %v12966_v48 = vmov 0  ;;  %12968 = vst [vmem:[#allocation71_spill] sm:$0xff] %v10310_v14  ;;  %v2028_v29 = vsel %vm12969_vm8, %v2018_v7, %v10277_v60  ;;  %v10316_v20 = vld [vmem:[#allocation2 + $0x3c] sm:$0xf]  ;;  %v8059_v35 = vpop.f32.mrf.mxu1  ;;  %8169 = vmatpush3.bf16.msra.mxu1 %v10308_v53 }
 0x17b   : > { %12964 = vst [vmem:[#allocation70_spill] sm:$0xff] %v12963_v27  ;;  %v12967_v48 = vsel %vm10304_vm2, 4294967295, %v12966_v48  ;;  %v7546_v34 = vpack.c.bf16 %v731_v38, %v730_v40  ;;  %v10319_v6 = vadd.f32 %v8058_v46, %v9858_v61  ;;  %v10322_v25 = vadd.f32 %v9858_v61, %v689_v54  ;;  %8125 = vmatmul.mubr.bf16.vlgmr.msra.gmra.mxu0 %v2028_v29  ;;  %v10327_v7 = vld [vmem:[#allocation2 + $0x38] sm:$0xf]  ;;  %v4880_v29 = vld [vmem:[#allocation2 + $0x48] sm:$0xf] }
 0x17c   : > { %v1559_v10 = vsel %vm10186_vm13, %v10204_v58, 0  ;;  %8085 = vmatmul.mubr.bf16.gmra.mxu1 %v7148_v37  ;;  %v2030_v38 = vshrl.u32 %v7170_v12, 16  ;;  %v2033_v40 = vshll.u32 %v7170_v12, 16  ;;  %v729_v45 = vmax.f32 %v10242_v57, 0.0  ;;  %v10344_v37 = vld [vmem:[#allocation2 + $0x3c] sm:$0xf]  ;;  %8205 = vmatpush3.bf16.msra.mxu0 %v9484_v36  ;;  %v692_v51 = vpop.f32.mrf.mxu1 }
 0x17d   : > { %v12970_v46 = vsel %vm9299_vm12, %v9308_v23, %v9460_v17  ;;  %v12971_v54 = vmov 0  ;;  %v7171_v0 = vcombine.low %v1557_v43, %v1558_v24  ;;  %7715 = vst [vmem:[#allocation2 + $0x78] sm:$0xff] %v7546_v34   ;;  %v1560_v12 = vsel %vm10218_vm9, %v1044_v56, 0  ;;  %12974 = vst [vmem:[#allocation73_spill] sm:$0xff] %v10344_v37  ;;  %v4879_v17 = vld [vmem:[#allocation2 + $0x44] sm:$0xf]  ;;  %8206 = vmatprep.subr.bf16.mxu0 %v10289_v28 }
 0x17e   : > { %vm10335_vm8 = vcmp.ne.s16.totalorder %v12970_v46, 0  ;;  %v7149_v57 = vcombine.low %v10314_v26, %v10316_v20  ;;  %v2032_v46 = vrot.slane %v2030_v38, 3  ;;  %v2035_v33 = vrot.slane %v2033_v40, 4  ;;  %v8703_v58 = vld [vmem:[#allocation8 + $0xe8] sm:$0xff]   ;;  %v1048_v36 = vld [vmem:[#allocation2 + $0x40] sm:$0xf] }
 0x17f   : > { %v12972_v54 = vsel %vm10335_vm8, 4294967295, %v12971_v54  ;;  %v7541_v43 = vpack.c.bf16 %v729_v45, %v728_v13  ;;  %v701_v24 = vadd.f32 %v8059_v35, %v9858_v61  ;;  %v12975_v34 = vsel %vm9299_vm12, %v9548_v42, %v9287_v1  ;;  %v10400_v14 = vld [vmem:[#allocation2 + $0x44] sm:$0xf]  ;;  %v10473_v27 = vld [vmem:[#allocation2 + $0x50] sm:$0xf] }
 0x180   : > { %12973 = vst [vmem:[#allocation72_spill] sm:$0xff] %v12972_v54  ;;  %vm10355_vm5 = vcmp.ne.s16.totalorder %v12975_v34, 0  ;;  %v12976_v56 = vmov 0  ;;  %v1561_v45 = vsel %vm10231_vm10, %v10272_v4, 0  ;;  %v4912_v13 = vsel %vm10231_vm10, %v4879_v17, 0  ;;  %8088 = vmatprep.mubr.bf16.mxu1 %v7149_v57  ;;  %v8705_v57 = vld [vmem:[#allocation8 + $0x80] sm:$0xff]   ;;  %8207 = vmatpush3.bf16.msra.mxu0 %v10289_v28 }
 0x181   : > { %v12977_v56 = vsel %vm10355_vm5, 4294967295, %v12976_v56  ;;  %v12979_v35 = vsel %vm9299_vm12, %v9308_v23, %v9490_v39  ;;  %v12980_v38 = vmov 0  ;;  %v12983_v4 = vsel %vm9299_vm12, %v9574_v16, %v9287_v1  ;;  %7714 = vst [vmem:[#allocation2 + $0x70] sm:$0xff] %v7541_v43   ;;  %v10419_v43 = vld [vmem:[#allocation2 + $0x44] sm:$0xf]  ;;  %8208 = vmatprep.subr.bf16.mxu0 %v8703_v58  ;;  %8170 = vmatprep.subr.bf16.mxu1 %v8705_v57  ;;  %13008 = vst [vmem:[#allocation81_spill] sm:$0xff] %v10473_v27 }
 0x182   : > { %12978 = vst [vmem:[#allocation74_spill] sm:$0xff] %v12977_v56  ;;  %vm10376_vm11 = vcmp.ne.s16.totalorder %v12979_v35, 0  ;;  %vm10385_vm13 = vcmp.ne.s16.totalorder %v12983_v4, 0  ;;  %v12984_v40 = vmov 0  ;;  %v10390_v17 = vcombine.low %v1559_v10, %v1560_v12  ;;  %v12988_v10 = vld [vmem:[#allocation18_spill] sm:$0xff]  ;;  %12995 = vst [vmem:[#allocation79_spill] sm:$0xff] %v10419_v43  ;;  %8171 = vmatpush3.bf16.msra.mxu1 %v8705_v57 }
 0x183   : > { %v12981_v38 = vsel %vm10376_vm11, 4294967295, %v12980_v38  ;;  %v12985_v40 = vsel %vm10385_vm13, 4294967295, %v12984_v40  ;;  %v2036_v34 = vor.u32 %v2035_v33, %v2032_v46  ;;  %v4913_v35 = vsel %vm10259_vm14, %v4880_v29, 0  ;;  %v8704_v29 = vld [vmem:[#allocation8 + $0xe0] sm:$0xff]   ;;  %v8707_v43 = vld [vmem:[#allocation8 + $0xd8] sm:$0xff]   ;;  %v10499_v57 = vld [vmem:[#allocation8 + $0xd0] sm:$0xff]  }
 0x184   : > { %12982 = vst [vmem:[#allocation75_spill] sm:$0xff] %v12981_v38  ;;  %12986 = vst [vmem:[#allocation76_spill] sm:$0xff] %v12985_v40  ;;  %v10397_v16 = vcombine.low %v4912_v13, %v4913_v35  ;;  %v2039_v4 = vshrl.u32 %v7171_v0, 16  ;;  %v2042_v42 = vshll.u32 %v7171_v0, 16  ;;  %v734_v2 = vmax.f32 %v10319_v6, 0.0  ;;  %8209 = vmatpush3.bf16.msra.mxu0 %v8703_v58 }
 0x185   : > { %v12989_v12 = vsel %vm9299_vm12, %v9308_v23, %v12988_v10  ;;  %v12990_v33 = vmov 0  ;;  %vm12993_vm9 = vsmask.f32 4352  ;;  %v1562_v0 = vsel %vm10259_vm14, %v10314_v26, 0  ;;  %v10417_v6 = vld [vmem:[#allocation2 + $0x40] sm:$0xf]  ;;  %8210 = vmatprep.subr.bf16.mxu0 %v8704_v29 }
 0x186   : > { %12987 = vst [vmem:[#allocation77_spill] sm:$0xff] %v10397_v16  ;;  %vm10407_vm10 = vcmp.ne.s16.totalorder %v12989_v12, 0  ;;  %v2037_v46 = vsel %vm12993_vm9, %v10277_v60, %v2036_v34  ;;  %12994 = vst [vmem:[#allocation78_spill] sm:$0xff] %v10417_v6  ;;  %v735_v13 = vmax.f32 %v701_v24, 0.0  ;;  %v4883_v35 = vld [vmem:[#allocation2 + $0x54] sm:$0xf]  ;;  %v693_v10 = vadd.f32 %v9858_v61, %v692_v51 }
 0x187   : > { %v12991_v33 = vsel %vm10407_vm10, 4294967295, %v12990_v33  ;;  %8128 = vmatprep.mubr.bf16.mxu0 %v2037_v46  ;;  %v2041_v28 = vrot.slane %v2039_v4, 3  ;;  %v2044_v12 = vrot.slane %v2042_v42, 4  ;;  %v1564_v60 = vsel %vm10304_vm2, %v1048_v36, 0  ;;  %v10426_v26 = vld [vmem:[#allocation2 + $0x48] sm:$0xf] }
 0x188   : > { %12992 = vst [vmem:[#allocation18_spill] sm:$0xff] %v12991_v33  ;;  %v7150_v39 = vcombine.low %v1048_v36, %v10400_v14  ;;  %v10428_v16 = vld [vmem:[#allocation8 + $0x138] sm:$0xff]   ;;  %v1563_v61 = vsel %vm10285_vm7, %v10316_v20, 0  ;;  %v7173_v24 = vcombine.low %v1561_v45, %v1562_v0  ;;  %v732_v53 = vmax.f32 %v10322_v25, 0.0  ;;  %v1050_v4 = vld [vmem:[#allocation2 + $0x48] sm:$0xf]  ;;  %8211 = vmatpush3.bf16.msra.mxu0 %v8704_v29 }
 0x189   : > { %v7556_v51 = vpack.c.bf16 %v735_v13, %v734_v2  ;;  %v10434_v42 = vld [vmem:[#allocation2 + $0x4c] sm:$0xf]  ;;  %v12996_v46 = vld [vmem:[#allocation19_spill] sm:$0xff]  ;;  %v12998_v37 = vmov 0  ;;  %v2045_v25 = vor.u32 %v2044_v12, %v2041_v28  ;;  %v2048_v0 = vshrl.u32 %v10390_v17, 16  ;;  %v13002_v13 = vld [vmem:[#allocation20_spill] sm:$0xff]  ;;  %8252 = vmatprep.subr.bf16.mxu1 %v10428_v16  ;;  %8212 = vmatprep.subr.bf16.mxu0 %v8707_v43 }
 0x18a   : > { %v12997_v36 = vsel %vm9299_vm12, %v12996_v46, %v9287_v1  ;;  %8089 = vmatmul.mubr.bf16.gmra.mxu1 %v7150_v39  ;;  %v10451_v45 = vld [vmem:[#allocation2 + $0x4c] sm:$0xf]  ;;  %v13003_v46 = vsel %vm9299_vm12, %v9308_v23, %v13002_v13  ;;  %v1565_v28 = vsel %vm10335_vm8, %v10400_v14, 0  ;;  %v10466_v39 = vcombine.low %v1563_v61, %v1564_v60  ;;  %v4884_v20 = vld [vmem:[#allocation2 + $0x58] sm:$0xf]  ;;  %v13009_v60 = vld [vmem:[#allocation26_spill] sm:$0xff] }
 0x18b   : > { %vm10441_vm9 = vcmp.ne.s16.totalorder %v12997_v36, 0  ;;  %13001 = vst [vmem:[#allocation80_spill] sm:$0xff] %v10451_v45  ;;  %vm10459_vm0 = vcmp.ne.s16.totalorder %v13003_v46, 0  ;;  %v13004_v36 = vmov 0  ;;  %7717 = vst [vmem:[#allocation2 + $0x88] sm:$0xff] %v7556_v51   ;;  %v2051_v12 = vshll.u32 %v10390_v17, 16 }
 0x18c   : > { %v12999_v37 = vsel %vm10441_vm9, 4294967295, %v12998_v37  ;;  %v13005_v36 = vsel %vm10459_vm0, 4294967295, %v13004_v36  ;;  %v733_v2 = vmax.f32 %v693_v10, 0.0  ;;  %vm13007_vm7 = vsmask.f32 4352  ;;  %v13017_v29 = vld [vmem:[#allocation21_spill] sm:$0xff]  ;;  %8213 = vmatpush3.bf16.msra.mxu0 %v8707_v43 }
 0x18d   : > { %13000 = vst [vmem:[#allocation19_spill] sm:$0xff] %v12999_v37  ;;  %13006 = vst [vmem:[#allocation20_spill] sm:$0xff] %v13005_v36  ;;  %v2046_v13 = vsel %vm13007_vm7, %v2036_v34, %v2045_v25  ;;  %v4916_v46 = vsel %vm10335_vm8, %v4883_v35, 0  ;;  %v2050_v58 = vrot.slane %v2048_v0, 3  ;;  %v7151_v51 = vcombine.low %v1050_v4, %v10434_v42  ;;  %v1052_v14 = vld [vmem:[#allocation2 + $0x50] sm:$0xf]  ;;  %8214 = vmatprep.subr.bf16.mxu0 %v10499_v57 }
 0x18e   : > { %v13010_v17 = vsel %vm9299_vm12, %v13009_v60, %v9287_v1  ;;  %8129 = vmatmul.mubr.bf16.gmra.mxu0 %v2046_v13  ;;  %v2053_v35 = vrot.slane %v2051_v12, 4  ;;  %v7551_v61 = vpack.c.bf16 %v733_v2, %v732_v53  ;;  %v10491_v0 = vld [vmem:[#allocation2 + $0x54] sm:$0xf]  ;;  %v1566_v60 = vsel %vm10355_vm5, %v1050_v4, 0  ;;  %v10508_v12 = vld [vmem:[#allocation2 + $0x58] sm:$0xf] }
 0x18f   : > { %vm10480_vm14 = vcmp.ne.s16.totalorder %v13010_v17, 0  ;;  %13013 = vst [vmem:[#allocation26_spill] sm:$0xff] %v10491_v0  ;;  %8092 = vmatprep.mubr.bf16.mxu1 %v7151_v51  ;;  %v4917_v17 = vsel %vm10355_vm5, %v4884_v20, 0  ;;  %v2057_v13 = vshrl.u32 %v7173_v24, 16  ;;  %v2060_v30 = vshll.u32 %v7173_v24, 16  ;;  %13015 = vst [vmem:[#allocation83_spill] sm:$0xff] %v10508_v12 }
 0x190   : > { %v10497_v6 = vld [vmem:[#allocation2 + $0x54] sm:$0xf]  ;;  %v2054_v54 = vor.u32 %v2053_v35, %v2050_v58  ;;  %7716 = vst [vmem:[#allocation2 + $0x80] sm:$0xff] %v7551_v61   ;;  %v1567_v53 = vsel %vm10376_vm11, %v10434_v42, 0  ;;  %v10504_v2 = vcombine.low %v4916_v46, %v4917_v17  ;;  %v1568_v4 = vsel %vm10385_vm13, %v1052_v14, 0  ;;  %v13022_v34 = vld [vmem:[#allocation27_spill] sm:$0xff]  ;;  %8215 = vmatpush3.bf16.msra.mxu0 %v10499_v57 }
 0x191   : > { %v10510_v20 = vld [vmem:[#allocation2 + $0x5c] sm:$0xf]  ;;  %v13018_v24 = vsel %vm9299_vm12, %v9308_v23, %v13017_v29  ;;  %v13019_v58 = vmov 0  ;;  %v7175_v42 = vcombine.low %v1565_v28, %v1566_v60  ;;  %v2059_v46 = vrot.slane %v2057_v13, 3  ;;  %v4887_v61 = vld [vmem:[#allocation2 + $0x64] sm:$0xf] }
 0x192   : > { %13014 = vst [vmem:[#allocation82_spill] sm:$0xff] %v10504_v2  ;;  %13016 = vst [vmem:[#allocation84_spill] sm:$0xff] %v10510_v20  ;;  %vm10517_vm7 = vcmp.ne.s16.totalorder %v13018_v24, 0  ;;  %v2062_v51 = vrot.slane %v2060_v30, 4  ;;  %v7152_v35 = vcombine.low %v1052_v14, %v10497_v6  ;;  %v10522_v17 = vld [vmem:[#allocation2 + $0x5c] sm:$0xf]  ;;  %v13023_v2 = vsel %vm9299_vm12, %v13022_v34, %v9287_v1 }
 0x193   : > { %v13020_v58 = vsel %vm10517_vm7, 4294967295, %v13019_v58  ;;  %vm10529_vm8 = vcmp.ne.s16.totalorder %v13023_v2, 0  ;;  %v13024_v29 = vmov 0  ;;  %vm13027_vm2 = vsmask.f32 4352  ;;  %v13028_v34 = vld [vmem:[#allocation22_spill] sm:$0xff] }
 0x194   : > { %13021 = vst [vmem:[#allocation21_spill] sm:$0xff] %v13020_v58  ;;  %v13025_v29 = vsel %vm10529_vm8, 4294967295, %v13024_v29  ;;  %v2055_v24 = vsel %vm13027_vm2, %v2045_v25, %v2054_v54  ;;  %v1569_v14 = vsel %vm10407_vm10, %v10497_v6, 0  ;;  %v1054_v60 = vld [vmem:[#allocation2 + $0x58] sm:$0xf]  ;;  %v13029_v13 = vsel %vm9299_vm12, %v9308_v23, %v13028_v34  ;;  %8093 = vmatmul.mubr.bf16.gmra.mxu1 %v7152_v35  ;;  %v8710_v20 = vld [vmem:[#allocation8 + $0xc8] sm:$0xff]  }
 0x195   : > { %13026 = vst [vmem:[#allocation27_spill] sm:$0xff] %v13025_v29  ;;  %vm10548_vm1 = vcmp.ne.s16.totalorder %v13029_v13, 0  ;;  %v13030_v25 = vmov 0  ;;  %8132 = vmatprep.mubr.bf16.mxu0 %v2055_v24  ;;  %v2063_v2 = vor.u32 %v2062_v51, %v2059_v46  ;;  %v7176_v30 = vcombine.low %v1567_v53, %v1568_v4  ;;  %v4888_v38 = vld [vmem:[#allocation2 + $0x68] sm:$0xf]  ;;  %v13034_v53 = vld [vmem:[#allocation28_spill] sm:$0xff]  ;;  %8216 = vmatprep.subr.bf16.mxu0 %v8710_v20 }
 0x196   : > { %v13031_v25 = vsel %vm10548_vm1, 4294967295, %v13030_v25  ;;  %v2066_v28 = vshrl.u32 %v10466_v39, 16  ;;  %v2069_v0 = vshll.u32 %v10466_v39, 16  ;;  %v4920_v13 = vsel %vm10407_vm10, %v4887_v61, 0  ;;  %v10563_v51 = vld [vmem:[#allocation2 + $0x60] sm:$0xf]  ;;  %8217 = vmatpush3.bf16.msra.mxu0 %v8710_v20 }
 0x197   : > { %13032 = vst [vmem:[#allocation22_spill] sm:$0xff] %v13031_v25  ;;  %v7153_v46 = vcombine.low %v1054_v60, %v10522_v17  ;;  %13033 = vst [vmem:[#allocation85_spill] sm:$0xff] %v10563_v51  ;;  %v13035_v39 = vsel %vm9299_vm12, %v13034_v53, %v9287_v1  ;;  %v13036_v4 = vmov 0  ;;  %vm13039_vm11 = vsmask.f32 4352  ;;  %v13052_v37 = vld [vmem:[#allocation29_spill] sm:$0xff] }
 0x198   : > { %vm10570_vm2 = vcmp.ne.s16.totalorder %v13035_v39, 0  ;;  %v2064_v35 = vsel %vm13039_vm11, %v2054_v54, %v2063_v2  ;;  %v2068_v24 = vrot.slane %v2066_v28, 3  ;;  %v2071_v34 = vrot.slane %v2069_v0, 4  ;;  %v1056_v6 = vld [vmem:[#allocation2 + $0x60] sm:$0xf]  ;;  %v13040_v0 = vld [vmem:[#allocation25_spill] sm:$0xff] }
 0x199   : > { %v13037_v4 = vsel %vm10570_vm2, 4294967295, %v13036_v4  ;;  %v1570_v61 = vsel %vm10441_vm9, %v1054_v60, 0  ;;  %8133 = vmatmul.mubr.bf16.gmra.mxu0 %v2064_v35  ;;  %v1571_v53 = vsel %vm10459_vm0, %v10522_v17, 0  ;;  %8096 = vmatprep.mubr.bf16.mxu1 %v7153_v46  ;;  %v4921_v43 = vsel %vm10441_vm9, %v4888_v38, 0  ;;  %v10592_v33 = vld [vmem:[#allocation2 + $0x64] sm:$0xf] }
 0x19a   : > { %13038 = vst [vmem:[#allocation28_spill] sm:$0xff] %v13037_v4  ;;  %v2075_v39 = vshrl.u32 %v7175_v42, 16  ;;  %v2078_v54 = vshll.u32 %v7175_v42, 16  ;;  %v13041_v28 = vsel %vm9299_vm12, %v9308_v23, %v13040_v0  ;;  %v13042_v60 = vmov 0  ;;  %v1057_v40 = vld [vmem:[#allocation2 + $0x64] sm:$0xf] }
 0x19b   : > { %vm10588_vm11 = vcmp.ne.s16.totalorder %v13041_v28, 0  ;;  %v2072_v35 = vor.u32 %v2071_v34, %v2068_v24  ;;  %v10594_v12 = vcombine.low %v4920_v13, %v4921_v43  ;;  %v2084_v17 = vshrl.u32 %v7176_v30, 16  ;;  %v13046_v38 = vld [vmem:[#allocation30_spill] sm:$0xff]  ;;  %v10605_v0 = vld [vmem:[#allocation8 + $0xc0] sm:$0xff]   ;;  %v1058_v27 = vld [vmem:[#allocation2 + $0x68] sm:$0xf] }
 0x19c   : > { %v13043_v60 = vsel %vm10588_vm11, 4294967295, %v13042_v60  ;;  %v2087_v46 = vshll.u32 %v7176_v30, 16  ;;  %v13047_v42 = vsel %vm9299_vm12, %v13046_v38, %v9287_v1  ;;  %v13048_v45 = vmov 0  ;;  %v4891_v43 = vld [vmem:[#allocation2 + $0x74] sm:$0xf]  ;;  %8218 = vmatprep.subr.bf16.mxu0 %v10605_v0 }
 0x19d   : > { %13044 = vst [vmem:[#allocation25_spill] sm:$0xff] %v13043_v60  ;;  %13045 = vst [vmem:[#allocation86_spill] sm:$0xff] %v10594_v12  ;;  %vm10601_vm10 = vcmp.ne.s16.totalorder %v13047_v42, 0  ;;  %v2077_v13 = vrot.slane %v2075_v39, 3  ;;  %v2080_v24 = vrot.slane %v2078_v54, 4  ;;  %v1572_v30 = vsel %vm10480_vm14, %v1056_v6, 0  ;;  %8219 = vmatpush3.bf16.msra.mxu0 %v10605_v0 }
 0x19e   : > { %v13049_v45 = vsel %vm10601_vm10, 4294967295, %v13048_v45  ;;  %vm13051_vm13 = vsmask.f32 4352  ;;  %v2086_v38 = vrot.slane %v2084_v17, 3  ;;  %v2089_v42 = vrot.slane %v2087_v46, 4  ;;  %8300 = vmatprep.subr.bf16.mxu0 %v10662_v15  ;;  %v13073_v0 = vld [vmem:[#allocation32_spill] sm:$0xff] }
 0x19f   : > { %13050 = vst [vmem:[#allocation30_spill] sm:$0xff] %v13049_v45  ;;  %v2073_v28 = vsel %vm13051_vm13, %v2063_v2, %v2072_v35  ;;  %v7154_v12 = vcombine.low %v1056_v6, %v1057_v40  ;;  %v1059_v56 = vld [vmem:[#allocation2 + $0x6c] sm:$0xf]  ;;  %v13053_v34 = vsel %vm9299_vm12, %v9308_v23, %v13052_v37  ;;  %v13054_v39 = vmov 0  ;;  %v10623_v51 = vld [vmem:[#allocation2 + $0x68] sm:$0xf] }
 0x1a0   : > { %vm10619_vm9 = vcmp.ne.s16.totalorder %v13053_v34, 0  ;;  %8136 = vmatprep.mubr.bf16.mxu0 %v2073_v28  ;;  %v7177_v54 = vcombine.low %v1569_v14, %v1570_v61  ;;  %v2081_v57 = vor.u32 %v2080_v24, %v2077_v13  ;;  %v10625_v2 = vld [vmem:[#allocation2 + $0x6c] sm:$0xf]  ;;  %v4892_v6 = vld [vmem:[#allocation2 + $0x78] sm:$0xf]  ;;  %v13058_v37 = vrot.slane %v10079_v8, 4 }
 0x1a1   : > { %v13055_v39 = vsel %vm10619_vm9, 4294967295, %v13054_v39  ;;  %13057 = vst [vmem:[#allocation87_spill] sm:$0xff] %v10625_v2  ;;  %v1573_v61 = vsel %vm10517_vm7, %v1057_v40, 0  ;;  %8097 = vmatmul.mubr.bf16.gmra.mxu1 %v7154_v12  ;;  %v7178_v34 = vcombine.low %v1571_v53, %v1572_v30  ;;  %v4924_v13 = vsel %vm10517_vm7, %v4891_v43, 0  ;;  %v10645_v24 = vld [vmem:[#allocation2 + $0x70] sm:$0xf] }
 0x1a2   : > { %13056 = vst [vmem:[#allocation29_spill] sm:$0xff] %v13055_v39  ;;  %v10636_v46 = vsel %vm9577_vm4, %v13058_v37, %v9597_v19  ;;  %13060 = vst [vmem:[#allocation89_spill] sm:$0xff] %v10645_v24  ;;  %v13061_v8 = vld [vmem:[#allocation33_spill] sm:$0xff]  ;;  %v13063_v37 = vmov 0  ;;  %vm13066_vm0 = vsmask.f32 4352  ;;  %v2090_v17 = vor.u32 %v2089_v42, %v2086_v38 }
 0x1a3   : > { %13059 = vst [vmem:[#allocation88_spill] sm:$0xff] %v10636_v46  ;;  %v13062_v28 = vsel %vm9299_vm12, %v13061_v8, %v9287_v1  ;;  %v2082_v14 = vsel %vm13066_vm0, %v2072_v35, %v2081_v57  ;;  %v1574_v40 = vsel %vm10529_vm8, %v1058_v27, 0  ;;  %v7155_v12 = vcombine.low %v1058_v27, %v1059_v56  ;;  %v10659_v53 = vld [vmem:[#allocation2 + $0x74] sm:$0xf]  ;;  %v1060_v30 = vld [vmem:[#allocation2 + $0x70] sm:$0xf]  ;;  %vm13068_vm12 = vmmov %vm13066_vm0 }
 0x1a4   : > { %vm10652_vm13 = vcmp.ne.s16.totalorder %v13062_v28, 0  ;;  %13067 = vst [vmem:[#allocation90_spill] sm:$0xff] %v10659_v53  ;;  %v1575_v43 = vsel %vm10548_vm1, %v1059_v56, 0  ;;  %v4925_v27 = vsel %vm10529_vm8, %v4892_v6, 0  ;;  %v1061_v38 = vld [vmem:[#allocation2 + $0x74] sm:$0xf]  ;;  %8137 = vmatmul.mubr.bf16.gmra.mxu0 %v2082_v14  ;;  %v2091_v20 = vsel %vm13068_vm12, %v2081_v57, %v2090_v17  ;;  %vm13085_vm5 = vmmov %vm13066_vm0 }
 0x1a5   : > { %v13064_v37 = vsel %vm10652_vm13, 4294967295, %v13063_v37  ;;  %8100 = vmatprep.mubr.bf16.mxu1 %v7155_v12  ;;  %v10676_v42 = vcombine.low %v4924_v13, %v4925_v27  ;;  %v2093_v8 = vshrl.u32 %v7177_v54, 16  ;;  %v2096_v28 = vshll.u32 %v7177_v54, 16  ;;  %v10678_v1 = vld [vmem:[#allocation2 + $0x78] sm:$0xf]  ;;  %8140 = vmatprep.mubr.bf16.mxu0 %v2091_v20  ;;  %v13095_v60 = vld [vmem:[#allocation41_spill] sm:$0xff] }
 0x1a6   : > { %13065 = vst [vmem:[#allocation33_spill] sm:$0xff] %v13064_v37  ;;  %13070 = vst [vmem:[#allocation92_spill] sm:$0xff] %v10678_v1  ;;  %v10680_v35 = vld [vmem:[#allocation2 + $0x7c] sm:$0xf]  ;;  %v4895_v19 = vld [vmem:[#allocation2 + $0x84] sm:$0xf]  ;;  %v7179_v56 = vcombine.low %v1573_v61, %v1574_v40  ;;  %v7156_v20 = vcombine.low %v1060_v30, %v1061_v38 }
 0x1a7   : > { %13069 = vst [vmem:[#allocation91_spill] sm:$0xff] %v10676_v42  ;;  %13071 = vst [vmem:[#allocation93_spill] sm:$0xff] %v10680_v35  ;;  %v2102_v2 = vshrl.u32 %v7178_v34, 16  ;;  %v2105_v6 = vshll.u32 %v7178_v34, 16  ;;  %v1576_v58 = vsel %vm10570_vm2, %v1060_v30, 0  ;;  %v2095_v13 = vrot.slane %v2093_v8, 3 }
 0x1a8   : > { %v1062_v14 = vld [vmem:[#allocation2 + $0x78] sm:$0xf]  ;;  %v2098_v12 = vrot.slane %v2096_v28, 4  ;;  %v1063_v27 = vld [vmem:[#allocation2 + $0x7c] sm:$0xf]  ;;  %v1577_v34 = vsel %vm10588_vm11, %v1061_v38, 0  ;;  %v7180_v29 = vcombine.low %v1575_v43, %v1576_v58 }
 0x1a9   : > { %v2104_v61 = vrot.slane %v2102_v2, 3  ;;  %v2107_v40 = vrot.slane %v2105_v6, 4  ;;  %v4928_v57 = vsel %vm10588_vm11, %v4895_v19, 0  ;;  %v1578_v8 = vsel %vm10601_vm10, %v1062_v14, 0  ;;  %v10698_v28 = vld [vmem:[#allocation2 + $0x80] sm:$0xf]  ;;  %8101 = vmatmul.mubr.bf16.gmra.mxu1 %v7156_v20 }
 0x1aa   : > { %v2099_v42 = vor.u32 %v2098_v12, %v2095_v13  ;;  %13072 = vst [vmem:[#allocation94_spill] sm:$0xff] %v10698_v28  ;;  %v4896_v54 = vld [vmem:[#allocation2 + $0x88] sm:$0xf]  ;;  %v13074_v2 = vld [vmem:[#allocation31_spill] sm:$0xff]  ;;  %v13076_v38 = vmov 0  ;;  %v13079_v58 = vld [vmem:[#allocation36_spill] sm:$0xff] }
 0x1ab   : > { %v13075_v30 = vsel %vm9577_vm4, %v9563_v52, %v13074_v2  ;;  %v13080_v19 = vld [vmem:[#allocation34_spill] sm:$0xff]  ;;  %v13082_v6 = vmov 0  ;;  %v2108_v13 = vor.u32 %v2107_v40, %v2104_v61  ;;  %v1064_v53 = vld [vmem:[#allocation2 + $0x80] sm:$0xf]  ;;  %v10729_v24 = vld [vmem:[#allocation2 + $0x84] sm:$0xf] }
 0x1ac   : > { %vm10706_vm12 = vcmp.ne.s16.totalorder %v13075_v30, 0  ;;  %v13081_v43 = vsel %vm9577_vm4, %v9563_v52, %v13080_v19  ;;  %v7157_v30 = vcombine.low %v1062_v14, %v1063_v27  ;;  %v2100_v25 = vsel %vm13085_vm5, %v2090_v17, %v2099_v42  ;;  %13086 = vst [vmem:[#allocation95_spill] sm:$0xff] %v10729_v24  ;;  %v1065_v40 = vld [vmem:[#allocation2 + $0x84] sm:$0xf]  ;;  %v10741_v35 = vld [vmem:[#allocation2 + $0x88] sm:$0xf] }
 0x1ad   : > { %v13077_v38 = vsel %vm10706_vm12, 4294967295, %v13076_v38  ;;  %vm10716_vm1 = vcmp.ne.s16.totalorder %v13081_v43, 0  ;;  %v1579_v19 = vsel %vm10619_vm9, %v1063_v27, 0  ;;  %v7181_v43 = vcombine.low %v1577_v34, %v1578_v8  ;;  %8141 = vmatmul.mubr.bf16.gmra.mxu0 %v2100_v25  ;;  %v13089_v25 = vld [vmem:[#allocation37_spill] sm:$0xff]  ;;  %v2383_v24 = vld [vmem:[#allocation2 + $0x14] sm:$0xf] }
 0x1ae   : > { %13078 = vst [vmem:[#allocation31_spill] sm:$0xff] %v13077_v38  ;;  %v13083_v6 = vsel %vm10716_vm1, 4294967295, %v13082_v6  ;;  %v4929_v61 = vsel %vm10601_vm10, %v4896_v54, 0  ;;  %v2109_v20 = vsel %vm13066_vm0, %v2099_v42, %v2108_v13  ;;  %8104 = vmatprep.mubr.bf16.mxu1 %v7157_v30  ;;  %v2111_v17 = vshrl.u32 %v7179_v56, 16  ;;  %v2384_v1 = vld [vmem:[#allocation2 + $0x18] sm:$0xf] }
 0x1af   : > { %13084 = vst [vmem:[#allocation34_spill] sm:$0xff] %v13083_v6  ;;  %v10737_v2 = vcombine.low %v4928_v57, %v4929_v61  ;;  %v2114_v12 = vshll.u32 %v7179_v56, 16  ;;  %v2120_v27 = vshrl.u32 %v7180_v29, 16  ;;  %v2123_v34 = vshll.u32 %v7180_v29, 16  ;;  %8144 = vmatprep.mubr.bf16.mxu0 %v2109_v20  ;;  %v2382_v61 = vld [vmem:[#allocation2 + $0x10] sm:$0xf] }
 0x1b0   : > { %v1580_v8 = vsel %vm10652_vm13, %v1064_v53, 0  ;;  %v2113_v54 = vrot.slane %v2111_v17, 3  ;;  %vm13088_vm5 = vcmp.ne.s16.totalorder %v9308_v23, 0  ;;  %v13090_v29 = vld [vmem:[#allocation38_spill] sm:$0xff]  ;;  %v13092_v20 = vmov 0 }
 0x1b1   : > { %13087 = vst [vmem:[#allocation96_spill] sm:$0xff] %v10737_v2  ;;  %v1581_v57 = vsel %vm13088_vm5, %v1065_v40, 0  ;;  %v7182_v30 = vcombine.low %v1579_v19, %v1580_v8  ;;  %v13091_v56 = vsel %vm9577_vm4, %v9563_v52, %v13090_v29  ;;  %v2116_v14 = vrot.slane %v2114_v12, 4  ;;  %v2385_v4 = vld [vmem:[#allocation2 + $0x1c] sm:$0xf]  ;;  %v13096_v12 = vld [vmem:[#allocation40_spill] sm:$0xff] }
 0x1b2   : > { %vm10754_vm10 = vcmp.ne.s16.totalorder %v13091_v56, 0  ;;  %v2122_v42 = vrot.slane %v2120_v27, 3  ;;  %v2125_v17 = vrot.slane %v2123_v34, 4  ;;  %v7183_v2 = vcombine.low %v1581_v57, %v1581_v57 }
 0x1b3   : > { %v13093_v20 = vsel %vm10754_vm10, 4294967295, %v13092_v20  ;;  %v7158_v39 = vcombine.low %v1064_v53, %v1065_v40  ;;  %v2129_v8 = vshrl.u32 %v7181_v43, 16  ;;  %v2132_v23 = vshll.u32 %v7181_v43, 16 }
 0x1b4   : > { %13094 = vst [vmem:[#allocation38_spill] sm:$0xff] %v13093_v20  ;;  %v2117_v28 = vor.u32 %v2116_v14, %v2113_v54  ;;  %v2126_v29 = vor.u32 %v2125_v17, %v2122_v42  ;;  %v2147_v56 = vshrl.u32 %v7183_v2, 16  ;;  %v2150_v45 = vshll.u32 %v7183_v2, 16  ;;  %v2386_v17 = vld [vmem:[#allocation2 + $0x20] sm:$0xf] }
 0x1b5   : > { %v13097_v27 = vsel %vm9577_vm4, %v9563_v52, %v13096_v12  ;;  %v13098_v53 = vmov 0  ;;  %8105 = vmatmul.mubr.bf16.gmra.mxu1 %v7158_v39  ;;  %v2131_v40 = vrot.slane %v2129_v8, 3  ;;  %v2134_v43 = vrot.slane %v2132_v23, 4  ;;  %v2387_v8 = vld [vmem:[#allocation2 + $0x24] sm:$0xf] }
 0x1b6   : > { %vm10767_vm0 = vcmp.ne.s16.totalorder %v13097_v27, 0  ;;  %vm13101_vm5 = vcmp.ne.s16.totalorder %v13073_v0, 0  ;;  %v2867_v2 = vsel %vm10706_vm12, %v2383_v24, 0  ;;  %vm13102_vm11 = vsmask.f32 4352 }
 0x1b7   : > { %v13099_v53 = vsel %vm10767_vm0, 4294967295, %v13098_v53  ;;  %v2866_v14 = vsel %vm13101_vm5, %v2382_v61, 0  ;;  %v2118_v34 = vsel %vm13102_vm11, %v2108_v13, %v2117_v28  ;;  %vm13103_vm9 = vmmov %vm13102_vm11  ;;  %v2138_v57 = vshrl.u32 %v7182_v30, 16  ;;  %v13105_v13 = vld [vmem:[#allocation45_spill] sm:$0xff] }
 0x1b8   : > { %13100 = vst [vmem:[#allocation40_spill] sm:$0xff] %v13099_v53  ;;  %v2127_v42 = vsel %vm13103_vm9, %v2117_v28, %v2126_v29  ;;  %v7193_v54 = vcombine.low %v2866_v14, %v2867_v2  ;;  %v2135_v12 = vor.u32 %v2134_v43, %v2131_v40  ;;  %v2141_v27 = vshll.u32 %v7182_v30, 16  ;;  %8145 = vmatmul.mubr.bf16.gmra.mxu0 %v2118_v34  ;;  %v10783_v43 = vld [vmem:[#allocation2 + $0x18] sm:$0xf] }
 0x1b9   : > { %vm13104_vm13 = vcmp.ne.s16.totalorder %v13079_v58, 0  ;;  %v2869_v23 = vsel %vm10716_vm1, %v2385_v4, 0  ;;  %v2140_v24 = vrot.slane %v2138_v57, 3  ;;  %8148 = vmatprep.mubr.bf16.mxu0 %v2127_v42  ;;  %v2149_v40 = vrot.slane %v2147_v56, 3  ;;  %13106 = vst [vmem:[#allocation97_spill] sm:$0xff] %v10783_v43  ;;  %v13114_v56 = vld [vmem:[#allocation43_spill] sm:$0xff] }
 0x1ba   : > { %v2868_v39 = vsel %vm13104_vm13, %v2384_v1, 0  ;;  %v3005_v61 = vshll.u32 %v7193_v54, 16  ;;  %v3009_v19 = vshrl.u32 %v7193_v54, 16  ;;  %v2136_v28 = vsel %vm13103_vm9, %v2126_v29, %v2135_v12  ;;  %v13108_v54 = vld [vmem:[#allocation42_spill] sm:$0xff]  ;;  %v2389_v58 = vld [vmem:[#allocation2 + $0x2c] sm:$0xf] }
 0x1bb   : > { %v7194_v38 = vcombine.low %v2868_v39, %v2869_v23  ;;  %v2143_v14 = vrot.slane %v2141_v27, 4  ;;  %v2152_v30 = vrot.slane %v2150_v45, 4  ;;  %vm13107_vm13 = vcmp.ne.s16.totalorder %v13089_v25, 0  ;;  %v13113_v45 = vld [vmem:[#allocation47_spill] sm:$0xff] }
 0x1bc   : > { %v3007_v1 = vrot.slane %v3005_v61, 1  ;;  %v2870_v4 = vsel %vm13107_vm13, %v2386_v17, 0  ;;  %v2871_v34 = vsel %vm10754_vm10, %v2387_v8, 0  ;;  %v13109_v42 = vsel %vm9577_vm4, %v9563_v52, %v13108_v54  ;;  %v2388_v61 = vld [vmem:[#allocation2 + $0x28] sm:$0xf]  ;;  %v13119_v54 = vld [vmem:[#allocation35_spill] sm:$0xff]  ;;  %vm13121_vm10 = vmmov %vm13103_vm9 }
 0x1bd   : > { %v3013_v2 = vshll.u32 %v7194_v38, 16  ;;  %vm10794_vm5 = vcmp.ne.s16.totalorder %v13109_v42, 0  ;;  %v13110_v29 = vmov 0  ;;  %v13115_v57 = vsel %vm9577_vm4, %v9563_v52, %v13114_v56 }
 0x1be   : > { %v13111_v29 = vsel %vm10794_vm5, 4294967295, %v13110_v29  ;;  %vm10804_vm13 = vcmp.ne.s16.totalorder %v13115_v57, 0  ;;  %v13116_v17 = vmov 0  ;;  %v2144_v27 = vor.u32 %v2143_v14, %v2140_v24  ;;  %v13123_v14 = vld [vmem:[#allocation39_spill] sm:$0xff] }
 0x1bf   : > { %13112 = vst [vmem:[#allocation42_spill] sm:$0xff] %v13111_v29  ;;  %v13117_v17 = vsel %vm10804_vm13, 4294967295, %v13116_v17  ;;  %v2153_v39 = vor.u32 %v2152_v30, %v2149_v40  ;;  %v7195_v23 = vcombine.low %v2870_v4, %v2871_v34  ;;  %v3017_v8 = vshrl.u32 %v7194_v38, 16  ;;  %v2390_v34 = vld [vmem:[#allocation2 + $0x30] sm:$0xf] }
 0x1c0   : > { %13118 = vst [vmem:[#allocation43_spill] sm:$0xff] %v13117_v17  ;;  %vm13120_vm11 = vsmask.f32 7424  ;;  %v3011_v20 = vor.u32 %v3009_v19, %v3007_v1  ;;  %v3015_v25 = vrot.slane %v3013_v2, 1  ;;  %v3422_v6 = vsel %vm9969_vm6, %v10783_v43, 0  ;;  %v8712_v19 = vld [vmem:[#allocation8 + $0x130] sm:$0xff]   ;;  %8149 = vmatmul.mubr.bf16.gmra.mxu0 %v2136_v28 }
 0x1c1   : > { %v3008_v42 = vsel %vm13120_vm11, %v13119_v54, %v3007_v1  ;;  %v2145_v56 = vsel %vm13103_vm9, %v2135_v12, %v2144_v27  ;;  %v10815_v57 = vsel %vm13121_vm10, %v2144_v27, %v2153_v39  ;;  %v3021_v24 = vshll.u32 %v7195_v23, 16  ;;  %v2394_v43 = vld [vmem:[#allocation2 + $0x40] sm:$0xf] }
 0x1c2   : > { %8172 = vmatprep.mubr.bf16.mxu1 %v3008_v42  ;;  %v13122_v38 = vsel %vm9317_vm15, %v10126_v49, 0  ;;  %v3016_v30 = vsel %vm13120_vm11, %v3011_v20, %v3015_v25  ;;  %v3019_v1 = vor.u32 %v3017_v8, %v3015_v25  ;;  %v13124_v2 = vsel %vm9354_vm3, %v10128_v63, 0  ;;  %v13126_v42 = vld [vmem:[#allocation49_spill] sm:$0xff]  ;;  %v13127_v25 = vld [vmem:[#allocation44_spill] sm:$0xff]  ;;  %8152 = vmatprep.mubr.bf16.mxu0 %v2145_v56 }
 0x1c3   : > { %v7217_v40 = vcombine.low %v13123_v14, %v13122_v38  ;;  %v7218_v4 = vcombine.low %v13124_v2, %v3422_v6  ;;  %vm13125_vm9 = vcmp.ne.s16.totalorder %v13095_v60, 0  ;;  %8173 = vmatmul.mubr.bf16.vlgmr.msra.gmra.mxu1 %v3016_v30  ;;  %v3023_v27 = vrot.slane %v3021_v24, 1  ;;  %v2391_v38 = vld [vmem:[#allocation2 + $0x34] sm:$0xf]  ;;  %v8713_v2 = vld [vmem:[#allocation8 + $0x128] sm:$0xff]  }
 0x1c4   : > { %v2872_v12 = vsel %vm13125_vm9, %v2388_v61, 0  ;;  %v2873_v49 = vsel %vm10767_vm0, %v2389_v58, 0  ;;  %v13128_v20 = vsel %vm9577_vm4, %v9563_v52, %v13127_v25  ;;  %v13129_v63 = vmov 0  ;;  %8253 = vmatpush3.bf16.msra.mxu1 %v10428_v16  ;;  %v2392_v25 = vld [vmem:[#allocation2 + $0x38] sm:$0xf]  ;;  %v13135_v16 = vld [vmem:[#allocation46_spill] sm:$0xff] }
 0x1c5   : > { %v3552_v39 = vshrl.u32 %v7217_v40, 16  ;;  %v3555_v54 = vshll.u32 %v7217_v40, 16  ;;  %vm10837_vm11 = vcmp.ne.s16.totalorder %v13128_v20, 0  ;;  %v3560_v6 = vshrl.u32 %v7218_v4, 16  ;;  %8254 = vmatprep.subr.bf16.mxu1 %v8712_v19  ;;  %v13134_v20 = vld [vmem:[#allocation50_spill] sm:$0xff] }
 0x1c6   : > { %v13130_v63 = vsel %vm10837_vm11, 4294967295, %v13129_v63  ;;  %v3563_v8 = vshll.u32 %v7218_v4, 16  ;;  %v7196_v61 = vcombine.low %v2872_v12, %v2873_v49  ;;  %v3025_v24 = vshrl.u32 %v7195_v23, 16 }
 0x1c7   : > { %13131 = vst [vmem:[#allocation35_spill] sm:$0xff] %v13130_v63  ;;  %vm13132_vm9 = vsmask.f32 7424  ;;  %v3554_v14 = vrot.slane %v3552_v39, 3  ;;  %v3557_v40 = vrot.slane %v3555_v54, 4  ;;  %vm13133_vm10 = vcmp.ne.s16.totalorder %v13105_v13, 0 }
 0x1c8   : > { %v3024_v58 = vsel %vm13132_vm9, %v3019_v1, %v3023_v27  ;;  %v2874_v30 = vsel %vm13133_vm10, %v2390_v34, 0  ;;  %v13136_v28 = vsel %vm9577_vm4, %v9563_v52, %v13135_v16  ;;  %v13137_v23 = vmov 0  ;;  %v2393_v39 = vld [vmem:[#allocation2 + $0x3c] sm:$0xf]  ;;  %8255 = vmatpush3.bf16.msra.mxu1 %v8712_v19  ;;  %8153 = vmatmul.mubr.bf16.gmra.mxu0 %v10815_v57 }
 0x1c9   : > { %vm10851_vm0 = vcmp.ne.s16.totalorder %v13136_v28, 0  ;;  %8176 = vmatprep.mubr.bf16.mxu1 %v3024_v58  ;;  %v3562_v56 = vrot.slane %v3560_v6, 3  ;;  %v3565_v1 = vrot.slane %v3563_v8, 4  ;;  %v3027_v4 = vor.u32 %v3025_v24, %v3023_v27  ;;  %v13141_v58 = vld [vmem:[#allocation51_spill] sm:$0xff]  ;;  %8256 = vmatprep.subr.bf16.mxu1 %v8713_v2  ;;  %v2395_v24 = vld [vmem:[#allocation2 + $0x44] sm:$0xf] }
 0x1ca   : > { %v13138_v23 = vsel %vm10851_vm0, 4294967295, %v13137_v23  ;;  %v3029_v12 = vshll.u32 %v7196_v61, 16  ;;  %v3558_v34 = vor.u32 %v3557_v40, %v3554_v14  ;;  %v2875_v54 = vsel %vm10794_vm5, %v2391_v38, 0  ;;  %v8714_v38 = vld [vmem:[#allocation8 + $0x120] sm:$0xff]  }
 0x1cb   : > { %13139 = vst [vmem:[#allocation39_spill] sm:$0xff] %v13138_v23  ;;  %v3033_v49 = vshrl.u32 %v7196_v61, 16  ;;  %v3569_v13 = vshrl.u32 %v13140_v3, 16  ;;  %v3566_v53 = vor.u32 %v3565_v1, %v3562_v56  ;;  %v7197_v16 = vcombine.low %v2874_v30, %v2875_v54 }
 0x1cc   : > { %v3031_v60 = vrot.slane %v3029_v12, 1  ;;  %v3572_v28 = vshll.u32 %v13140_v3, 16  ;;  %vm13142_vm9 = vnez %v12934_v21  ;;  %vm13144_vm6 = vnez %v12927_v62  ;;  %8257 = vmatpush3.bf16.msra.mxu1 %v8713_v2  ;;  %v13331_v62 = vld [vmem:[#allocation38_spill] sm:$0xff] }
 0x1cd   : > { %v3571_v6 = vrot.slane %v3569_v13, 3  ;;  %v13143_v27 = vsel %vm13142_vm9, %v10224_v55, 0  ;;  %v13145_v8 = vsel %vm13144_vm6, %v10199_v22, 0  ;;  %vm13146_vm5 = vcmp.ne.s16.totalorder %v13113_v45, 0  ;;  %v13149_v22 = vld [vmem:[#allocation48_spill] sm:$0xff]  ;;  %8258 = vmatprep.subr.bf16.mxu1 %v8714_v38 }
 0x1ce   : > { %v7220_v61 = vcombine.low %v13145_v8, %v13143_v27  ;;  %v2876_v19 = vsel %vm13146_vm5, %v2392_v25, 0  ;;  %v2877_v3 = vsel %vm10804_vm13, %v2393_v39, 0  ;;  %vm13147_vm10 = vsmask.f32 4352  ;;  %v13155_v27 = vld [vmem:[#allocation52_spill] sm:$0xff] }
 0x1cf   : > { %v3567_v13 = vsel %vm13147_vm10, %v3558_v34, %v3566_v53  ;;  %vm13148_vm1 = vsmask.f32 7424  ;;  %v3035_v40 = vor.u32 %v3033_v49, %v3031_v60  ;;  %v3037_v55 = vshll.u32 %v7197_v16, 16  ;;  %v2396_v49 = vld [vmem:[#allocation2 + $0x48] sm:$0xf] }
 0x1d0   : > { %v3032_v14 = vsel %vm13148_vm1, %v3027_v4, %v3031_v60  ;;  %v13150_v30 = vsel %vm9577_vm4, %v9563_v52, %v13149_v22  ;;  %v13151_v56 = vmov 0  ;;  %v3574_v25 = vrot.slane %v3572_v28, 4  ;;  %v13156_v28 = vld [vmem:[#allocation53_spill] sm:$0xff]  ;;  %8220 = vmatprep.mubr.bf16.mxu0 %v3567_v13  ;;  %8259 = vmatpush3.bf16.msra.mxu1 %v8714_v38  ;;  %v8716_v38 = vld [vmem:[#allocation8 + $0x110] sm:$0xff]  }
 0x1d1   : > { %vm10879_vm9 = vcmp.ne.s16.totalorder %v13150_v30, 0  ;;  %8177 = vmatmul.mubr.bf16.gmra.mxu1 %v3032_v14  ;;  %v3578_v1 = vshrl.u32 %v7220_v61, 16  ;;  %v3581_v12 = vshll.u32 %v7220_v61, 16  ;;  %v7198_v39 = vcombine.low %v2876_v19, %v2877_v3  ;;  %v2397_v19 = vld [vmem:[#allocation2 + $0x4c] sm:$0xf]  ;;  %v8715_v3 = vld [vmem:[#allocation8 + $0x118] sm:$0xff]  }
 0x1d2   : > { %v13152_v56 = vsel %vm10879_vm9, 4294967295, %v13151_v56  ;;  %v3039_v34 = vrot.slane %v3037_v55, 1  ;;  %v3041_v4 = vshrl.u32 %v7197_v16, 16  ;;  %vm13154_vm1 = vcmp.ne.s16.totalorder %v13126_v42, 0  ;;  %8260 = vmatprep.subr.bf16.mxu1 %v8715_v3 }
 0x1d3   : > { %13153 = vst [vmem:[#allocation44_spill] sm:$0xff] %v13152_v56  ;;  %v2878_v60 = vsel %vm13154_vm1, %v2394_v43, 0  ;;  %v2879_v54 = vsel %vm10837_vm11, %v2395_v24, 0  ;;  %v13157_v8 = vsel %vm9577_vm4, %v9563_v52, %v13156_v28  ;;  %v13158_v61 = vmov 0  ;;  %v13227_v56 = vld [vmem:[#allocation76_spill] sm:$0xff] }
 0x1d4   : > { %vm10894_vm10 = vcmp.ne.s16.totalorder %v13157_v8, 0  ;;  %v3575_v57 = vor.u32 %v3574_v25, %v3571_v6  ;;  %v3580_v2 = vrot.slane %v3578_v1, 3  ;;  %v3583_v16 = vrot.slane %v3581_v12, 4  ;;  %v13170_v12 = vld [vmem:[#allocation71_spill] sm:$0xff]  ;;  %8261 = vmatpush3.bf16.msra.mxu1 %v8715_v3 }
 0x1d5   : > { %v13159_v61 = vsel %vm10894_vm10, 4294967295, %v13158_v61  ;;  %v3045_v43 = vshll.u32 %v7198_v39, 16  ;;  %vm13161_vm1 = vsmask.f32 7424  ;;  %v3043_v14 = vor.u32 %v3041_v4, %v3039_v34  ;;  %8262 = vmatprep.subr.bf16.mxu1 %v8716_v38 }
 0x1d6   : > { %13160 = vst [vmem:[#allocation46_spill] sm:$0xff] %v13159_v61  ;;  %v3040_v24 = vsel %vm13161_vm1, %v3035_v40, %v3039_v34  ;;  %v7199_v55 = vcombine.low %v2878_v60, %v2879_v54  ;;  %v3049_v22 = vshrl.u32 %v7198_v39, 16  ;;  %vm13162_vm5 = vsmask.f32 4352  ;;  %v13176_v54 = vld [vmem:[#allocation55_spill] sm:$0xff] }
 0x1d7   : > { %8180 = vmatprep.mubr.bf16.mxu1 %v3040_v24  ;;  %v3576_v30 = vsel %vm13162_vm5, %v3566_v53, %v3575_v57  ;;  %v3584_v28 = vor.u32 %v3583_v16, %v3580_v2  ;;  %v3047_v8 = vrot.slane %v3045_v43, 1  ;;  %vm13163_vm11 = vnez %v12940_v5  ;;  %v2404_v61 = vld [vmem:[#allocation2 + $0x68] sm:$0xf] }
 0x1d8   : > { %v13164_v6 = vsel %vm13163_vm11, %v10295_v41, 0  ;;  %vm13165_vm13 = vnez %v12937_v59  ;;  %v3053_v1 = vshll.u32 %v7199_v55, 16  ;;  %vm13167_vm1 = vnez %v12949_v32  ;;  %v2398_v59 = vld [vmem:[#allocation2 + $0x50] sm:$0xf]  ;;  %8221 = vmatmul.mubr.bf16.vlgmr.msra.gmra.mxu0 %v3576_v30  ;;  %8263 = vmatpush3.bf16.msra.mxu1 %v8716_v38  ;;  %v13329_v32 = vld [vmem:[#allocation37_spill] sm:$0xff] }
 0x1d9   : > { %v13166_v13 = vsel %vm13165_vm13, %v10235_v44, 0  ;;  %v13168_v40 = vsel %vm13167_vm1, %v10327_v7, 0  ;;  %vm13169_vm6 = vnez %v12945_v47  ;;  %vm13172_vm5 = vcmp.ne.s16.totalorder %v13134_v20, 0  ;;  %v13173_v44 = vld [vmem:[#allocation57_spill] sm:$0xff]  ;;  %8301 = vmatpush3.bf16.msra.mxu0 %v10662_v15 }
 0x1da   : > { %v7221_v25 = vcombine.low %v13166_v13, %v13164_v6  ;;  %v13171_v53 = vsel %vm13169_vm6, %v13170_v12, 0  ;;  %v2880_v5 = vsel %vm13172_vm5, %v2396_v49, 0  ;;  %v2881_v41 = vsel %vm10851_vm0, %v2397_v19, 0  ;;  %v2400_v13 = vld [vmem:[#allocation2 + $0x58] sm:$0xf] }
 0x1db   : > { %v7222_v39 = vcombine.low %v13171_v53, %v13168_v40  ;;  %vm13174_vm11 = vsmask.f32 4352  ;;  %vm13175_vm3 = vsmask.f32 7424  ;;  %v3051_v7 = vor.u32 %v3049_v22, %v3047_v8 }
 0x1dc   : > { %v3585_v34 = vsel %vm13174_vm11, %v3575_v57, %v3584_v28  ;;  %v3048_v4 = vsel %vm13175_vm3, %v3043_v14, %v3047_v8  ;;  %v3587_v60 = vshrl.u32 %v7221_v25, 16  ;;  %v13177_v2 = vsel %vm9577_vm4, %v9563_v52, %v13176_v54  ;;  %v2399_v57 = vld [vmem:[#allocation2 + $0x54] sm:$0xf] }
 0x1dd   : > { %vm10928_vm5 = vcmp.ne.s16.totalorder %v13177_v2, 0  ;;  %v13178_v49 = vmov 0  ;;  %v3055_v16 = vrot.slane %v3053_v1, 1  ;;  %v3590_v43 = vshll.u32 %v7221_v25, 16  ;;  %8181 = vmatmul.mubr.bf16.gmra.mxu1 %v3048_v4  ;;  %v2401_v2 = vld [vmem:[#allocation2 + $0x5c] sm:$0xf]  ;;  %8224 = vmatprep.mubr.bf16.mxu0 %v3585_v34 }
 0x1de   : > { %v13179_v49 = vsel %vm10928_vm5, 4294967295, %v13178_v49  ;;  %v3596_v19 = vshrl.u32 %v7222_v39, 16  ;;  %v3599_v24 = vshll.u32 %v7222_v39, 16  ;;  %v3589_v14 = vrot.slane %v3587_v60, 3  ;;  %v13183_v25 = vld [vmem:[#allocation58_spill] sm:$0xff]  ;;  %v13184_v1 = vld [vmem:[#allocation56_spill] sm:$0xff] }
 0x1df   : > { %13180 = vst [vmem:[#allocation64_spill] sm:$0xff] %v13179_v49  ;;  %v7200_v22 = vcombine.low %v2880_v5, %v2881_v41  ;;  %v3057_v8 = vshrl.u32 %v7199_v55, 16  ;;  %vm13181_vm3 = vcmp.ne.s16.totalorder %v13141_v58, 0  ;;  %vm13182_vm11 = vsmask.f32 7424  ;;  %v8718_v5 = vld [vmem:[#allocation8 + $0x170] sm:$0xff]  }
 0x1e0   : > { %v2882_v6 = vsel %vm13181_vm3, %v2398_v59, 0  ;;  %v3056_v40 = vsel %vm13182_vm11, %v3051_v7, %v3055_v16  ;;  %v3592_v12 = vrot.slane %v3590_v43, 4  ;;  %v3598_v53 = vrot.slane %v3596_v19, 3  ;;  %v8719_v4 = vld [vmem:[#allocation8 + $0x108] sm:$0xff]   ;;  %v13190_v19 = vld [vmem:[#allocation78_spill] sm:$0xff]  ;;  %8302 = vmatprep.subr.bf16.mxu0 %v8718_v5 }
 0x1e1   : > { %v3601_v54 = vrot.slane %v3599_v24, 4  ;;  %v13185_v39 = vsel %vm9577_vm4, %v9563_v52, %v13184_v1  ;;  %v13186_v55 = vmov 0  ;;  %8184 = vmatprep.mubr.bf16.mxu1 %v3056_v40  ;;  %v3059_v30 = vor.u32 %v3057_v8, %v3055_v16  ;;  %v13192_v1 = vld [vmem:[#allocation68_spill] sm:$0xff]  ;;  %8264 = vmatprep.subr.bf16.mxu1 %v8719_v4 }
 0x1e2   : > { %vm10941_vm0 = vcmp.ne.s16.totalorder %v13185_v39, 0  ;;  %v3061_v41 = vshll.u32 %v7200_v22, 16  ;;  %v2883_v59 = vsel %vm10879_vm9, %v2399_v57, 0  ;;  %v3065_v3 = vshrl.u32 %v7200_v22, 16  ;;  %v13194_v39 = vld [vmem:[#allocation73_spill] sm:$0xff]  ;;  %v13198_v22 = vld [vmem:[#allocation70_spill] sm:$0xff]  ;;  %8303 = vmatpush3.bf16.msra.mxu0 %v8718_v5  ;;  %8265 = vmatpush3.bf16.msra.mxu1 %v8719_v4 }
 0x1e3   : > { %v13187_v55 = vsel %vm10941_vm0, 4294967295, %v13186_v55  ;;  %v3593_v7 = vor.u32 %v3592_v12, %v3589_v14  ;;  %v3602_v60 = vor.u32 %v3601_v54, %v3598_v53  ;;  %v7201_v43 = vcombine.low %v2882_v6, %v2883_v59  ;;  %v13200_v14 = vld [vmem:[#allocation79_spill] sm:$0xff]  ;;  %v2405_v5 = vld [vmem:[#allocation2 + $0x6c] sm:$0xf] }
 0x1e4   : > { %13188 = vst [vmem:[#allocation48_spill] sm:$0xff] %v13187_v55  ;;  %vm13189_vm3 = vnez %v12958_v11  ;;  %vm13193_vm11 = vnez %v13192_v1  ;;  %v3063_v16 = vrot.slane %v3061_v41, 1  ;;  %vm13196_vm13 = vnez %v12967_v48  ;;  %v13203_v12 = vld [vmem:[#allocation59_spill] sm:$0xff]  ;;  %v2402_v41 = vld [vmem:[#allocation2 + $0x60] sm:$0xf] }
 0x1e5   : > { %v13191_v24 = vsel %vm13189_vm3, %v13190_v19, 0  ;;  %v13195_v58 = vsel %vm13193_vm11, %v13194_v39, 0  ;;  %v13197_v57 = vsel %vm13196_vm13, %v10426_v26, 0  ;;  %vm13199_vm9 = vnez %v13198_v22  ;;  %v2403_v1 = vld [vmem:[#allocation2 + $0x64] sm:$0xf] }
 0x1e6   : > { %v7223_v34 = vcombine.low %v13195_v58, %v13191_v24  ;;  %v13201_v8 = vsel %vm13199_vm9, %v13200_v14, 0  ;;  %vm13202_vm1 = vcmp.ne.s16.totalorder %v13155_v27, 0  ;;  %v2885_v40 = vsel %vm10894_vm10, %v2401_v2, 0  ;;  %v13207_v2 = vld [vmem:[#allocation60_spill] sm:$0xff]  ;;  %v8720_v14 = vld [vmem:[#allocation8 + $0x168] sm:$0xff]  }
 0x1e7   : > { %v7224_v6 = vcombine.low %v13201_v8, %v13197_v57  ;;  %v2884_v11 = vsel %vm13202_vm1, %v2400_v13, 0  ;;  %vm13204_vm11 = vsmask.f32 4352  ;;  %v3069_v26 = vshll.u32 %v7201_v43, 16  ;;  %v13223_v27 = vld [vmem:[#allocation72_spill] sm:$0xff]  ;;  %8304 = vmatprep.subr.bf16.mxu0 %v8720_v14 }
 0x1e8   : > { %v3594_v58 = vsel %vm13204_vm11, %v3584_v28, %v3593_v7  ;;  %vm13205_vm6 = vmmov %vm13204_vm11  ;;  %v3605_v54 = vshrl.u32 %v7223_v34, 16  ;;  %vm13206_vm13 = vsmask.f32 7424  ;;  %v3067_v19 = vor.u32 %v3065_v3, %v3063_v16  ;;  %8305 = vmatpush3.bf16.msra.mxu0 %v8720_v14 }
 0x1e9   : > { %v3603_v53 = vsel %vm13205_vm6, %v3593_v7, %v3602_v60  ;;  %v3064_v59 = vsel %vm13206_vm13, %v3059_v30, %v3063_v16  ;;  %v3608_v13 = vshll.u32 %v7223_v34, 16  ;;  %v3614_v24 = vshrl.u32 %v7224_v6, 16  ;;  %v8722_v30 = vld [vmem:[#allocation8 + $0x100] sm:$0xff]   ;;  %8225 = vmatmul.mubr.bf16.gmra.mxu0 %v3594_v58  ;;  %vm13218_vm3 = vmmov %vm13206_vm13 }
 0x1ea   : > { %v13208_v15 = vsel %vm9577_vm4, %v9563_v52, %v13207_v2  ;;  %v13209_v28 = vmov 0  ;;  %v3071_v7 = vrot.slane %v3069_v26, 1  ;;  %v3607_v39 = vrot.slane %v3605_v54, 3  ;;  %8185 = vmatmul.mubr.bf16.gmra.mxu1 %v3064_v59  ;;  %v13213_v2 = vld [vmem:[#allocation63_spill] sm:$0xff]  ;;  %8228 = vmatprep.mubr.bf16.mxu0 %v3603_v53 }
 0x1eb   : > { %vm10977_vm1 = vcmp.ne.s16.totalorder %v13208_v15, 0  ;;  %v3617_v38 = vshll.u32 %v7224_v6, 16  ;;  %v7202_v57 = vcombine.low %v2884_v11, %v2885_v40  ;;  %v3610_v3 = vrot.slane %v3608_v13, 4  ;;  %v10996_v15 = vld [vmem:[#allocation8 + $0x1b8] sm:$0xff]   ;;  %8266 = vmatprep.subr.bf16.mxu1 %v8722_v30 }
 0x1ec   : > { %v13210_v28 = vsel %vm10977_vm1, 4294967295, %v13209_v28  ;;  %v3616_v34 = vrot.slane %v3614_v24, 3  ;;  %v3073_v16 = vshrl.u32 %v7201_v43, 16  ;;  %vm13212_vm6 = vcmp.ne.s16.totalorder %v13173_v44, 0  ;;  %v13219_v44 = vld [vmem:[#allocation74_spill] sm:$0xff]  ;;  %v13229_v53 = vld [vmem:[#allocation83_spill] sm:$0xff]  ;;  %8267 = vmatpush3.bf16.msra.mxu1 %v8722_v30 }
 0x1ed   : > { %13211 = vst [vmem:[#allocation53_spill] sm:$0xff] %v13210_v28  ;;  %v2886_v8 = vsel %vm13212_vm6, %v2402_v41, 0  ;;  %v13214_v26 = vsel %vm9577_vm4, %v9563_v52, %v10136_v9  ;;  %v13215_v6 = vmov 0  ;;  %v3072_v11 = vsel %vm13218_vm3, %v3067_v19, %v3071_v7  ;;  %v8721_v41 = vld [vmem:[#allocation8 + $0x160] sm:$0xff]   ;;  %v13221_v19 = vld [vmem:[#allocation81_spill] sm:$0xff]  ;;  %8348 = vmatprep.subr.bf16.mxu1 %v10996_v15 }
 0x1ee   : > { %vm10989_vm11 = vcmp.ne.s16.totalorder %v13214_v26, 0  ;;  %v3619_v43 = vrot.slane %v3617_v38, 4  ;;  %v3077_v40 = vshll.u32 %v7202_v57, 16  ;;  %v2887_v54 = vsel %vm10928_vm5, %v2403_v1, 0  ;;  %8188 = vmatprep.mubr.bf16.mxu1 %v3072_v11  ;;  %v13225_v1 = vld [vmem:[#allocation80_spill] sm:$0xff]  ;;  %8306 = vmatprep.subr.bf16.mxu0 %v8721_v41 }
 0x1ef   : > { %v13216_v6 = vsel %vm10989_vm11, 4294967295, %v13215_v6  ;;  %v3611_v59 = vor.u32 %v3610_v3, %v3607_v39  ;;  %v3075_v13 = vor.u32 %v3073_v16, %v3071_v7  ;;  %v7203_v9 = vcombine.low %v2886_v8, %v2887_v54  ;;  %v13231_v7 = vld [vmem:[#allocation75_spill] sm:$0xff]  ;;  %v2406_v8 = vld [vmem:[#allocation2 + $0x70] sm:$0xf]  ;;  %8307 = vmatpush3.bf16.msra.mxu0 %v8721_v41  ;;  %v13246_v41 = vld [vmem:[#allocation84_spill] sm:$0xff] }
 0x1f0   : > { %13217 = vst [vmem:[#allocation71_spill] sm:$0xff] %v13216_v6  ;;  %v3081_v24 = vshrl.u32 %v7202_v57, 16  ;;  %v3620_v26 = vor.u32 %v3619_v43, %v3616_v34  ;;  %v3079_v58 = vrot.slane %v3077_v40, 1  ;;  %vm13220_vm3 = vnez %v13219_v44  ;;  %v13233_v57 = vld [vmem:[#allocation26_spill] sm:$0xff] }
 0x1f1   : > { %v13222_v38 = vsel %vm13220_vm3, %v13221_v19, 0  ;;  %vm13224_vm6 = vnez %v13223_v27  ;;  %vm13228_vm13 = vnez %v13227_v56  ;;  %vm13232_vm5 = vnez %v13231_v7  ;;  %v13377_v6 = vld [vmem:[#allocation54_spill] sm:$0xff] }
 0x1f2   : > { %v13226_v49 = vsel %vm13224_vm6, %v13225_v1, 0  ;;  %v13230_v39 = vsel %vm13228_vm13, %v13229_v53, 0  ;;  %v13234_v3 = vsel %vm13232_vm5, %v13233_v57, 0  ;;  %vm13235_vm10 = vsmask.f32 4352  ;;  %v8724_v57 = vld [vmem:[#allocation8 + $0x158] sm:$0xff]  }
 0x1f3   : > { %v7225_v4 = vcombine.low %v13226_v49, %v13222_v38  ;;  %v7226_v16 = vcombine.low %v13234_v3, %v13230_v39  ;;  %v3612_v44 = vsel %vm13235_vm10, %v3602_v60, %v3611_v59  ;;  %v3085_v34 = vshll.u32 %v7203_v9, 16  ;;  %vm13237_vm6 = vmmov %vm13235_vm10  ;;  %v2407_v53 = vld [vmem:[#allocation2 + $0x74] sm:$0xf]  ;;  %8308 = vmatprep.subr.bf16.mxu0 %v8724_v57 }
 0x1f4   : > { %vm13236_vm3 = vcmp.ne.s16.totalorder %v13183_v25, 0  ;;  %v2889_v49 = vsel %vm10941_vm0, %v2405_v5, 0  ;;  %v3621_v11 = vsel %vm13237_vm6, %v3611_v59, %v3620_v26  ;;  %vm13238_vm13 = vsmask.f32 7424  ;;  %v2408_v59 = vld [vmem:[#allocation2 + $0x78] sm:$0xf]  ;;  %8229 = vmatmul.mubr.bf16.gmra.mxu0 %v3612_v44 }
 0x1f5   : > { %v2888_v27 = vsel %vm13236_vm3, %v2404_v61, 0  ;;  %v3080_v43 = vsel %vm13238_vm13, %v3075_v13, %v3079_v58  ;;  %v3083_v40 = vor.u32 %v3081_v24, %v3079_v58  ;;  %v3623_v54 = vshrl.u32 %v7225_v4, 16  ;;  %8232 = vmatprep.mubr.bf16.mxu0 %v3621_v11  ;;  %8309 = vmatpush3.bf16.msra.mxu0 %v8724_v57 }
 0x1f6   : > { %v3087_v19 = vrot.slane %v3085_v34, 1  ;;  %v3626_v38 = vshll.u32 %v7225_v4, 16  ;;  %v3632_v60 = vshrl.u32 %v7226_v16, 16  ;;  %v3635_v1 = vshll.u32 %v7226_v16, 16  ;;  %8189 = vmatmul.mubr.bf16.gmra.mxu1 %v3080_v43  ;;  %v2409_v4 = vld [vmem:[#allocation2 + $0x7c] sm:$0xf] }
 0x1f7   : > { %v3625_v61 = vrot.slane %v3623_v54, 3  ;;  %v7204_v39 = vcombine.low %v2888_v27, %v2889_v49  ;;  %v3089_v5 = vshrl.u32 %v7203_v9, 16  ;;  %vm13239_vm10 = vcmp.ne.s16.totalorder %v13203_v12, 0  ;;  %v8725_v27 = vld [vmem:[#allocation8 + $0x150] sm:$0xff]   ;;  %v13240_v54 = vld [vmem:[#allocation19_spill] sm:$0xff] }
 0x1f8   : > { %v2890_v14 = vsel %vm13239_vm10, %v2406_v8, 0  ;;  %v3088_v13 = vsel %vm13238_vm13, %v3083_v40, %v3087_v19  ;;  %v3628_v24 = vrot.slane %v3626_v38, 4  ;;  %v3634_v30 = vrot.slane %v3632_v60, 3  ;;  %v13242_v40 = vld [vmem:[#allocation85_spill] sm:$0xff]  ;;  %v13244_v60 = vld [vmem:[#allocation18_spill] sm:$0xff]  ;;  %8310 = vmatprep.subr.bf16.mxu0 %v8725_v27 }
 0x1f9   : > { %v3637_v58 = vrot.slane %v3635_v1, 4  ;;  %8192 = vmatprep.mubr.bf16.mxu1 %v3088_v13  ;;  %v3091_v3 = vor.u32 %v3089_v5, %v3087_v19  ;;  %v3093_v16 = vshll.u32 %v7204_v39, 16  ;;  %v2891_v9 = vsel %vm10977_vm1, %v2407_v53, 0  ;;  %8311 = vmatpush3.bf16.msra.mxu0 %v8725_v27 }
 0x1fa   : > { %v3097_v34 = vshrl.u32 %v7204_v39, 16  ;;  %v3629_v49 = vor.u32 %v3628_v24, %v3625_v61  ;;  %v7205_v43 = vcombine.low %v2890_v14, %v2891_v9  ;;  %vm13241_vm3 = vnez %v13240_v54 }
 0x1fb   : > { %v3638_v8 = vor.u32 %v3637_v58, %v3634_v30  ;;  %v13243_v38 = vsel %vm13241_vm3, %v13242_v40, 0  ;;  %vm13245_vm6 = vnez %v13244_v60  ;;  %v3095_v19 = vrot.slane %v3093_v16, 1 }
 0x1fc   : > { %v13247_v44 = vsel %vm13245_vm6, %v13246_v41, 0  ;;  %v13248_v53 = vsel %vm10480_vm14, %v10623_v51, 0  ;;  %vm13249_vm10 = vnez %v13005_v36  ;;  %vm13251_vm13 = vcmp.ne.s16.totalorder %v13213_v2, 0 }
 0x1fd   : > { %v7227_v1 = vcombine.low %v13247_v44, %v13243_v38  ;;  %v13250_v11 = vsel %vm13249_vm10, %v10592_v33, 0  ;;  %v2892_v39 = vsel %vm13251_vm13, %v2408_v59, 0  ;;  %v2893_v5 = vsel %vm10989_vm11, %v2409_v4, 0  ;;  %v2410_v38 = vld [vmem:[#allocation2 + $0x80] sm:$0xf]  ;;  %v8729_v4 = vld [vmem:[#allocation8 + $0x148] sm:$0xff]  }
 0x1fe   : > { %v7228_v61 = vcombine.low %v13250_v11, %v13248_v53  ;;  %vm13252_vm3 = vsmask.f32 4352  ;;  %v3101_v24 = vshll.u32 %v7205_v43, 16  ;;  %vm13254_vm1 = vsmask.f32 7424  ;;  %v13255_v44 = vld [vmem:[#allocation62_spill] sm:$0xff]  ;;  %8312 = vmatprep.subr.bf16.mxu0 %v8729_v4 }
 0x1ff   : > { %v3630_v14 = vsel %vm13252_vm3, %v3620_v26, %v3629_v49  ;;  %vm13253_vm6 = vmmov %vm13252_vm3  ;;  %v3641_v30 = vshrl.u32 %v7227_v1, 16  ;;  %v3096_v51 = vsel %vm13254_vm1, %v3091_v3, %v3095_v19  ;;  %v3099_v58 = vor.u32 %v3097_v34, %v3095_v19  ;;  %8313 = vmatpush3.bf16.msra.mxu0 %v8729_v4  ;;  %v13282_v4 = vld [vmem:[#allocation94_spill] sm:$0xff] }
 0x200   : > { %v3639_v13 = vsel %vm13253_vm6, %v3629_v49, %v3638_v8  ;;  %v3644_v16 = vshll.u32 %v7227_v1, 16  ;;  %v3650_v33 = vshrl.u32 %v7228_v61, 16  ;;  %v3103_v9 = vrot.slane %v3101_v24, 1  ;;  %8193 = vmatmul.mubr.bf16.gmra.mxu1 %v3096_v51  ;;  %vm13257_vm13 = vmmov %vm13254_vm1  ;;  %8233 = vmatmul.mubr.bf16.gmra.mxu0 %v3630_v14 }
 0x201   : > { %v3643_v54 = vrot.slane %v3641_v30, 3  ;;  %v3653_v59 = vshll.u32 %v7228_v61, 16  ;;  %v7206_v40 = vcombine.low %v2892_v39, %v2893_v5  ;;  %v3105_v26 = vshrl.u32 %v7205_v43, 16  ;;  %v8730_v39 = vld [vmem:[#allocation8 + $0x140] sm:$0xff]   ;;  %8236 = vmatprep.mubr.bf16.mxu0 %v3639_v13 }
 0x202   : > { %v3646_v60 = vrot.slane %v3644_v16, 4  ;;  %v3652_v41 = vrot.slane %v3650_v33, 3  ;;  %v13256_v49 = vshrl.u32 %v13255_v44, 16  ;;  %v3104_v57 = vsel %vm13257_vm13, %v3099_v58, %v3103_v9  ;;  %v2411_v30 = vld [vmem:[#allocation2 + $0x84] sm:$0xf]  ;;  %v13260_v16 = vld [vmem:[#allocation89_spill] sm:$0xff]  ;;  %8314 = vmatprep.subr.bf16.mxu0 %v8730_v39 }
 0x203   : > { %v3655_v3 = vrot.slane %v3653_v59, 4  ;;  %v3109_v34 = vshll.u32 %v7206_v40, 16  ;;  %vm12733_vm1 = vcmp.ne.s16.totalorder %v10636_v46, 0  ;;  %8196 = vmatprep.mubr.bf16.mxu1 %v3104_v57  ;;  %v3107_v19 = vor.u32 %v3105_v26, %v3103_v9  ;;  %v13263_v33 = vld [vmem:[#allocation87_spill] sm:$0xff]  ;;  %v13270_v26 = vld [vmem:[#allocation90_spill] sm:$0xff]  ;;  %8315 = vmatpush3.bf16.msra.mxu0 %v8730_v39 }
 0x204   : > { %v2825_v53 = vrot.slane %v13256_v49, 7  ;;  %v3647_v1 = vor.u32 %v3646_v60, %v3643_v54  ;;  %v13258_v11 = vshll.u32 %v13255_v44, 16  ;;  %v2894_v43 = vsel %vm12733_vm1, %v2410_v38, 0  ;;  %v13266_v60 = vld [vmem:[#allocation92_spill] sm:$0xff]  ;;  %v13294_v39 = vld [vmem:[#allocation95_spill] sm:$0xff] }
 0x205   : > { %v3656_v5 = vor.u32 %v3655_v3, %v3652_v41  ;;  %v3111_v24 = vrot.slane %v3109_v34, 1  ;;  %v3113_v51 = vshrl.u32 %v7206_v40, 16  ;;  %v13261_v27 = vsel %vm10529_vm8, %v13260_v16, 0  ;;  %v13268_v41 = vld [vmem:[#allocation22_spill] sm:$0xff]  ;;  %vm13272_vm8 = vmmov %vm13252_vm3  ;;  %v13301_v46 = vld [vmem:[#allocation23_spill] sm:$0xff] }
 0x206   : > { %v2828_v61 = vor.u32 %v13258_v11, %v2825_v53  ;;  %v13264_v9 = vsel %vm10517_vm7, %v13263_v33, 0  ;;  %v3648_v59 = vsel %vm13252_vm3, %v3638_v8, %v3647_v1  ;;  %v13267_v40 = vsel %vm10570_vm2, %v13266_v60, 0  ;;  %vm13273_vm7 = vmmov %vm13257_vm13  ;;  %v13284_v33 = vld [vmem:[#allocation25_spill] sm:$0xff]  ;;  %v4332_v38 = vld [vmem:[#allocation2 + $0x5c] sm:$0xf] }
 0x207   : > { %v7229_v54 = vcombine.low %v13264_v9, %v13261_v27  ;;  %vm13269_vm6 = vnez %v13268_v41  ;;  %v2830_v57 = vrot.slane %v2825_v53, 4  ;;  %v3657_v3 = vsel %vm13272_vm8, %v3647_v1, %v3656_v5  ;;  %v11086_v27 = vld [vmem:[#allocation8 + $0x1f8] sm:$0xff]   ;;  %v11088_v53 = vld [vmem:[#allocation2 + $0x8c] sm:$0xf] }
 0x208   : > { %v2829_v13 = vsel %vm9577_vm4, %v9563_v52, %v2828_v61  ;;  %v13271_v44 = vsel %vm13269_vm6, %v13270_v26, 0  ;;  %v3112_v34 = vsel %vm13273_vm7, %v3107_v19, %v3111_v24  ;;  %v13274_v8 = vmov 0  ;;  %v2412_v52 = vld [vmem:[#allocation2 + $0x88] sm:$0x1]  ;;  %8237 = vmatmul.mubr.bf16.gmra.mxu0 %v3648_v59  ;;  %8396 = vmatprep.subr.bf16.mxu0 %v11086_v27 }
 0x209   : > { %v7230_v49 = vcombine.low %v13271_v44, %v13267_v40  ;;  %vm11080_vm13 = vcmp.ne.s16.totalorder %v2829_v13, 0  ;;  %v3115_v18 = vor.u32 %v3113_v51, %v3111_v24  ;;  %v3659_v61 = vshrl.u32 %v7229_v54, 16  ;;  %v13280_v24 = vld [vmem:[#allocation30_spill] sm:$0xff]  ;;  %8197 = vmatmul.mubr.bf16.gmra.mxu1 %v3112_v34  ;;  %8240 = vmatprep.mubr.bf16.mxu0 %v3657_v3 }
 0x20a   : > { %v13275_v8 = vsel %vm11080_vm13, 4294967295, %v13274_v8  ;;  %v2895_v11 = vsel %vm11080_vm13, %v2411_v30, 0  ;;  %v3662_v58 = vshll.u32 %v7229_v54, 16  ;;  %vm11090_vm4 = vcmp.ne.s16.totalorder %v2830_v57, 0  ;;  %v13286_v30 = vld [vmem:[#allocation93_spill] sm:$0xff] }
 0x20b   : > { %13276 = vst [vmem:[#allocation55_spill] sm:$0xff] %v13275_v8  ;;  %v3668_v16 = vshrl.u32 %v7230_v49, 16  ;;  %v7207_v1 = vcombine.low %v2894_v43, %v2895_v11  ;;  %v3671_v19 = vshll.u32 %v7230_v49, 16  ;;  %v13277_v14 = vmov 0  ;;  %v13288_v11 = vld [vmem:[#allocation17_spill] sm:$0xff] }
 0x20c   : > { %v13278_v14 = vsel %vm11090_vm4, 4294967295, %v13277_v14  ;;  %vm13281_vm3 = vnez %v13280_v24  ;;  %vm13285_vm8 = vnez %v13284_v33  ;;  %v3661_v13 = vrot.slane %v3659_v61, 3  ;;  %v4316_v8 = vld [vmem:[#allocation2 + $0x1c] sm:$0xf] }
 0x20d   : > { %13279 = vst [vmem:[#allocation56_spill] sm:$0xff] %v13278_v14  ;;  %v13283_v51 = vsel %vm13281_vm3, %v13282_v4, 0  ;;  %v13287_v9 = vsel %vm13285_vm8, %v13286_v30, 0  ;;  %v3664_v60 = vrot.slane %v3662_v58, 4  ;;  %v3670_v40 = vrot.slane %v3668_v16, 3  ;;  %v13292_v16 = vld [vmem:[#allocation29_spill] sm:$0xff] }
 0x20e   : > { %v7231_v54 = vcombine.low %v13287_v9, %v13283_v51  ;;  %v2896_v43 = vsel %vm11090_vm4, %v2412_v52, 0  ;;  %v3117_v26 = vshll.u32 %v7207_v1, 16  ;;  %v3673_v44 = vrot.slane %v3671_v19, 4  ;;  %v4315_v14 = vld [vmem:[#allocation2 + $0x18] sm:$0xf] }
 0x20f   : > { %v7208_v49 = vcombine.low %v2896_v43, %v2896_v43  ;;  %v3121_v57 = vshrl.u32 %v7207_v1, 16  ;;  %vm13289_vm7 = vcmp.ne.s16.totalorder %v13288_v11, 0  ;;  %v3665_v4 = vor.u32 %v3664_v60, %v3661_v13  ;;  %v4314_v13 = vld [vmem:[#allocation2 + $0x14] sm:$0xf]  ;;  %v11117_v60 = vld [vmem:[#allocation2 + $0x90] sm:$0xf] }
 0x210   : > { %v3451_v24 = vsel %vm13289_vm7, %v11088_v53, 0  ;;  %v3677_v33 = vshrl.u32 %v7231_v54, 16  ;;  %v3680_v51 = vshll.u32 %v7231_v54, 16  ;;  %v3119_v61 = vrot.slane %v3117_v26, 1  ;;  %v4313_v54 = vld [vmem:[#allocation2 + $0x10] sm:$0xf] }
 0x211   : > { %v3674_v58 = vor.u32 %v3673_v44, %v3670_v40  ;;  %v3125_v52 = vshll.u32 %v7208_v49, 16  ;;  %vm13290_vm3 = vnez %v13064_v37  ;;  %vm13293_vm8 = vnez %v13292_v16  ;;  %13297 = vst [vmem:[#allocation78_spill] sm:$0xff] %v11117_v60  ;;  %v13300_v44 = vld [vmem:[#allocation65_spill] sm:$0xff] }
 0x212   : > { %v13291_v34 = vsel %vm13290_vm3, %v10741_v35, 0  ;;  %v13295_v1 = vsel %vm13293_vm8, %v13294_v39, 0  ;;  %vm13296_vm7 = vsmask.f32 4352  ;;  %v3679_v30 = vrot.slane %v3677_v33, 3 }
 0x213   : > { %v7232_v19 = vcombine.low %v13295_v1, %v13291_v34  ;;  %v3666_v59 = vsel %vm13296_vm7, %v3656_v5, %v3665_v4  ;;  %v3682_v9 = vrot.slane %v3680_v51, 4  ;;  %vm13298_vm1 = vsmask.f32 7424  ;;  %vm13299_vm4 = vmmov %vm13296_vm7  ;;  %v11121_v35 = vld [vmem:[#allocation2 + $0x18] sm:$0xf] }
 0x214   : > { %v3120_v3 = vsel %vm13298_vm1, %v3115_v18, %v3119_v61  ;;  %v3675_v40 = vsel %vm13299_vm4, %v3665_v4, %v3674_v58  ;;  %v3123_v43 = vor.u32 %v3121_v57, %v3119_v61  ;;  %v3127_v26 = vrot.slane %v3125_v52, 1  ;;  %v8792_v33 = vld [vmem:[#allocation2 + $0x10] sm:$0xf]  ;;  %v8793_v51 = vld [vmem:[#allocation2 + $0x14] sm:$0xf]  ;;  %v13303_v4 = vld [vmem:[#allocation24_spill] sm:$0xff]  ;;  %8241 = vmatmul.mubr.bf16.gmra.mxu0 %v3666_v59 }
 0x215   : > { %v5053_v49 = vshll.u32 %v13300_v44, 16  ;;  %8200 = vmatprep.mubr.bf16.mxu1 %v3120_v3  ;;  %v3683_v34 = vor.u32 %v3682_v9, %v3679_v30  ;;  %v3686_v39 = vshrl.u32 %v7232_v19, 16  ;;  %v3689_v5 = vshll.u32 %v7232_v19, 16  ;;  %v11128_v61 = vld [vmem:[#allocation2 + $0x1c] sm:$0xf]  ;;  %8244 = vmatprep.mubr.bf16.mxu0 %v3675_v40  ;;  %v13327_v40 = vld [vmem:[#allocation34_spill] sm:$0xff] }
 0x216   : > { %v7242_v1 = vcombine.low %v8792_v33, %v8793_v51  ;;  %v7233_v11 = vcombine.low %v3451_v24, %v3451_v24  ;;  %vm13302_vm1 = vcmp.ne.s16.totalorder %v13301_v46, 0  ;;  %vm13304_vm4 = vnez %v13303_v4  ;;  %v11130_v52 = vld [vmem:[#allocation2 + $0x2c] sm:$0xf]  ;;  %v11142_v33 = vld [vmem:[#allocation2 + $0x3c] sm:$0xf]  ;;  %v13325_v46 = vld [vmem:[#allocation36_spill] sm:$0xff] }
 0x217   : > { %v4346_v18 = vsel %vm13302_vm1, %v4313_v54, 0  ;;  %v4347_v57 = vsel %vm13304_vm4, %v4314_v13, 0  ;;  %13305 = vst [vmem:[#allocation68_spill] sm:$0xff] %v11130_v52  ;;  %vm13306_vm7 = vsmask.f32 7424  ;;  %v3688_v9 = vrot.slane %v3686_v39, 3 }
 0x218   : > { %v3128_v30 = vsel %vm13306_vm7, %v3123_v43, %v3127_v26  ;;  %vm13307_vm13 = vsmask.f32 4352  ;;  %v3691_v3 = vrot.slane %v3689_v5, 4  ;;  %v11140_v13 = vld [vmem:[#allocation2 + $0x30] sm:$0xf]  ;;  %13309 = vst [vmem:[#allocation70_spill] sm:$0xff] %v11142_v33  ;;  %v11150_v5 = vcombine.low %v4346_v18, %v4347_v57 }
 0x219   : > { %v3684_v19 = vsel %vm13307_vm13, %v3674_v58, %v3683_v34  ;;  %8201 = vmatmul.mubr.bf16.gmra.mxu1 %v3128_v30  ;;  %13308 = vst [vmem:[#allocation73_spill] sm:$0xff] %v11140_v13  ;;  %vm13310_vm13 = vcmp.ne.s16.totalorder %v13073_v0, 0  ;;  %v4349_v39 = vsel %vm10706_vm12, %v4316_v8, 0  ;;  %vm13312_vm1 = vnez %v12817_v50  ;;  %v4318_v54 = vld [vmem:[#allocation2 + $0x24] sm:$0xf]  ;;  %v8731_v0 = vld [vmem:[#allocation8 + $0x1b0] sm:$0xff]  }
 0x21a   : > { %8268 = vmatprep.mubr.bf16.mxu1 %v7242_v1  ;;  %v11144_v43 = vor.u32 %v3691_v3, %v3688_v9  ;;  %v4348_v58 = vsel %vm13310_vm13, %v4315_v14, 0  ;;  %v13314_v59 = vshrl.u32 %v13300_v44, 16  ;;  %v11162_v9 = vrot.slane %v5053_v49, 4  ;;  %v11164_v14 = vld [vmem:[#allocation2 + $0x40] sm:$0xf] }
 0x21b   : > { %13317 = vst [vmem:[#allocation74_spill] sm:$0xff] %v11164_v14  ;;  %vm13318_vm13 = vsmask.f32 4352  ;;  %v3695_v18 = vshrl.u32 %v7233_v11, 16  ;;  %v3698_v57 = vshll.u32 %v7233_v11, 16  ;;  %vm13319_vm12 = vnez %v12934_v21 }
 0x21c   : > { %v11160_v1 = vrot.slane %v13314_v59, 3  ;;  %13316 = vst [vmem:[#allocation60_spill] sm:$0xff] %v11162_v9  ;;  %v3693_v8 = vsel %vm13318_vm13, %v3683_v34, %v11144_v43  ;;  %v4317_v3 = vld [vmem:[#allocation2 + $0x20] sm:$0xf]  ;;  %v11174_v49 = vcombine.low %v4348_v58, %v4349_v39  ;;  %v4319_v59 = vld [vmem:[#allocation2 + $0x28] sm:$0xf]  ;;  %vm13328_vm4 = vnez %v13327_v40  ;;  %8245 = vmatmul.mubr.bf16.gmra.mxu0 %v3684_v19 }
 0x21d   : > { %v4320_v51 = vld [vmem:[#allocation2 + $0x2c] sm:$0xf]  ;;  %v11181_v11 = vld [vmem:[#allocation2 + $0x50] sm:$0xf]  ;;  %v11183_v24 = vld [vmem:[#allocation2 + $0x5c] sm:$0xf]  ;;  %vm13332_vm7 = vnez %v13331_v62  ;;  %8248 = vmatprep.mubr.bf16.mxu0 %v3693_v8  ;;  %vm13351_vm2 = vnez %v13138_v23 }
 0x21e   : > { %13315 = vst [vmem:[#allocation79_spill] sm:$0xff] %v11160_v1  ;;  %v11179_v34 = vld [vmem:[#allocation2 + $0x4c] sm:$0xf]  ;;  %v11185_v26 = vld [vmem:[#allocation2 + $0x60] sm:$0xf]  ;;  %v4481_v30 = vshll.u32 %v11150_v5, 16 }
 0x21f   : > { %13322 = vst [vmem:[#allocation81_spill] sm:$0xff] %v11179_v34  ;;  %v11188_v44 = vld [vmem:[#allocation2 + $0x6c] sm:$0xf]  ;;  %v8794_v58 = vld [vmem:[#allocation2 + $0x1c] sm:$0xf]  ;;  %vm13326_vm13 = vcmp.ne.s16.totalorder %v13325_v46, 0 }
 0x220   : > { %13323 = vst [vmem:[#allocation72_spill] sm:$0xff] %v11188_v44  ;;  %v13324_v39 = vld [vmem:[#allocation97_spill] sm:$0xff]  ;;  %v4350_v60 = vsel %vm13326_vm13, %v4317_v3, 0  ;;  %v4351_v37 = vsel %vm13328_vm4, %v4318_v54, 0  ;;  %v4321_v9 = vld [vmem:[#allocation2 + $0x30] sm:$0xf]  ;;  %vm13339_vm4 = vnez %v13227_v56 }
 0x221   : > { %v7243_v4 = vcombine.low %v13324_v39, %v8794_v58  ;;  %v4322_v1 = vld [vmem:[#allocation2 + $0x34] sm:$0xf]  ;;  %v11195_v33 = vld [vmem:[#allocation2 + $0x70] sm:$0xf]  ;;  %v3697_v47 = vrot.slane %v3695_v18, 3  ;;  %v3700_v14 = vrot.slane %v3698_v57, 4 }
 0x222   : > { %vm13330_vm3 = vcmp.ne.s16.totalorder %v13329_v32, 0  ;;  %v4353_v13 = vsel %vm13332_vm7, %v4320_v51, 0  ;;  %v11204_v3 = vld [vmem:[#allocation2 + $0x7c] sm:$0xf]  ;;  %v8795_v54 = vld [vmem:[#allocation2 + $0x20] sm:$0xf]  ;;  %vm13338_vm7 = vnez %v12967_v48 }
 0x223   : > { %v4352_v52 = vsel %vm13330_vm3, %v4319_v59, 0  ;;  %13333 = vst [vmem:[#allocation80_spill] sm:$0xff] %v11204_v3  ;;  %8269 = vmatmul.mubr.bf16.vlgmr.msra.gmra.mxu1 %v7243_v4  ;;  %v8796_v39 = vld [vmem:[#allocation2 + $0x24] sm:$0xf]  ;;  %v4486_v46 = vshll.u32 %v11174_v49, 16  ;;  %v4483_v57 = vrot.slane %v4481_v30, 1  ;;  %v11208_v59 = vcombine.low %v4350_v60, %v4351_v37 }
 0x224   : > { %v7244_v40 = vcombine.low %v8795_v54, %v8796_v39  ;;  %v4323_v18 = vld [vmem:[#allocation2 + $0x38] sm:$0xf]  ;;  %8349 = vmatpush3.bf16.msra.mxu1 %v10996_v15  ;;  %v13334_v51 = vld [vmem:[#allocation41_spill] sm:$0xff]  ;;  %v13336_v32 = vld [vmem:[#allocation40_spill] sm:$0xff]  ;;  %v11223_v15 = vcombine.low %v4352_v52, %v4353_v13  ;;  %v3701_v54 = vor.u32 %v3700_v14, %v3697_v47  ;;  %v4479_v39 = vshrl.u32 %v11150_v5, 16 }
 0x225   : > { %vm13335_vm3 = vcmp.ne.s16.totalorder %v13334_v51, 0  ;;  %vm13337_vm13 = vnez %v13336_v32  ;;  %v4324_v34 = vld [vmem:[#allocation2 + $0x3c] sm:$0xf]  ;;  %v8734_v60 = vld [vmem:[#allocation8 + $0x1a8] sm:$0xff]   ;;  %8350 = vmatprep.subr.bf16.mxu1 %v8731_v0  ;;  %v4494_v47 = vshll.u32 %v11208_v59, 16 }
 0x226   : > { %v4354_v62 = vsel %vm13335_vm3, %v4321_v9, 0  ;;  %v4355_v58 = vsel %vm13337_vm13, %v4322_v1, 0  ;;  %8272 = vmatprep.mubr.bf16.mxu1 %v7244_v40  ;;  %v11231_v9 = vld [vmem:[#allocation2 + $0x80] sm:$0xf]  ;;  %v13341_v8 = vld [vmem:[#allocation45_spill] sm:$0xff]  ;;  %vm13343_vm13 = vnez %v13111_v29  ;;  %v4484_v19 = vor.u32 %v4483_v57, %v4479_v39 }
 0x227   : > { %13340 = vst [vmem:[#allocation76_spill] sm:$0xff] %v11231_v9  ;;  %v11237_v13 = vcombine.low %v4354_v62, %v4355_v58  ;;  %vm13342_vm3 = vcmp.ne.s16.totalorder %v13341_v8, 0  ;;  %v4357_v30 = vsel %vm13343_vm13, %v4324_v34, 0  ;;  %v4488_v1 = vrot.slane %v4486_v46, 1  ;;  %v4325_v14 = vld [vmem:[#allocation2 + $0x40] sm:$0xf] }
 0x228   : > { %v4356_v40 = vsel %vm13342_vm3, %v4323_v18, 0  ;;  %8351 = vmatpush3.bf16.msra.mxu1 %v8731_v0  ;;  %v4326_v5 = vld [vmem:[#allocation2 + $0x44] sm:$0xf]  ;;  %v8797_v52 = vld [vmem:[#allocation2 + $0x28] sm:$0xf]  ;;  %v4502_v29 = vshll.u32 %v11223_v15, 16  ;;  %vm13346_vm13 = vnez %v13117_v17 }
 0x229   : > { %v8798_v62 = vld [vmem:[#allocation2 + $0x2c] sm:$0xf]  ;;  %v8799_v4 = vld [vmem:[#allocation2 + $0x30] sm:$0xf]  ;;  %v8800_v8 = vld [vmem:[#allocation2 + $0x34] sm:$0xf]  ;;  %8352 = vmatprep.subr.bf16.mxu1 %v8734_v60 }
 0x22a   : > { %v7245_v58 = vcombine.low %v8797_v52, %v8798_v62  ;;  %v7246_v18 = vcombine.low %v8799_v4, %v8800_v8  ;;  %v4327_v34 = vld [vmem:[#allocation2 + $0x48] sm:$0xf]  ;;  %v4328_v46 = vld [vmem:[#allocation2 + $0x4c] sm:$0xf]  ;;  %vm13344_vm3 = vsmask.f32 4352  ;;  %v11257_v62 = vcombine.low %v4356_v40, %v4357_v30 }
 0x22b   : > { %v3702_v0 = vsel %vm13344_vm3, %v11144_v43, %v3701_v54  ;;  %v4490_v57 = vshrl.u32 %v11174_v49, 16  ;;  %v11251_v39 = vld [vmem:[#allocation2 + $0x38] sm:$0xf]  ;;  %v11253_v32 = vld [vmem:[#allocation2 + $0x3c] sm:$0xf]  ;;  %v8737_v4 = vld [vmem:[#allocation8 + $0x1a0] sm:$0xff]  }
 0x22c   : > { %v4329_v8 = vld [vmem:[#allocation2 + $0x50] sm:$0xf]  ;;  %v4330_v37 = vld [vmem:[#allocation2 + $0x54] sm:$0xf]  ;;  %8273 = vmatmul.mubr.bf16.gmra.mxu1 %v7245_v58  ;;  %v11259_v51 = vld [vmem:[#allocation2 + $0x40] sm:$0xf]  ;;  %8249 = vmatmul.mubr.bf16.gmra.mxu0 %v3702_v0 }
 0x22d   : > { %v11261_v3 = vld [vmem:[#allocation2 + $0x44] sm:$0xf]  ;;  %v4510_v49 = vshll.u32 %v11237_v13, 16  ;;  %vm13345_vm3 = vcmp.ne.s16.totalorder %v13113_v45, 0  ;;  %v4359_v30 = vsel %vm13346_vm13, %v4326_v5, 0  ;;  %v4492_v58 = vor.u32 %v4490_v57, %v4488_v1  ;;  %8276 = vmatprep.mubr.bf16.mxu1 %v7246_v18  ;;  %8353 = vmatpush3.bf16.msra.mxu1 %v8734_v60  ;;  %v13352_v57 = vld [vmem:[#allocation51_spill] sm:$0xff] }
 0x22e   : > { %v7248_v43 = vcombine.low %v11259_v51, %v11261_v3  ;;  %v4358_v54 = vsel %vm13345_vm3, %v4325_v14, 0  ;;  %v4331_v40 = vld [vmem:[#allocation2 + $0x58] sm:$0xf]  ;;  %vm13347_vm6 = vsmask.f32 7424  ;;  %v4496_v41 = vrot.slane %v4494_v47, 1  ;;  %8354 = vmatprep.subr.bf16.mxu1 %v8737_v4 }
 0x22f   : > { %v4489_v52 = vsel %vm13347_vm6, %v4484_v19, %v4488_v1  ;;  %v4498_v9 = vshrl.u32 %v11208_v59, 16  ;;  %v4333_v44 = vld [vmem:[#allocation2 + $0x60] sm:$0xf]  ;;  %v4504_v3 = vrot.slane %v4502_v29, 1  ;;  %v4506_v51 = vshrl.u32 %v11223_v15, 16  ;;  %v8740_v59 = vld [vmem:[#allocation8 + $0x198] sm:$0xff]  }
 0x230   : > { %8316 = vmatprep.mubr.bf16.mxu0 %v4489_v52  ;;  %vm13348_vm3 = vcmp.ne.s16.totalorder %v13126_v42, 0  ;;  %vm13349_vm13 = vnez %v13130_v63  ;;  %v4334_v0 = vld [vmem:[#allocation2 + $0x64] sm:$0xf]  ;;  %v4518_v19 = vshll.u32 %v11257_v62, 16  ;;  %v11278_v1 = vcombine.low %v4358_v54, %v4359_v30  ;;  %v4335_v15 = vld [vmem:[#allocation2 + $0x68] sm:$0xf] }
 0x231   : > { %v4360_v14 = vsel %vm13348_vm3, %v4327_v34, 0  ;;  %v4361_v5 = vsel %vm13349_vm13, %v4328_v46, 0  ;;  %vm13350_vm6 = vcmp.ne.s16.totalorder %v13134_v20, 0  ;;  %v4363_v29 = vsel %vm13351_vm2, %v4330_v37, 0  ;;  %v11284_v18 = vld [vmem:[#allocation2 + $0x48] sm:$0xf]  ;;  %8355 = vmatpush3.bf16.msra.mxu1 %v8737_v4 }
 0x232   : > { %v4362_v47 = vsel %vm13350_vm6, %v4329_v8, 0  ;;  %v4512_v60 = vrot.slane %v4510_v49, 1  ;;  %v11286_v34 = vld [vmem:[#allocation2 + $0x4c] sm:$0xf]  ;;  %vm13353_vm3 = vcmp.ne.s16.totalorder %v13352_v57, 0  ;;  %v13354_v54 = vld [vmem:[#allocation44_spill] sm:$0xff]  ;;  %v4500_v8 = vor.u32 %v4498_v9, %v4496_v41  ;;  %8356 = vmatprep.subr.bf16.mxu1 %v8740_v59 }
 0x233   : > { %v4364_v52 = vsel %vm13353_vm3, %v4331_v40, 0  ;;  %vm13355_vm13 = vnez %v13354_v54  ;;  %v4336_v20 = vld [vmem:[#allocation2 + $0x6c] sm:$0xf]  ;;  %v4514_v23 = vshrl.u32 %v11237_v13, 16  ;;  %v11295_v37 = vld [vmem:[#allocation2 + $0x50] sm:$0xf]  ;;  %v11301_v42 = vcombine.low %v4360_v14, %v4361_v5 }
 0x234   : > { %v4365_v30 = vsel %vm13355_vm13, %v4332_v38, 0  ;;  %v11297_v49 = vld [vmem:[#allocation2 + $0x54] sm:$0xf]  ;;  %v11303_v46 = vcombine.low %v4362_v47, %v4363_v29  ;;  %v13356_v40 = vld [vmem:[#allocation52_spill] sm:$0xff]  ;;  %v13360_v57 = vld [vmem:[#allocation57_spill] sm:$0xff]  ;;  %v4520_v45 = vrot.slane %v4518_v19, 1  ;;  %v4508_v29 = vor.u32 %v4506_v51, %v4504_v3 }
 0x235   : > { %vm13357_vm6 = vcmp.ne.s16.totalorder %v13356_v40, 0  ;;  %v13358_v38 = vld [vmem:[#allocation46_spill] sm:$0xff]  ;;  %vm13361_vm13 = vcmp.ne.s16.totalorder %v13360_v57, 0  ;;  %v4526_v36 = vshll.u32 %v11278_v1, 16  ;;  %v11312_v63 = vcombine.low %v4364_v52, %v4365_v30  ;;  %v13362_v4 = vld [vmem:[#allocation64_spill] sm:$0xff]  ;;  %8357 = vmatpush3.bf16.msra.mxu1 %v8740_v59  ;;  %v13386_v31 = vld [vmem:[#allocation73_spill] sm:$0xff] }
 0x236   : > { %v4366_v54 = vsel %vm13357_vm6, %v4333_v44, 0  ;;  %vm13359_vm3 = vnez %v13358_v38  ;;  %v4368_v13 = vsel %vm13361_vm13, %v4335_v15, 0  ;;  %v4337_v17 = vld [vmem:[#allocation2 + $0x70] sm:$0xf]  ;;  %vm13363_vm2 = vnez %v13362_v4  ;;  %v4338_v47 = vld [vmem:[#allocation2 + $0x74] sm:$0xf] }
 0x237   : > { %v4367_v9 = vsel %vm13359_vm3, %v4334_v0, 0  ;;  %v8743_v14 = vld [vmem:[#allocation8 + $0x190] sm:$0xff]   ;;  %v4369_v5 = vsel %vm13363_vm2, %v4336_v20, 0  ;;  %vm13364_vm10 = vsmask.f32 7424  ;;  %v13365_v0 = vcombine.low %v11251_v39, %v11253_v32  ;;  %v13407_v38 = vld [vmem:[#allocation60_spill] sm:$0xff] }
 0x238   : > { %v4497_v44 = vsel %vm13364_vm10, %v4492_v58, %v4496_v41  ;;  %v4516_v15 = vor.u32 %v4514_v23, %v4512_v60  ;;  %v11320_v57 = vcombine.low %v4368_v13, %v4369_v5  ;;  %v8747_v19 = vld [vmem:[#allocation8 + $0x1f0] sm:$0xff]   ;;  %vm13366_vm13 = vmmov %vm13364_vm10  ;;  %v4522_v30 = vshrl.u32 %v11257_v62, 16  ;;  %v11327_v41 = vld [vmem:[#allocation2 + $0x58] sm:$0xf]  ;;  %8358 = vmatprep.subr.bf16.mxu1 %v8743_v14 }
 0x239   : > { %8277 = vmatmul.mubr.bf16.gmra.mxu1 %v13365_v0  ;;  %8317 = vmatmul.mubr.bf16.vlgmr.msra.gmra.mxu0 %v4497_v44  ;;  %v4505_v52 = vsel %vm13366_vm13, %v4500_v8, %v4504_v3  ;;  %v4534_v20 = vshll.u32 %v11301_v42, 16  ;;  %v11325_v4 = vcombine.low %v4366_v54, %v4367_v9  ;;  %v11329_v32 = vld [vmem:[#allocation2 + $0x5c] sm:$0xf]  ;;  %v4542_v39 = vshll.u32 %v11303_v46, 16  ;;  %v8748_v58 = vld [vmem:[#allocation8 + $0x188] sm:$0xff]   ;;  %vm13368_vm6 = vmmov %vm13366_vm13 }
 0x23a   : > { %8280 = vmatprep.mubr.bf16.mxu1 %v7248_v43  ;;  %8320 = vmatprep.mubr.bf16.mxu0 %v4505_v52  ;;  %vm13367_vm10 = vcmp.ne.s16.totalorder %v13183_v25, 0  ;;  %v4371_v62 = vsel %vm10941_vm0, %v4338_v47, 0  ;;  %v4513_v3 = vsel %vm13368_vm6, %v4508_v29, %v4512_v60  ;;  %v4524_v51 = vor.u32 %v4522_v30, %v4520_v45  ;;  %v4339_v9 = vld [vmem:[#allocation2 + $0x78] sm:$0xf]  ;;  %v4340_v59 = vld [vmem:[#allocation2 + $0x7c] sm:$0xf]  ;;  %vm13369_vm13 = vmmov %vm13368_vm6 }
 0x23b   : > { %v4370_v43 = vsel %vm13367_vm10, %v4337_v17, 0  ;;  %v4528_v54 = vrot.slane %v4526_v36, 1  ;;  %v4550_v8 = vshll.u32 %v11312_v63, 16  ;;  %8397 = vmatpush3.bf16.msra.mxu0 %v11086_v27  ;;  %v4521_v13 = vsel %vm13369_vm13, %v4516_v15, %v4520_v45  ;;  %v11343_v44 = vld [vmem:[#allocation2 + $0x60] sm:$0xf]  ;;  %v8751_v47 = vld [vmem:[#allocation8 + $0x1e8] sm:$0xff]   ;;  %8359 = vmatpush3.bf16.msra.mxu1 %v8743_v14 }
 0x23c   : > { %v4530_v5 = vshrl.u32 %v11278_v1, 16  ;;  %v11345_v17 = vld [vmem:[#allocation2 + $0x64] sm:$0xf]  ;;  %v4566_v36 = vshll.u32 %v11320_v57, 16  ;;  %8398 = vmatprep.subr.bf16.mxu0 %v8747_v19  ;;  %v4536_v0 = vrot.slane %v4534_v20, 1  ;;  %v4538_v27 = vshrl.u32 %v11301_v42, 16  ;;  %8360 = vmatprep.subr.bf16.mxu1 %v8748_v58 }
 0x23d   : > { %v4558_v29 = vshll.u32 %v11325_v4, 16  ;;  %v11352_v52 = vcombine.low %v4370_v43, %v4371_v62  ;;  %v4544_v45 = vrot.slane %v4542_v39, 1  ;;  %v4546_v1 = vshrl.u32 %v11303_v46, 16  ;;  %v4341_v60 = vld [vmem:[#allocation2 + $0x80] sm:$0xf]  ;;  %v13406_v25 = vld [vmem:[#allocation79_spill] sm:$0xff] }
 0x23e   : > { %vm13370_vm10 = vcmp.ne.s16.totalorder %v13203_v12, 0  ;;  %vm13371_vm6 = vnez %v13210_v28  ;;  %v4532_v23 = vor.u32 %v4530_v5, %v4528_v54  ;;  %v4552_v55 = vrot.slane %v4550_v8, 1  ;;  %v8753_v43 = vld [vmem:[#allocation8 + $0x180] sm:$0xff]   ;;  %v11361_v62 = vld [vmem:[#allocation2 + $0x8c] sm:$0xf] }
 0x23f   : > { %v4372_v15 = vsel %vm13370_vm10, %v4339_v9, 0  ;;  %v4373_v30 = vsel %vm13371_vm6, %v4340_v59, 0  ;;  %v4554_v20 = vshrl.u32 %v11312_v63, 16  ;;  %v4562_v42 = vshrl.u32 %v11325_v4, 16  ;;  %8399 = vmatpush3.bf16.msra.mxu0 %v8747_v19  ;;  %v4342_v39 = vld [vmem:[#allocation2 + $0x84] sm:$0xf]  ;;  %8361 = vmatpush3.bf16.msra.mxu1 %v8748_v58 }
 0x240   : > { %v13372_v46 = vcombine.low %v11284_v18, %v11286_v34  ;;  %v11367_v14 = vsel %vm13369_vm13, %v4524_v51, %v4528_v54  ;;  %v11369_v9 = vld [vmem:[#allocation2 + $0x68] sm:$0xf]  ;;  %v11371_v8 = vld [vmem:[#allocation2 + $0x6c] sm:$0xf]  ;;  %v4568_v4 = vrot.slane %v4566_v36, 1  ;;  %v4570_v19 = vshrl.u32 %v11320_v57, 16  ;;  %8400 = vmatprep.subr.bf16.mxu0 %v8751_v47  ;;  %8362 = vmatprep.subr.bf16.mxu1 %v8753_v43 }
 0x241   : > { %v8752_v59 = vld [vmem:[#allocation8 + $0x1e0] sm:$0xff]   ;;  %8321 = vmatmul.mubr.bf16.gmra.mxu0 %v4513_v3  ;;  %v13373_v18 = vcombine.low %v11295_v37, %v11297_v49  ;;  %v11379_v34 = vld [vmem:[#allocation2 + $0x70] sm:$0xf]  ;;  %v11381_v51 = vld [vmem:[#allocation2 + $0x74] sm:$0xf]  ;;  %v4560_v5 = vrot.slane %v4558_v29, 1  ;;  %v11386_v36 = vcombine.low %v4372_v15, %v4373_v30  ;;  %v4540_v63 = vor.u32 %v4538_v27, %v4536_v0 }
 0x242   : > { %8281 = vmatmul.mubr.bf16.gmra.mxu1 %v13372_v46  ;;  %v4574_v46 = vshll.u32 %v11352_v52, 16  ;;  %v4867_v57 = vld [vmem:[#allocation2 + $0x14] sm:$0x8]  ;;  %8324 = vmatprep.mubr.bf16.mxu0 %v4521_v13  ;;  %v4548_v3 = vor.u32 %v4546_v1, %v4544_v45  ;;  %vm13374_vm10 = vcmp.ne.s16.totalorder %v13213_v2, 0  ;;  %v4375_v49 = vsel %vm10989_vm11, %v4342_v39, 0  ;;  %v11398_v13 = vld [vmem:[#allocation8 + $0x238] sm:$0xff]  }
 0x243   : > { %8284 = vmatprep.mubr.bf16.mxu1 %v13373_v18  ;;  %v4374_v37 = vsel %vm13374_vm10, %v4341_v60, 0  ;;  %v11392_v18 = vld [vmem:[#allocation2 + $0x20] sm:$0xf]  ;;  %v4537_v15 = vsel %vm13369_vm13, %v4532_v23, %v4536_v0  ;;  %v4556_v30 = vor.u32 %v4554_v20, %v4552_v55  ;;  %v4564_v54 = vor.u32 %v4562_v42, %v4560_v5  ;;  %8401 = vmatpush3.bf16.msra.mxu0 %v8751_v47  ;;  %v11400_v58 = vld [vmem:[#allocation2 + $0x78] sm:$0xf]  ;;  %v13405_v12 = vld [vmem:[#allocation77_spill] sm:$0xff] }
 0x244   : > { %v11402_v60 = vld [vmem:[#allocation2 + $0x7c] sm:$0xf]  ;;  %v4572_v1 = vor.u32 %v4570_v19, %v4568_v4  ;;  %v4578_v39 = vshrl.u32 %v11352_v52, 16  ;;  %8402 = vmatprep.subr.bf16.mxu0 %v8752_v59  ;;  %v13375_v29 = vld [vmem:[#allocation16_spill] sm:$0xff]  ;;  %v4576_v20 = vrot.slane %v4574_v46, 1  ;;  %v4582_v47 = vshll.u32 %v11386_v36, 16  ;;  %8363 = vmatpush3.bf16.msra.mxu1 %v8753_v43 }
 0x245   : > { %vm13376_vm10 = vcmp.ne.s16.totalorder %v13375_v29, 0  ;;  %v8756_v0 = vld [vmem:[#allocation8 + $0x1d8] sm:$0xff]   ;;  %v11410_v42 = vcombine.low %v4374_v37, %v4375_v49  ;;  %vm13378_vm13 = vnez %v13377_v6  ;;  %vm13379_vm11 = vsmask.f32 7424  ;;  %v11421_v52 = vld [vmem:[#allocation2 + $0x80] sm:$0xf]  ;;  %8444 = vmatprep.subr.bf16.mxu1 %v11398_v13 }
 0x246   : > { %v4900_v23 = vsel %vm13376_vm10, %v4867_v57, 0  ;;  %v4903_v2 = vsel %vm13378_vm13, %v11392_v18, 0  ;;  %v11416_v28 = vsel %vm13379_vm11, %v4540_v63, %v4544_v45  ;;  %vm13380_vm6 = vmmov %vm13379_vm11  ;;  %v11423_v29 = vld [vmem:[#allocation2 + $0x84] sm:$0xf]  ;;  %v11427_v57 = vld [vmem:[#allocation2 + $0x88] sm:$0xf]  ;;  %v13384_v49 = vcombine.low %v11327_v41, %v11329_v32 }
 0x247   : > { %v11419_v19 = vsel %vm13380_vm6, %v4548_v3, %v4552_v55  ;;  %vm13381_vm10 = vmmov %vm13380_vm6  ;;  %8403 = vmatpush3.bf16.msra.mxu0 %v8752_v59  ;;  %v13383_v63 = vsel %vm9317_vm15, %v11121_v35, 0  ;;  %v13385_v43 = vsel %vm13312_vm1, %v11128_v61, 0  ;;  %v4343_v59 = vld [vmem:[#allocation2 + $0x88] sm:$0xf]  ;;  %v11469_v21 = vor.u32 %v4578_v39, %v4576_v20  ;;  %v13395_v27 = vld [vmem:[#allocation88_spill] sm:$0xff] }
 0x248   : > { %v11432_v6 = vsel %vm13381_vm10, %v4556_v30, %v4560_v5  ;;  %vm13382_vm11 = vmmov %vm13380_vm6  ;;  %v7291_v3 = vcombine.low %v4900_v23, %v13383_v63  ;;  %8404 = vmatprep.subr.bf16.mxu0 %v8756_v0  ;;  %v13387_v5 = vsel %vm13319_vm12, %v13386_v31, 0  ;;  %v13388_v30 = vld [vmem:[#allocation61_spill] sm:$0xff]  ;;  %v13390_v23 = vld [vmem:[#allocation68_spill] sm:$0xff]  ;;  %vm13396_vm12 = vcmp.ne.s16.totalorder %v13395_v27, 0 }
 0x249   : > { %v11435_v45 = vsel %vm13382_vm11, %v4564_v54, %v4568_v4  ;;  %v11450_v4 = vcombine.low %v13385_v43, %v4903_v2  ;;  %v8757_v54 = vld [vmem:[#allocation8 + $0x1d0] sm:$0xff]   ;;  %vm13389_vm15 = vnez %v13388_v30  ;;  %v13392_v41 = vld [vmem:[#allocation69_spill] sm:$0xff]  ;;  %8325 = vmatmul.mubr.bf16.gmra.mxu0 %v11367_v14  ;;  %v13393_v2 = vcombine.low %v11343_v44, %v11345_v17  ;;  %vm13394_vm1 = vmmov %vm13380_vm6 }
 0x24a   : > { %8285 = vmatmul.mubr.bf16.gmra.mxu1 %v13384_v49  ;;  %v13391_v63 = vsel %vm13389_vm15, %v13390_v23, 0  ;;  %v5068_v32 = vshrl.u32 %v13392_v41, 16  ;;  %v5071_v50 = vshll.u32 %v13392_v41, 16  ;;  %v11467_v49 = vsel %vm13394_vm1, %v4572_v1, %v4576_v20  ;;  %8328 = vmatprep.mubr.bf16.mxu0 %v4537_v15  ;;  %v13397_v17 = vld [vmem:[#allocation67_spill] sm:$0xff]  ;;  %v13399_v1 = vld [vmem:[#allocation74_spill] sm:$0xff] }
 0x24b   : > { %v7294_v55 = vcombine.low %v13391_v63, %v13387_v5  ;;  %8288 = vmatprep.mubr.bf16.mxu1 %v13393_v2  ;;  %v11471_v43 = vrot.slane %v4582_v47, 1  ;;  %v5033_v46 = vshrl.u32 %v7291_v3, 16  ;;  %v5036_v14 = vshll.u32 %v7291_v3, 16  ;;  %8405 = vmatpush3.bf16.msra.mxu0 %v8756_v0  ;;  %v13401_v20 = vld [vmem:[#allocation66_spill] sm:$0xff]  ;;  %v8759_v3 = vld [vmem:[#allocation8 + $0x1c8] sm:$0xff]  }
 0x24c   : > { %v5070_v37 = vrot.slane %v5068_v32, 3  ;;  %v5073_v41 = vrot.slane %v5071_v50, 4  ;;  %v11476_v44 = vsel %vm13396_vm12, %v4343_v59, 0  ;;  %vm13398_vm6 = vnez %v13397_v17  ;;  %v13403_v47 = vld [vmem:[#allocation70_spill] sm:$0xff]  ;;  %8406 = vmatprep.subr.bf16.mxu0 %v8757_v54 }
 0x24d   : > { %v5059_v5 = vshrl.u32 %v7294_v55, 16  ;;  %v5062_v63 = vshll.u32 %v7294_v55, 16  ;;  %v13400_v39 = vsel %vm13398_vm6, %v13399_v1, 0  ;;  %vm13402_vm13 = vnez %v13401_v20 }
 0x24e   : > { %v13404_v2 = vsel %vm13402_vm13, %v13403_v47, 0  ;;  %v5041_v55 = vshrl.u32 %v11450_v4, 16  ;;  %v5074_v30 = vor.u32 %v5073_v41, %v5070_v37  ;;  %v5044_v59 = vshll.u32 %v11450_v4, 16  ;;  %v13409_v37 = vld [vmem:[#allocation81_spill] sm:$0xff] }
 0x24f   : > { %v7296_v15 = vcombine.low %v13404_v2, %v13400_v39  ;;  %v5061_v32 = vrot.slane %v5059_v5, 3  ;;  %v5064_v50 = vrot.slane %v5062_v63, 4  ;;  %v5086_v17 = vshrl.u32 %v13405_v12, 16  ;;  %8407 = vmatpush3.bf16.msra.mxu0 %v8757_v54  ;;  %v4344_v54 = vld [vmem:[#allocation2 + $0x8c] sm:$0xf] }
 0x250   : > { %v11491_v40 = vor.u32 %v13407_v38, %v13406_v25  ;;  %v5089_v39 = vshll.u32 %v13405_v12, 16  ;;  %v13408_v5 = vsel %vm13338_vm7, %v11181_v11, 0  ;;  %v13410_v63 = vsel %vm13199_vm9, %v13409_v37, 0  ;;  %8408 = vmatprep.subr.bf16.mxu0 %v8759_v3  ;;  %v8761_v12 = vld [vmem:[#allocation8 + $0x1c0] sm:$0xff]  }
 0x251   : > { %v5077_v27 = vshrl.u32 %v7296_v15, 16  ;;  %v5080_v0 = vshll.u32 %v7296_v15, 16  ;;  %v5065_v20 = vor.u32 %v5064_v50, %v5061_v32  ;;  %v7298_v4 = vcombine.low %v13410_v63, %v13408_v5  ;;  %8329 = vmatmul.mubr.bf16.gmra.mxu0 %v11416_v28  ;;  %v13415_v32 = vld [vmem:[#allocation82_spill] sm:$0xff] }
 0x252   : > { %v11502_v41 = vrot.slane %v5033_v46, 3  ;;  %v5088_v1 = vrot.slane %v5086_v17, 3  ;;  %v13411_v25 = vcombine.low %v11369_v9, %v11371_v8  ;;  %vm13412_vm10 = vsmask.f32 4352  ;;  %8332 = vmatprep.mubr.bf16.mxu0 %v11419_v19 }
 0x253   : > { %v5079_v2 = vrot.slane %v5077_v27, 3  ;;  %v5082_v15 = vrot.slane %v5080_v0, 4  ;;  %v11509_v48 = vsel %vm13412_vm10, %v11491_v40, %v5065_v20  ;;  %vm13413_vm7 = vmmov %vm13412_vm10  ;;  %v5091_v38 = vrot.slane %v5089_v39, 4  ;;  %8409 = vmatpush3.bf16.msra.mxu0 %v8759_v3 }
 0x254   : > { %8289 = vmatmul.mubr.bf16.gmra.mxu1 %v13411_v25  ;;  %v11512_v22 = vsel %vm13413_vm7, %v5065_v20, %v5074_v30  ;;  %v5095_v46 = vshrl.u32 %v7298_v4, 16  ;;  %v13414_v27 = vcombine.low %v11379_v34, %v11381_v51  ;;  %v5098_v8 = vshll.u32 %v7298_v4, 16  ;;  %vm13418_vm9 = vmmov %vm13413_vm7  ;;  %8410 = vmatprep.subr.bf16.mxu0 %v8761_v12 }
 0x255   : > { %v5083_v9 = vor.u32 %v5082_v15, %v5079_v2  ;;  %v5104_v50 = vshrl.u32 %v13415_v32, 16  ;;  %v5107_v0 = vshll.u32 %v13415_v32, 16  ;;  %v11521_v17 = vrot.slane %v5036_v14, 4  ;;  %v13419_v14 = vld [vmem:[#allocation55_spill] sm:$0xff]  ;;  %vm13421_vm15 = vmmov %vm13413_vm7 }
 0x256   : > { %8292 = vmatprep.mubr.bf16.mxu1 %v13414_v27  ;;  %v5092_v20 = vor.u32 %v5091_v38, %v5088_v1  ;;  %v5097_v39 = vrot.slane %v5095_v46, 3  ;;  %v13416_v28 = vsel %vm13339_vm4, %v11185_v26, 0  ;;  %v13417_v34 = vsel %vm13232_vm5, %v11183_v24, 0  ;;  %v13422_v38 = vld [vmem:[#allocation86_spill] sm:$0xff]  ;;  %vm13428_vm4 = vmmov %vm13413_vm7 }
 0x257   : > { %v7300_v51 = vcombine.low %v13417_v34, %v13416_v28  ;;  %v11532_v5 = vsel %vm13418_vm9, %v5074_v30, %v5083_v9  ;;  %v5100_v63 = vrot.slane %v5098_v8, 4  ;;  %v5106_v4 = vrot.slane %v5104_v50, 3  ;;  %v13426_v50 = vld [vmem:[#allocation72_spill] sm:$0xff]  ;;  %8411 = vmatpush3.bf16.msra.mxu0 %v8761_v12  ;;  %vm13429_vm1 = vmmov %vm13428_vm4 }
 0x258   : > { %v5109_v19 = vrot.slane %v5107_v0, 4  ;;  %vm13420_vm11 = vnez %v13419_v14  ;;  %v11537_v56 = vsel %vm13421_vm15, %v5083_v9, %v5092_v20  ;;  %v5122_v46 = vshrl.u32 %v13422_v38, 16  ;;  %vm13441_vm6 = vmmov %vm13429_vm1 }
 0x259   : > { %v4377_v1 = vsel %vm13420_vm11, %v4344_v54, 0  ;;  %v5113_v2 = vshrl.u32 %v7300_v51, 16  ;;  %v5116_v15 = vshll.u32 %v7300_v51, 16  ;;  %v5101_v7 = vor.u32 %v5100_v63, %v5097_v39  ;;  %v13424_v54 = vld [vmem:[#allocation20_spill] sm:$0xff]  ;;  %8333 = vmatmul.mubr.bf16.gmra.mxu0 %v11432_v6  ;;  %vm13442_vm13 = vmmov %vm13429_vm1 }
 0x25a   : > { %v5110_v25 = vor.u32 %v5109_v19, %v5106_v4  ;;  %v5125_v3 = vshll.u32 %v13422_v38, 16  ;;  %v5043_v30 = vrot.slane %v5041_v55, 3  ;;  %v13423_v32 = vsel %vm10480_vm14, %v11195_v33, 0  ;;  %v13432_v19 = vld [vmem:[#allocation91_spill] sm:$0xff]  ;;  %v13435_v38 = vld [vmem:[#allocation76_spill] sm:$0xff]  ;;  %8336 = vmatprep.mubr.bf16.mxu0 %v11435_v45  ;;  %vm13449_vm7 = vmmov %vm13429_vm1 }
 0x25b   : > { %v5115_v27 = vrot.slane %v5113_v2, 3  ;;  %v5118_v8 = vrot.slane %v5116_v15, 4  ;;  %vm13425_vm5 = vnez %v13424_v54  ;;  %v11550_v39 = vsel %vm13428_vm4, %v5092_v20, %v5101_v7  ;;  %vm13450_vm9 = vmmov %vm13429_vm1 }
 0x25c   : > { %v13427_v9 = vsel %vm13425_vm5, %v13426_v50, 0  ;;  %v11553_v28 = vsel %vm13429_vm1, %v5101_v7, %v5110_v25  ;;  %v5124_v34 = vrot.slane %v5122_v46, 3  ;;  %v5127_v55 = vrot.slane %v5125_v3, 4  ;;  %v13433_v7 = vld [vmem:[#allocation28_spill] sm:$0xff]  ;;  %vm13456_vm4 = vmmov %vm13429_vm1 }
 0x25d   : > { %v7302_v0 = vcombine.low %v13427_v9, %v13423_v32  ;;  %v13430_v51 = vcombine.low %v11400_v58, %v11402_v60  ;;  %v5046_v10 = vrot.slane %v5044_v59, 4  ;;  %v5119_v33 = vor.u32 %v5118_v8, %v5115_v27  ;;  %v13437_v60 = vld [vmem:[#allocation22_spill] sm:$0xff]  ;;  %v13439_v59 = vld [vmem:[#allocation80_spill] sm:$0xff] }
 0x25e   : > { %v13431_v12 = vcombine.low %v11421_v52, %v11423_v29  ;;  %v5128_v20 = vor.u32 %v5127_v55, %v5124_v34  ;;  %v5140_v2 = vshrl.u32 %v13432_v19, 16  ;;  %v5143_v15 = vshll.u32 %v13432_v19, 16 }
 0x25f   : > { %8293 = vmatmul.mubr.bf16.gmra.mxu1 %v13430_v51  ;;  %v5131_v63 = vshrl.u32 %v7302_v0, 16  ;;  %v5134_v4 = vshll.u32 %v7302_v0, 16  ;;  %vm13434_vm14 = vnez %v13433_v7  ;;  %vm13438_vm12 = vnez %v13437_v60  ;;  %v13443_v51 = vld [vmem:[#allocation96_spill] sm:$0xff] }
 0x260   : > { %8296 = vmatprep.mubr.bf16.mxu1 %v13431_v12  ;;  %v13436_v58 = vsel %vm13434_vm14, %v13435_v38, 0  ;;  %v13440_v46 = vsel %vm13438_vm12, %v13439_v59, 0  ;;  %v11574_v6 = vcombine.low %v11476_v44, %v4377_v1  ;;  %v11577_v52 = vsel %vm13441_vm6, %v5110_v25, %v5119_v33  ;;  %v13444_v1 = vld [vmem:[#allocation33_spill] sm:$0xff]  ;;  %v13446_v25 = vld [vmem:[#allocation78_spill] sm:$0xff]  ;;  %vm13459_vm14 = vmmov %vm13429_vm1 }
 0x261   : > { %v7304_v3 = vcombine.low %v13440_v46, %v13436_v58  ;;  %v5133_v29 = vrot.slane %v5131_v63, 3  ;;  %v5136_v27 = vrot.slane %v5134_v4, 4  ;;  %v11580_v8 = vsel %vm13442_vm13, %v5119_v33, %v5128_v20  ;;  %8337 = vmatmul.mubr.bf16.gmra.mxu0 %v11467_v49  ;;  %vm13460_vm12 = vmmov %vm13429_vm1 }
 0x262   : > { %v5142_v32 = vrot.slane %v5140_v2, 3  ;;  %v5145_v54 = vrot.slane %v5143_v15, 4  ;;  %v5047_v0 = vor.u32 %v5046_v10, %v5043_v30  ;;  %v5158_v12 = vshrl.u32 %v13443_v51, 16  ;;  %v4345_v10 = vld [vmem:[#allocation2 + $0x90] sm:$0x1] }
 0x263   : > { %v5149_v9 = vshrl.u32 %v7304_v3, 16  ;;  %v5137_v34 = vor.u32 %v5136_v27, %v5133_v29  ;;  %v5152_v55 = vshll.u32 %v7304_v3, 16  ;;  %v5161_v44 = vshll.u32 %v13443_v51, 16  ;;  %v13454_v3 = vld [vmem:[#allocation56_spill] sm:$0xff] }
 0x264   : > { %v5146_v45 = vor.u32 %v5145_v54, %v5142_v32  ;;  %vm13445_vm10 = vnez %v13444_v1  ;;  %v13448_v33 = vsel %vm13293_vm8, %v11361_v62, 0  ;;  %v5039_v30 = vor.u32 %v11521_v17, %v11502_v41  ;;  %vm13453_vm8 = vmmov %vm13429_vm1 }
 0x265   : > { %v5151_v19 = vrot.slane %v5149_v9, 3  ;;  %v13447_v63 = vsel %vm13445_vm10, %v13446_v25, 0  ;;  %v11595_v2 = vsel %vm13449_vm7, %v5128_v20, %v5137_v34  ;;  %v5154_v15 = vrot.slane %v5152_v55, 4 }
 0x266   : > { %v7306_v4 = vcombine.low %v13448_v33, %v13447_v63  ;;  %v5160_v7 = vrot.slane %v5158_v12, 3  ;;  %v11598_v38 = vsel %vm13450_vm9, %v5137_v34, %v5146_v45  ;;  %v5163_v58 = vrot.slane %v5161_v44, 4  ;;  %v8762_v33 = vld [vmem:[#allocation8 + $0x230] sm:$0xff]  }
 0x267   : > { %vm13451_vm15 = vsmask.f32 7424  ;;  %v13452_v46 = vcombine.low %v11427_v57, %v11088_v53  ;;  %v5048_v41 = vsel %vm13453_vm8, %v5039_v30, %v5047_v0  ;;  %v4594_v17 = vshrl.u32 %v11410_v42, 16 }
 0x268   : > { %v5167_v60 = vshrl.u32 %v7306_v4, 16  ;;  %v5170_v59 = vshll.u32 %v7306_v4, 16  ;;  %v4585_v16 = vsel %vm13451_vm15, %v11469_v21, %v11471_v43  ;;  %v5155_v20 = vor.u32 %v5154_v15, %v5151_v19  ;;  %v8078_v21 = vpop.f32.mrf.mxu1  ;;  %vm13461_vm6 = vmmov %vm13451_vm15  ;;  %v8764_v15 = vld [vmem:[#allocation8 + $0x228] sm:$0xff]  }
 0x269   : > { %8297 = vmatmul.mubr.bf16.gmra.mxu1 %v13452_v46  ;;  %vm13455_vm5 = vnez %v13454_v3  ;;  %v5164_v27 = vor.u32 %v5163_v58, %v5160_v7  ;;  %8340 = vmatprep.mubr.bf16.mxu0 %v4585_v16  ;;  %v13457_v53 = vshll.u32 %v11410_v42, 16  ;;  %v4598_v34 = vshll.u32 %v11574_v6, 16  ;;  %vm13462_vm13 = vmmov %vm13461_vm6  ;;  %v8770_v16 = vld [vmem:[#allocation8 + $0x218] sm:$0xff]   ;;  %v8126_v46 = vpop.f32.mrf.mxu0 }
 0x26a   : > { %8364 = vmatprep.mubr.bf16.mxu1 %v5048_v41  ;;  %v4378_v29 = vsel %vm13455_vm5, %v4345_v10, 0  ;;  %v5169_v32 = vrot.slane %v5167_v60, 3  ;;  %v5172_v54 = vrot.slane %v5170_v59, 4  ;;  %v11612_v9 = vsel %vm13456_vm4, %v5146_v45, %v5155_v20  ;;  %v1792_v44 = vpop.f32.mrf.mxu1  ;;  %v8767_v60 = vld [vmem:[#allocation8 + $0x220] sm:$0xff]   ;;  %vm13463_vm10 = vmmov %vm13461_vm6 }
 0x26b   : > { %v4592_v57 = vrot.slane %v13457_v53, 1  ;;  %v11618_v55 = vsel %vm13429_vm1, %v5155_v20, %v5164_v27  ;;  %v13458_v51 = vshrl.u32 %v11386_v36, 16  ;;  %v7282_v19 = vcombine.low %v4378_v29, %v4378_v29  ;;  %v8822_v20 = vld [vmem:[#allocation2 + $0x24] sm:$0xf] }
 0x26c   : > { %v11620_v49 = vor.u32 %v5172_v54, %v5169_v32  ;;  %v8079_v42 = vpop.f32.mrf.mxu1  ;;  %v4600_v25 = vrot.slane %v4598_v34, 1  ;;  %v5057_v63 = vsel %vm13460_vm12, %v5047_v0, %v11491_v40  ;;  %v4602_v30 = vshrl.u32 %v11574_v6, 16  ;;  %v8776_v34 = vld [vmem:[#allocation8 + $0x208] sm:$0xff]  }
 0x26d   : > { %v4588_v12 = vor.u32 %v13458_v51, %v11471_v43  ;;  %v4596_v1 = vor.u32 %v4594_v17, %v4592_v57  ;;  %v4606_v36 = vshll.u32 %v7282_v19, 16  ;;  %v7316_v59 = vcombine.low %v11121_v35, %v11128_v61  ;;  %v2253_v35 = vpop.f32.mrf.mxu0  ;;  %v8779_v19 = vld [vmem:[#allocation8 + $0x200] sm:$0xff]  }
 0x26e   : > { %v11627_v45 = vsel %vm13459_vm14, %v5164_v27, %v11620_v49  ;;  %v1795_v10 = vpop.f32.mrf.mxu1  ;;  %v4604_v7 = vor.u32 %v4602_v30, %v4600_v25  ;;  %v11641_v17 = vadd.f32 %v8126_v46, %v8078_v21  ;;  %v7317_v29 = vcombine.low %v11392_v18, %v8822_v20  ;;  %v8823_v27 = vld [vmem:[#allocation2 + $0x28] sm:$0xf]  ;;  %v5794_v46 = vld [vmem:[#allocation2 + $0x18] sm:$0xf]  ;;  %v5795_v20 = vld [vmem:[#allocation2 + $0x1c] sm:$0xf] }
 0x26f   : > { %v4593_v4 = vsel %vm13461_vm6, %v4588_v12, %v4592_v57  ;;  %v4601_v43 = vsel %vm13462_vm13, %v4596_v1, %v4600_v25  ;;  %v4608_v40 = vrot.slane %v4606_v36, 1  ;;  %v11645_v32 = vadd.f32 %v2253_v35, %v1792_v44  ;;  %v8127_v54 = vpop.f32.mrf.mxu0  ;;  %v8824_v12 = vld [vmem:[#allocation2 + $0x34] sm:$0xf] }
 0x270   : > { %8341 = vmatmul.mubr.bf16.gmra.mxu0 %v4593_v4  ;;  %v8082_v0 = vpop.f32.mrf.mxu1  ;;  %v11649_v53 = vadd.f32 %v8127_v54, %v8079_v42  ;;  %v8828_v54 = vld [vmem:[#allocation2 + $0x54] sm:$0xf]  ;;  %vm13483_vm13 = vsmask.f32 4352 }
 0x271   : > { %8365 = vmatmul.mubr.bf16.vlgmr.msra.gmra.mxu1 %v5057_v63  ;;  %8344 = vmatprep.mubr.bf16.mxu0 %v4601_v43  ;;  %v4609_v6 = vsel %vm13463_vm10, %v4604_v7, %v4608_v40  ;;  %v2256_v18 = vpop.f32.mrf.mxu0  ;;  %v13464_v43 = vld [vmem:[#allocation74_spill] sm:$0xff]  ;;  %v8827_v7 = vld [vmem:[#allocation2 + $0x48] sm:$0xf] }
 0x272   : > { %8445 = vmatpush3.bf16.msra.mxu1 %v11398_v13  ;;  %8368 = vmatprep.mubr.bf16.mxu1 %v11509_v48  ;;  %v1808_v58 = vpop.f32.mrf.mxu1  ;;  %v11651_v51 = vadd.f32 %v2256_v18, %v1795_v10  ;;  %v7322_v40 = vcombine.low %v8827_v7, %v13409_v37  ;;  %v7323_v18 = vcombine.low %v11181_v11, %v8828_v54  ;;  %v13471_v11 = vld [vmem:[#allocation32_spill] sm:$0xff] }
 0x273   : > { %8446 = vmatprep.subr.bf16.mxu1 %v8762_v33  ;;  %v8130_v42 = vpop.f32.mrf.mxu0  ;;  %vm13472_vm8 = vcmp.ne.s16.totalorder %v13471_v11, 0  ;;  %v13475_v54 = vld [vmem:[#allocation36_spill] sm:$0xff] }
 0x274   : > { %v8083_v13 = vpop.f32.mrf.mxu1  ;;  %v11661_v25 = vadd.f32 %v8130_v42, %v8082_v0  ;;  %vm13476_vm1 = vcmp.ne.s16.totalorder %v13475_v54, 0  ;;  %v8833_v54 = vld [vmem:[#allocation2 + $0x70] sm:$0xf] }
 0x276   : > { %8447 = vmatpush3.bf16.msra.mxu1 %v8762_v33  ;;  %v1811_v48 = vpop.f32.mrf.mxu1 }
 0x277   : > { %8448 = vmatprep.subr.bf16.mxu1 %v8764_v15 }
 0x278   : > { %8345 = vmatmul.mubr.bf16.gmra.mxu0 %v4609_v6  ;;  %v8086_v41 = vpop.f32.mrf.mxu1 }
 0x279   : > { %8369 = vmatmul.mubr.bf16.gmra.mxu1 %v11512_v22  ;;  %8412 = vmatprep.mubr.bf16.mxu0 %v7316_v59  ;;  %v8773_v22 = vld [vmem:[#allocation8 + $0x210] sm:$0xff]  }
 0x27a   : > { %8372 = vmatprep.mubr.bf16.mxu1 %v11532_v5  ;;  %8449 = vmatpush3.bf16.msra.mxu1 %v8764_v15  ;;  %v1824_v61 = vpop.f32.mrf.mxu1  ;;  %v7318_v5 = vcombine.low %v8823_v27, %v13390_v23 }
 0x27b   : > { %8450 = vmatprep.subr.bf16.mxu1 %v8767_v60 }
 0x27c   : > { %v8087_v21 = vpop.f32.mrf.mxu1 }
 0x27e   : > { %8451 = vmatpush3.bf16.msra.mxu1 %v8767_v60  ;;  %v1827_v57 = vpop.f32.mrf.mxu1 }
 0x27f   : > { %8452 = vmatprep.subr.bf16.mxu1 %v8770_v16 }
 0x280   : > { %8413 = vmatmul.mubr.bf16.vlgmr.msra.gmra.mxu0 %v7317_v29  ;;  %v11653_v23 = vpop.f32.mrf.mxu1 }
 0x281   : > { %8373 = vmatmul.mubr.bf16.gmra.mxu1 %v11537_v56  ;;  %8416 = vmatprep.mubr.bf16.mxu0 %v7318_v5  ;;  %v7319_v56 = vcombine.low %v13386_v31, %v8824_v12  ;;  %v2269_v31 = vpop.f32.mrf.mxu0  ;;  %v13469_v12 = vld [vmem:[#allocation24_spill] sm:$0xff] }
 0x282   : > { %8376 = vmatprep.mubr.bf16.mxu1 %v11550_v39  ;;  %8453 = vmatpush3.bf16.msra.mxu1 %v8770_v16  ;;  %v8825_v39 = vld [vmem:[#allocation2 + $0x38] sm:$0xf]  ;;  %v11658_v1 = vpop.f32.mrf.mxu1  ;;  %v11665_v33 = vadd.f32 %v2269_v31, %v1808_v58  ;;  %v11680_v58 = vld [vmem:[#allocation2 + $0x94] sm:$0xf]  ;;  %vm13470_vm15 = vnez %v13469_v12  ;;  %v8831_v12 = vld [vmem:[#allocation2 + $0x68] sm:$0xf] }
 0x283   : > { %8454 = vmatprep.subr.bf16.mxu1 %v8773_v22  ;;  %v7320_v44 = vcombine.low %v8825_v39, %v13403_v47  ;;  %v8131_v47 = vpop.f32.mrf.mxu0  ;;  %v8829_v39 = vld [vmem:[#allocation2 + $0x58] sm:$0xf] }
 0x284   : > { %v11663_v63 = vpop.f32.mrf.mxu1 }
 0x285   : > { %v2272_v36 = vpop.f32.mrf.mxu0 }
 0x286   : > { %8455 = vmatpush3.bf16.msra.mxu1 %v8773_v22  ;;  %v11667_v4 = vpop.f32.mrf.mxu1  ;;  %v11674_v15 = vadd.f32 %v2272_v36, %v1811_v48  ;;  %v13465_v48 = vld [vmem:[#allocation17_spill] sm:$0xff]  ;;  %v5797_v22 = vld [vmem:[#allocation2 + $0x24] sm:$0xf] }
 0x287   : > { %8456 = vmatprep.subr.bf16.mxu1 %v8776_v34  ;;  %v8134_v60 = vpop.f32.mrf.mxu0  ;;  %vm13466_vm7 = vcmp.ne.s16.totalorder %v13465_v48, 0 }
 0x288   : > { %8417 = vmatmul.mubr.bf16.gmra.mxu0 %v7319_v56  ;;  %v11671_v30 = vpop.f32.mrf.mxu1  ;;  %v11683_v6 = vadd.f32 %v8134_v60, %v8086_v41  ;;  %v4932_v37 = vsel %vm13466_vm7, %v11680_v58, 0  ;;  %v5796_v41 = vld [vmem:[#allocation2 + $0x20] sm:$0xf]  ;;  %v5828_v56 = vsel %vm13470_vm15, %v5795_v20, 0  ;;  %v5798_v60 = vld [vmem:[#allocation2 + $0x28] sm:$0xf] }
 0x289   : > { %8377 = vmatmul.mubr.bf16.gmra.mxu1 %v11553_v28  ;;  %8420 = vmatprep.mubr.bf16.mxu0 %v7320_v44  ;;  %v11669_v28 = vadd.f32 %v8131_v47, %v8083_v13  ;;  %v2285_v13 = vpop.f32.mrf.mxu0  ;;  %v7307_v27 = vcombine.low %v4932_v37, %v4932_v37  ;;  %v5829_v31 = vsel %vm13472_vm8, %v5796_v41, 0  ;;  %v13473_v47 = vld [vmem:[#allocation31_spill] sm:$0xff]  ;;  %v8830_v37 = vld [vmem:[#allocation2 + $0x64] sm:$0xf]  ;;  %v5800_v41 = vld [vmem:[#allocation2 + $0x30] sm:$0xf] }
 0x28a   : > { %8380 = vmatprep.mubr.bf16.mxu1 %v11577_v52  ;;  %8457 = vmatpush3.bf16.msra.mxu1 %v8776_v34  ;;  %v8826_v52 = vld [vmem:[#allocation2 + $0x44] sm:$0xf]  ;;  %v11678_v0 = vpop.f32.mrf.mxu1  ;;  %v11690_v16 = vadd.f32 %v2285_v13, %v1824_v61  ;;  %v13467_v34 = vld [vmem:[#allocation23_spill] sm:$0xff]  ;;  %vm13474_vm4 = vnez %v13473_v47  ;;  %v5799_v13 = vld [vmem:[#allocation2 + $0x2c] sm:$0xf] }
 0x28b   : > { %8458 = vmatprep.subr.bf16.mxu1 %v8779_v19  ;;  %v7321_v10 = vcombine.low %v13464_v43, %v8826_v52  ;;  %v8135_v29 = vpop.f32.mrf.mxu0  ;;  %vm13468_vm9 = vcmp.ne.s16.totalorder %v13467_v34, 0  ;;  %v5830_v36 = vsel %vm13474_vm4, %v5797_v22, 0  ;;  %v5176_v43 = vshrl.u32 %v7307_v27, 16  ;;  %v5801_v22 = vld [vmem:[#allocation2 + $0x34] sm:$0xf] }
 0x28c   : > { %v11685_v59 = vpop.f32.mrf.mxu1  ;;  %v11694_v35 = vadd.f32 %v8135_v29, %v8087_v21  ;;  %v5827_v61 = vsel %vm13468_vm9, %v5794_v46, 0  ;;  %v7324_v21 = vcombine.low %v8829_v39, %v11183_v24  ;;  %v7325_v46 = vcombine.low %v11185_v26, %v8830_v37  ;;  %v13477_v34 = vld [vmem:[#allocation34_spill] sm:$0xff]  ;;  %v5802_v37 = vld [vmem:[#allocation2 + $0x38] sm:$0xf] }
 0x28d   : > { %v2288_v5 = vpop.f32.mrf.mxu0  ;;  %v7340_v24 = vcombine.low %v5827_v61, %v5828_v56  ;;  %vm13478_vm14 = vnez %v13477_v34  ;;  %v7326_v26 = vcombine.low %v8831_v12, %v13426_v50  ;;  %vm13488_vm9 = vsmask.f32 7424 }
 0x28e   : > { %8459 = vmatpush3.bf16.msra.mxu1 %v8779_v19  ;;  %v11703_v19 = vadd.f32 %v2288_v5, %v1827_v57  ;;  %v5832_v61 = vsel %vm13478_vm14, %v5799_v13, 0  ;;  %vm13497_vm14 = vmmov %vm13488_vm9 }
 0x28f   : > { %v8138_v42 = vpop.f32.mrf.mxu0  ;;  %v5962_v29 = vshll.u32 %v7340_v24, 16 }
 0x290   : > { %8421 = vmatmul.mubr.bf16.gmra.mxu0 %v7321_v10  ;;  %v11715_v57 = vadd.f32 %v8138_v42, %v11653_v23  ;;  %v5179_v10 = vshll.u32 %v7307_v27, 16  ;;  %v5178_v27 = vrot.slane %v5176_v43, 3  ;;  %v13479_v42 = vld [vmem:[#allocation37_spill] sm:$0xff] }
 0x291   : > { %8381 = vmatmul.mubr.bf16.gmra.mxu1 %v11580_v8  ;;  %8424 = vmatprep.mubr.bf16.mxu0 %v7322_v40  ;;  %v11692_v8 = vpop.f32.mrf.mxu1  ;;  %v11724_v40 = vcombine.low %v5829_v31, %v5830_v36  ;;  %vm13480_vm12 = vcmp.ne.s16.totalorder %v13479_v42, 0  ;;  %v13481_v31 = vld [vmem:[#allocation38_spill] sm:$0xff] }
 0x292   : > { %8384 = vmatprep.mubr.bf16.mxu1 %v11595_v2  ;;  %v5181_v5 = vrot.slane %v5179_v10, 4  ;;  %v5833_v11 = vsel %vm13480_vm12, %v5800_v41, 0  ;;  %vm13482_vm6 = vnez %v13481_v31  ;;  %v5804_v41 = vld [vmem:[#allocation2 + $0x40] sm:$0xf]  ;;  %vm13498_vm12 = vmmov %vm13488_vm9 }
 0x293   : > { %v11696_v2 = vpop.f32.mrf.mxu1  ;;  %v5967_v39 = vshll.u32 %v11724_v40, 16 }
 0x294   : > { %v5182_v43 = vor.u32 %v5181_v5, %v5178_v27 }
 0x295   : > { %v11707_v44 = vpop.f32.mrf.mxu1  ;;  %v5969_v13 = vrot.slane %v5967_v39, 1  ;;  %v13484_v39 = vld [vmem:[#allocation41_spill] sm:$0xff] }
 0x296   : > { %vm13485_vm10 = vcmp.ne.s16.totalorder %v13484_v39, 0 }
 0x297   : > { %v11717_v52 = vpop.f32.mrf.mxu1 }
 0x298   : > { %8425 = vmatmul.mubr.bf16.gmra.mxu0 %v7323_v18  ;;  %v5831_v18 = vsel %vm13476_vm1, %v5798_v60, 0  ;;  %v5960_v60 = vshrl.u32 %v7340_v24, 16  ;;  %v8834_v24 = vld [vmem:[#allocation2 + $0x78] sm:$0xf] }
 0x299   : > { %8385 = vmatmul.mubr.bf16.gmra.mxu1 %v11598_v38  ;;  %8428 = vmatprep.mubr.bf16.mxu0 %v7324_v21  ;;  %v2301_v38 = vpop.f32.mrf.mxu0  ;;  %v7342_v36 = vcombine.low %v5831_v18, %v5832_v61  ;;  %v8835_v61 = vld [vmem:[#allocation2 + $0x7c] sm:$0xf] }
 0x29a   : > { %8388 = vmatprep.mubr.bf16.mxu1 %v11612_v9  ;;  %v11720_v7 = vadd.f32 %v2301_v38, %v11658_v1  ;;  %v11722_v9 = vpop.f32.mrf.mxu1  ;;  %v7328_v12 = vcombine.low %v8834_v24, %v8835_v61 }
 0x29b   : > { %v8139_v48 = vpop.f32.mrf.mxu0  ;;  %v5975_v18 = vshll.u32 %v7342_v36, 16 }
 0x29c   : > { %v11727_v23 = vadd.f32 %v8139_v48, %v11663_v63  ;;  %v11730_v20 = vpop.f32.mrf.mxu1 }
 0x29d   : > { %v2304_v1 = vpop.f32.mrf.mxu0 }
 0x29e   : > { %v11737_v63 = vadd.f32 %v2304_v1, %v11667_v4  ;;  %v11741_v56 = vpop.f32.mrf.mxu1  ;;  %v5834_v4 = vsel %vm13482_vm6, %v5801_v22, 0  ;;  %v5805_v22 = vld [vmem:[#allocation2 + $0x44] sm:$0xf] }
 0x29f   : > { %v8142_v21 = vpop.f32.mrf.mxu0  ;;  %v11759_v48 = vcombine.low %v5833_v11, %v5834_v4 }
 0x2a0   : > { %8429 = vmatmul.mubr.bf16.gmra.mxu0 %v7325_v46  ;;  %v11750_v47 = vadd.f32 %v8142_v21, %v11671_v30  ;;  %v11752_v50 = vpop.f32.mrf.mxu1  ;;  %v5803_v46 = vld [vmem:[#allocation2 + $0x3c] sm:$0xf]  ;;  %v5835_v21 = vsel %vm13485_vm10, %v5802_v37, 0  ;;  %v5806_v37 = vld [vmem:[#allocation2 + $0x48] sm:$0xf] }
 0x2a1   : > { %8389 = vmatmul.mubr.bf16.gmra.mxu1 %v11618_v55  ;;  %8432 = vmatprep.mubr.bf16.mxu0 %v7326_v26  ;;  %v5964_v55 = vrot.slane %v5962_v29, 1  ;;  %v2317_v38 = vpop.f32.mrf.mxu0  ;;  %v8832_v29 = vld [vmem:[#allocation2 + $0x74] sm:$0xf]  ;;  %v5183_v26 = vsel %vm13483_vm13, %v11620_v49, %v5182_v43  ;;  %v5983_v4 = vshll.u32 %v11759_v48, 16  ;;  %v5971_v43 = vshrl.u32 %v11724_v40, 16 }
 0x2a2   : > { %8392 = vmatprep.mubr.bf16.mxu1 %v11627_v45  ;;  %v11755_v10 = vadd.f32 %v2317_v38, %v11678_v0  ;;  %v11757_v45 = vpop.f32.mrf.mxu1  ;;  %v7327_v27 = vcombine.low %v8833_v54, %v8832_v29 }
 0x2a3   : > { %v8143_v30 = vpop.f32.mrf.mxu0  ;;  %v5965_v0 = vor.u32 %v5964_v55, %v5960_v60  ;;  %v13489_v55 = vld [vmem:[#allocation45_spill] sm:$0xff]  ;;  %v13491_v60 = vld [vmem:[#allocation42_spill] sm:$0xff] }
 0x2a4   : > { %v11762_v1 = vadd.f32 %v8143_v30, %v11685_v59  ;;  %v11764_v5 = vpop.f32.mrf.mxu1  ;;  %v13486_v59 = vld [vmem:[#allocation40_spill] sm:$0xff]  ;;  %vm13490_vm15 = vcmp.ne.s16.totalorder %v13489_v55, 0  ;;  %vm13492_vm8 = vnez %v13491_v60 }
 0x2a5   : > { %v11766_v34 = vpop.f32.mrf.mxu0  ;;  %vm13487_vm7 = vnez %v13486_v59  ;;  %v5970_v11 = vsel %vm13488_vm9, %v5965_v0, %v5969_v13  ;;  %v5837_v38 = vsel %vm13490_vm15, %v5804_v41, 0  ;;  %v5838_v30 = vsel %vm13492_vm8, %v5805_v22, 0  ;;  %v13493_v59 = vld [vmem:[#allocation47_spill] sm:$0xff]  ;;  %v8837_v60 = vld [vmem:[#allocation2 + $0x80] sm:$0xf]  ;;  %vm13507_vm15 = vmmov %vm13488_vm9 }
 0x2a6   : > { %v5836_v42 = vsel %vm13487_vm7, %v5803_v46, 0  ;;  %v11775_v31 = vpop.f32.mrf.mxu1  ;;  %v5807_v46 = vld [vmem:[#allocation2 + $0x4c] sm:$0xf]  ;;  %v5977_v0 = vrot.slane %v5975_v18, 1  ;;  %v5973_v41 = vor.u32 %v5971_v43, %v5969_v13  ;;  %v11788_v39 = vcombine.low %v5837_v38, %v5838_v30  ;;  %v8838_v43 = vld [vmem:[#allocation2 + $0x88] sm:$0xf] }
 0x2a7   : > { %v8146_v49 = vpop.f32.mrf.mxu0  ;;  %v7344_v24 = vcombine.low %v5835_v21, %v5836_v42  ;;  %vm13494_vm4 = vcmp.ne.s16.totalorder %v13493_v59, 0  ;;  %v5808_v21 = vld [vmem:[#allocation2 + $0x50] sm:$0xf]  ;;  %v5809_v42 = vld [vmem:[#allocation2 + $0x54] sm:$0xf] }
 0x2a8   : > { %8433 = vmatmul.mubr.bf16.gmra.mxu0 %v7327_v27  ;;  %v11784_v29 = vadd.f32 %v8146_v49, %v11696_v2  ;;  %v11786_v54 = vpop.f32.mrf.mxu1  ;;  %v5985_v27 = vrot.slane %v5983_v4, 1  ;;  %v5839_v2 = vsel %vm13494_vm4, %v5806_v37, 0  ;;  %v5978_v4 = vsel %vm13497_vm14, %v5973_v41, %v5977_v0  ;;  %vm13517_vm14 = vmmov %vm13488_vm9 }
 0x2a9   : > { %8393 = vmatmul.mubr.bf16.gmra.mxu1 %v5183_v26  ;;  %8436 = vmatprep.mubr.bf16.mxu0 %v7328_v12  ;;  %v2333_v61 = vpop.f32.mrf.mxu0  ;;  %v5979_v26 = vshrl.u32 %v7342_v36, 16  ;;  %v5991_v36 = vshll.u32 %v7344_v24, 16  ;;  %v7330_v37 = vcombine.low %v8838_v43, %v11361_v62 }
 0x2aa   : > { %8460 = vmatprep.mubr.bf16.mxu1 %v5970_v11  ;;  %v11791_v22 = vadd.f32 %v2333_v61, %v11707_v44  ;;  %v11793_v40 = vpop.f32.mrf.mxu1  ;;  %v13495_v11 = vld [vmem:[#allocation43_spill] sm:$0xff]  ;;  %v8836_v44 = vld [vmem:[#allocation2 + $0x84] sm:$0xf]  ;;  %v5999_v61 = vshll.u32 %v11788_v39, 16 }
 0x2ab   : > { %vm13496_vm1 = vnez %v13495_v11  ;;  %v8147_v55 = vpop.f32.mrf.mxu0  ;;  %v5981_v13 = vor.u32 %v5979_v26, %v5977_v0  ;;  %v7329_v30 = vcombine.low %v8837_v60, %v8836_v44  ;;  %v5987_v11 = vshrl.u32 %v11759_v48, 16  ;;  %v13499_v0 = vld [vmem:[#allocation49_spill] sm:$0xff]  ;;  %v5810_v44 = vld [vmem:[#allocation2 + $0x58] sm:$0xf]  ;;  %v5811_v60 = vld [vmem:[#allocation2 + $0x5c] sm:$0xf] }
 0x2ac   : > { %v5840_v12 = vsel %vm13496_vm1, %v5807_v46, 0  ;;  %v11800_v18 = vadd.f32 %v8147_v55, %v11717_v52  ;;  %v8174_v46 = vpop.f32.mrf.mxu1  ;;  %vm13500_vm6 = vcmp.ne.s16.totalorder %v13499_v0, 0 }
 0x2ad   : > { %v11802_v38 = vpop.f32.mrf.mxu0  ;;  %v11805_v49 = vcombine.low %v5839_v2, %v5840_v12  ;;  %v5986_v52 = vsel %vm13498_vm12, %v5981_v13, %v5985_v27  ;;  %v11811_v59 = vadd.f32 %v8174_v46, %v11641_v17  ;;  %v5841_v41 = vsel %vm13500_vm6, %v5808_v21, 0  ;;  %v13501_v2 = vld [vmem:[#allocation35_spill] sm:$0xff]  ;;  %vm13518_vm12 = vmmov %vm13488_vm9 }
 0x2ae   : > { %vm13502_vm13 = vnez %v13501_v2  ;;  %v3227_v55 = vpop.f32.mrf.mxu1  ;;  %v5993_v13 = vrot.slane %v5991_v36, 1  ;;  %v6001_v46 = vrot.slane %v5999_v61, 1  ;;  %v5813_v2 = vld [vmem:[#allocation2 + $0x64] sm:$0xf]  ;;  %vm13523_vm6 = vmmov %vm13488_vm9 }
 0x2af   : > { %v8150_v26 = vpop.f32.mrf.mxu0  ;;  %v5842_v62 = vsel %vm13502_vm13, %v5809_v42, 0  ;;  %v11822_v17 = vadd.f32 %v3227_v55, %v11645_v32  ;;  %v6007_v48 = vshll.u32 %v11805_v49, 16  ;;  %v5995_v42 = vshrl.u32 %v7344_v24, 16  ;;  %v13503_v32 = vld [vmem:[#allocation50_spill] sm:$0xff] }
 0x2b0   : > { %8437 = vmatmul.mubr.bf16.gmra.mxu0 %v7329_v30  ;;  %v11819_v12 = vadd.f32 %v8150_v26, %v11730_v20  ;;  %v8175_v43 = vpop.f32.mrf.mxu1  ;;  %v11828_v20 = vcombine.low %v5841_v41, %v5842_v62  ;;  %vm13504_vm10 = vcmp.ne.s16.totalorder %v13503_v32, 0  ;;  %v5812_v41 = vld [vmem:[#allocation2 + $0x60] sm:$0xf] }
 0x2b1   : > { %8461 = vmatmul.mubr.bf16.vlgmr.msra.gmra.mxu1 %v5978_v4  ;;  %8440 = vmatprep.mubr.bf16.mxu0 %v7330_v37  ;;  %v2349_v30 = vpop.f32.mrf.mxu0  ;;  %v5989_v4 = vor.u32 %v5987_v11, %v5985_v27  ;;  %v11832_v26 = vadd.f32 %v8175_v43, %v11649_v53  ;;  %v5843_v27 = vsel %vm13504_vm10, %v5810_v44, 0  ;;  %v13505_v11 = vld [vmem:[#allocation39_spill] sm:$0xff]  ;;  %v5997_v61 = vor.u32 %v5995_v42, %v5993_v13  ;;  %v5814_v42 = vld [vmem:[#allocation2 + $0x68] sm:$0xf] }
 0x2b2   : > { %8464 = vmatprep.mubr.bf16.mxu1 %v5986_v52  ;;  %v11826_v21 = vadd.f32 %v2349_v30, %v11741_v56  ;;  %v8839_v52 = vld [vmem:[#allocation2 + $0x90] sm:$0xf]  ;;  %vm13506_vm7 = vnez %v13505_v11  ;;  %v3230_v24 = vpop.f32.mrf.mxu1  ;;  %v6009_v55 = vrot.slane %v6007_v48, 1  ;;  %v13510_v48 = vld [vmem:[#allocation44_spill] sm:$0xff] }
 0x2b3   : > { %v8151_v37 = vpop.f32.mrf.mxu0  ;;  %v7331_v36 = vcombine.low %v8839_v52, %v11680_v58  ;;  %v5844_v0 = vsel %vm13506_vm7, %v5811_v60, 0  ;;  %v11844_v58 = vadd.f32 %v3230_v24, %v11651_v51  ;;  %v5994_v53 = vsel %vm13488_vm9, %v5989_v4, %v5993_v13  ;;  %v13508_v13 = vld [vmem:[#allocation51_spill] sm:$0xff] }
 0x2b4   : > { %v11839_v56 = vadd.f32 %v8151_v37, %v11752_v50  ;;  %v8178_v30 = vpop.f32.mrf.mxu1  ;;  %v6002_v44 = vsel %vm13507_vm15, %v5997_v61, %v6001_v46  ;;  %v6003_v60 = vshrl.u32 %v11788_v39, 16  ;;  %v6015_v50 = vshll.u32 %v11828_v20, 16  ;;  %v5815_v37 = vld [vmem:[#allocation2 + $0x6c] sm:$0xf]  ;;  %v13512_v61 = vld [vmem:[#allocation52_spill] sm:$0xff] }
 0x2b5   : > { %v11841_v62 = vpop.f32.mrf.mxu0  ;;  %v7348_v43 = vcombine.low %v5843_v27, %v5844_v0  ;;  %v11851_v32 = vadd.f32 %v8178_v30, %v11661_v25  ;;  %v6011_v51 = vshrl.u32 %v11805_v49, 16  ;;  %vm13509_vm8 = vcmp.ne.s16.totalorder %v13508_v13, 0 }
 0x2b6   : > { %v5845_v4 = vsel %vm13509_vm8, %v5812_v41, 0  ;;  %vm13511_vm4 = vnez %v13510_v48  ;;  %v3243_v27 = vpop.f32.mrf.mxu1  ;;  %v6005_v0 = vor.u32 %v6003_v60, %v6001_v46  ;;  %vm13513_vm1 = vcmp.ne.s16.totalorder %v13512_v61, 0  ;;  %v5816_v41 = vld [vmem:[#allocation2 + $0x70] sm:$0xf]  ;;  %v5817_v60 = vld [vmem:[#allocation2 + $0x74] sm:$0xf] }
 0x2b7   : > { %v8154_v52 = vpop.f32.mrf.mxu0  ;;  %v5846_v11 = vsel %vm13511_vm4, %v5813_v2, 0  ;;  %v6013_v25 = vor.u32 %v6011_v51, %v6009_v55  ;;  %v5848_v30 = vsel %vm13359_vm3, %v5815_v37, 0  ;;  %v6019_v37 = vshrl.u32 %v11828_v20, 16  ;;  %v13515_v48 = vld [vmem:[#allocation57_spill] sm:$0xff] }
 0x2b8   : > { %8441 = vmatmul.mubr.bf16.gmra.mxu0 %v7331_v36  ;;  %v11859_v39 = vadd.f32 %v8154_v52, %v11764_v5  ;;  %v11862_v36 = vadd.f32 %v3243_v27, %v11665_v33  ;;  %v8179_v2 = vpop.f32.mrf.mxu1  ;;  %v6017_v5 = vrot.slane %v6015_v50, 1  ;;  %v6023_v52 = vshll.u32 %v7348_v43, 16 }
 0x2b9   : > { %8465 = vmatmul.mubr.bf16.gmra.mxu1 %v5994_v53  ;;  %v2365_v24 = vpop.f32.mrf.mxu0  ;;  %v5847_v53 = vsel %vm13513_vm1, %v5814_v42, 0  ;;  %v11871_v13 = vcombine.low %v5845_v4, %v5846_v11  ;;  %v11874_v33 = vadd.f32 %v8179_v2, %v11669_v28  ;;  %vm13516_vm3 = vcmp.ne.s16.totalorder %v13515_v48, 0 }
 0x2ba   : > { %8468 = vmatprep.mubr.bf16.mxu1 %v6002_v44  ;;  %v11869_v44 = vadd.f32 %v2365_v24, %v11775_v31  ;;  %v3246_v42 = vpop.f32.mrf.mxu1  ;;  %v5849_v31 = vsel %vm13516_vm3, %v5816_v41, 0  ;;  %v6010_v4 = vsel %vm13517_vm14, %v6005_v0, %v6009_v55  ;;  %v6027_v11 = vshrl.u32 %v7348_v43, 16  ;;  %v5818_v0 = vld [vmem:[#allocation2 + $0x78] sm:$0xf] }
 0x2bb   : > { %v8155_v46 = vpop.f32.mrf.mxu0  ;;  %v11885_v50 = vadd.f32 %v3246_v42, %v11674_v15  ;;  %v7350_v28 = vcombine.low %v5847_v53, %v5848_v30  ;;  %v6025_v61 = vrot.slane %v6023_v52, 1  ;;  %v6031_v49 = vshll.u32 %v11871_v13, 16  ;;  %v5819_v53 = vld [vmem:[#allocation2 + $0x7c] sm:$0xf] }
 0x2bc   : > { %v11877_v51 = vadd.f32 %v8155_v46, %v11786_v54  ;;  %v8182_v24 = vpop.f32.mrf.mxu1  ;;  %v6018_v54 = vsel %vm13518_vm12, %v6013_v25, %v6017_v5  ;;  %v5850_v2 = vsel %vm13363_vm2, %v5817_v60, 0  ;;  %v6021_v43 = vor.u32 %v6019_v37, %v6017_v5  ;;  %v13520_v5 = vld [vmem:[#allocation58_spill] sm:$0xff] }
 0x2bd   : > { %v11882_v27 = vpop.f32.mrf.mxu0  ;;  %v11893_v46 = vadd.f32 %v8182_v24, %v11683_v6  ;;  %v6039_v52 = vshll.u32 %v7350_v28, 16  ;;  %v11901_v42 = vcombine.low %v5849_v31, %v5850_v2  ;;  %v6029_v48 = vor.u32 %v6027_v11, %v6025_v61  ;;  %v5820_v11 = vld [vmem:[#allocation2 + $0x80] sm:$0xf] }
 0x2be   : > { %v3259_v55 = vpop.f32.mrf.mxu1  ;;  %vm13521_vm2 = vcmp.ne.s16.totalorder %v13520_v5, 0  ;;  %v6035_v2 = vshrl.u32 %v11871_v13, 16 }
 0x2bf   : > { %v8222_v41 = vpop.f32.mrf.mxu0  ;;  %v11899_v25 = vadd.f32 %v3259_v55, %v11690_v16  ;;  %v5851_v37 = vsel %vm13521_vm2, %v5818_v0, 0  ;;  %v5852_v16 = vsel %vm10941_vm0, %v5819_v53, 0  ;;  %v6041_v55 = vrot.slane %v6039_v52, 1  ;;  %vm13524_vm0 = vmmov %vm13523_vm6 }
 0x2c0   : > { %v11896_v15 = vadd.f32 %v8222_v41, %v11811_v59  ;;  %v8183_v6 = vpop.f32.mrf.mxu1  ;;  %v6043_v0 = vshrl.u32 %v7350_v28, 16  ;;  %vm13533_vm15 = vmmov %vm13524_vm0 }
 0x2c1   : > { %8469 = vmatmul.mubr.bf16.gmra.mxu1 %v6010_v4  ;;  %v3801_v30 = vpop.f32.mrf.mxu0  ;;  %v6033_v4 = vrot.slane %v6031_v49, 1  ;;  %v11907_v59 = vadd.f32 %v8183_v6, %v11694_v35  ;;  %v5821_v49 = vld [vmem:[#allocation2 + $0x84] sm:$0xf]  ;;  %v7352_v6 = vcombine.low %v5851_v37, %v5852_v16  ;;  %vm13534_vm8 = vmmov %vm13524_vm0 }
 0x2c2   : > { %8472 = vmatprep.mubr.bf16.mxu1 %v6018_v54  ;;  %v11904_v60 = vadd.f32 %v3801_v30, %v11822_v17  ;;  %v3262_v31 = vpop.f32.mrf.mxu1  ;;  %v6026_v17 = vsel %vm13523_vm6, %v6021_v43, %v6025_v61  ;;  %v6047_v30 = vshll.u32 %v11901_v42, 16  ;;  %v13525_v43 = vld [vmem:[#allocation59_spill] sm:$0xff]  ;;  %vm13538_vm1 = vmmov %vm13524_vm0 }
 0x2c3   : > { %v8223_v24 = vpop.f32.mrf.mxu0  ;;  %v11921_v35 = vadd.f32 %v3262_v31, %v11703_v19  ;;  %vm13526_vm13 = vcmp.ne.s16.totalorder %v13525_v43, 0  ;;  %v13527_v19 = vld [vmem:[#allocation53_spill] sm:$0xff]  ;;  %v6037_v31 = vor.u32 %v6035_v2, %v6033_v4  ;;  %v13529_v2 = vld [vmem:[#allocation63_spill] sm:$0xff]  ;;  %vm13540_vm3 = vmmov %vm13524_vm0 }
 0x2c4   : > { %v11914_v20 = vadd.f32 %v8223_v24, %v11832_v26  ;;  %v8186_v53 = vpop.f32.mrf.mxu1  ;;  %v6034_v26 = vsel %vm13524_vm0, %v6029_v48, %v6033_v4  ;;  %v8783_v24 = vld [vmem:[#allocation9 + $0x38] sm:$0xff]   ;;  %v5853_v5 = vsel %vm13526_vm13, %v5820_v11, 0  ;;  %vm13528_vm10 = vnez %v13527_v19  ;;  %v5823_v48 = vld [vmem:[#allocation2 + $0x8c] sm:$0xf]  ;;  %vm13541_vm14 = vmmov %vm13524_vm0 }
 0x2c5   : > { %v11918_v41 = vpop.f32.mrf.mxu0  ;;  %v11926_v13 = vadd.f32 %v8186_v53, %v11715_v57  ;;  %v5854_v52 = vsel %vm13528_vm10, %v5821_v49, 0  ;;  %8492 = vmatprep.subr.bf16.mxu0 %v8783_v24  ;;  %v6045_v57 = vor.u32 %v6043_v0, %v6041_v55  ;;  %v6049_v53 = vrot.slane %v6047_v30, 1  ;;  %v5825_v30 = vld [vmem:[#allocation2 + $0x94] sm:$0xf] }
 0x2c6   : > { %v3275_v54 = vpop.f32.mrf.mxu1  ;;  %8493 = vmatpush3.bf16.msra.mxu0 %v8783_v24  ;;  %v6055_v49 = vshll.u32 %v7352_v6, 16  ;;  %v11941_v43 = vcombine.low %v5853_v5, %v5854_v52  ;;  %vm13530_vm7 = vcmp.ne.s16.totalorder %v13529_v2, 0  ;;  %v6051_v5 = vshrl.u32 %v11901_v42, 16 }
 0x2c7   : > { %v8226_v61 = vpop.f32.mrf.mxu0  ;;  %v11936_v16 = vadd.f32 %v3275_v54, %v11720_v7  ;;  %v13531_v7 = vld [vmem:[#allocation71_spill] sm:$0xff]  ;;  %v6042_v54 = vsel %vm13533_vm15, %v6037_v31, %v6041_v55  ;;  %v5858_v42 = vsel %vm13420_vm11, %v5825_v30, 0  ;;  %v8784_v55 = vld [vmem:[#allocation9 + $0x30] sm:$0xff]   ;;  %vm13537_vm11 = vmmov %vm13524_vm0 }
 0x2c8   : > { %v11933_v28 = vadd.f32 %v8226_v61, %v11851_v32  ;;  %v5824_v32 = vld [vmem:[#allocation2 + $0x90] sm:$0xf]  ;;  %vm13532_vm9 = vnez %v13531_v7  ;;  %8494 = vmatprep.subr.bf16.mxu0 %v8784_v55 }
 0x2c9   : > { %8473 = vmatmul.mubr.bf16.gmra.mxu1 %v6026_v17  ;;  %v5822_v17 = vld [vmem:[#allocation2 + $0x88] sm:$0xf]  ;;  %v3817_v37 = vpop.f32.mrf.mxu0  ;;  %v5856_v0 = vsel %vm13532_vm9, %v5823_v48, 0 }
 0x2ca   : > { %8476 = vmatprep.mubr.bf16.mxu1 %v6034_v26  ;;  %v11939_v11 = vadd.f32 %v3817_v37, %v11862_v36  ;;  %v8187_v26 = vpop.f32.mrf.mxu1  ;;  %v5855_v19 = vsel %vm13530_vm7, %v5822_v17, 0  ;;  %v6050_v37 = vsel %vm13534_vm8, %v6045_v57, %v6049_v53  ;;  %v6059_v17 = vshrl.u32 %v7352_v6, 16  ;;  %8495 = vmatpush3.bf16.msra.mxu0 %v8784_v55 }
 0x2cb   : > { %v8227_v61 = vpop.f32.mrf.mxu0  ;;  %v11944_v4 = vadd.f32 %v8187_v26, %v11727_v23  ;;  %v13535_v26 = vld [vmem:[#allocation88_spill] sm:$0xff]  ;;  %v7354_v7 = vcombine.low %v5855_v19, %v5856_v0  ;;  %v5826_v0 = vld [vmem:[#allocation2 + $0x98] sm:$0x1] }
 0x2cc   : > { %v11951_v24 = vadd.f32 %v8227_v61, %v11874_v33  ;;  %v3278_v36 = vpop.f32.mrf.mxu1  ;;  %vm13536_vm4 = vcmp.ne.s16.totalorder %v13535_v26, 0  ;;  %v6057_v33 = vrot.slane %v6055_v49, 1  ;;  %v6063_v61 = vshll.u32 %v11941_v43, 16 }
 0x2cd   : > { %v11955_v52 = vpop.f32.mrf.mxu0  ;;  %v11958_v23 = vadd.f32 %v3278_v36, %v11737_v63  ;;  %v5857_v48 = vsel %vm13536_vm4, %v5824_v32, 0  ;;  %v6053_v36 = vor.u32 %v6051_v5, %v6049_v53  ;;  %v5859_v5 = vsel %vm13455_vm5, %v5826_v0, 0  ;;  %vm13539_vm5 = vmmov %vm13524_vm0 }
 0x2ce   : > { %v8190_v2 = vpop.f32.mrf.mxu1  ;;  %v7355_v19 = vcombine.low %v5857_v48, %v5858_v42  ;;  %v7356_v3 = vcombine.low %v5859_v5, %v5859_v5 }
 0x2cf   : > { %v8230_v31 = vpop.f32.mrf.mxu0  ;;  %v11967_v63 = vadd.f32 %v8190_v2, %v11750_v47  ;;  %v6061_v47 = vor.u32 %v6059_v17, %v6057_v33  ;;  %v6058_v17 = vsel %vm13537_vm11, %v6053_v36, %v6057_v33 }
 0x2d0   : > { %v11970_v6 = vadd.f32 %v8230_v31, %v11893_v46  ;;  %v3291_v57 = vpop.f32.mrf.mxu1  ;;  %v2321_v46 = vadd.f32 %v11766_v34, %v11692_v8  ;;  %v6079_v55 = vshll.u32 %v7355_v19, 16 }
 0x2d1   : > { %8477 = vmatmul.mubr.bf16.gmra.mxu1 %v6042_v54  ;;  %v3833_v32 = vpop.f32.mrf.mxu0  ;;  %v11973_v49 = vadd.f32 %v3291_v57, %v11755_v10  ;;  %v6065_v54 = vrot.slane %v6063_v61, 1  ;;  %v6067_v61 = vshrl.u32 %v11941_v43, 16 }
 0x2d2   : > { %8480 = vmatprep.mubr.bf16.mxu1 %v6050_v37  ;;  %v11976_v14 = vadd.f32 %v3833_v32, %v11899_v25  ;;  %v8191_v30 = vpop.f32.mrf.mxu1  ;;  %v6071_v37 = vshll.u32 %v7354_v7, 16 }
 0x2d3   : > { %v8231_v26 = vpop.f32.mrf.mxu0  ;;  %v3373_v2 = vadd.f32 %v8191_v30, %v11762_v1  ;;  %v6066_v8 = vsel %vm13538_vm1, %v6061_v47, %v6065_v54  ;;  %v6075_v1 = vshrl.u32 %v7354_v7, 16  ;;  %v6069_v36 = vor.u32 %v6067_v61, %v6065_v54 }
 0x2d4   : > { %v11982_v10 = vadd.f32 %v8231_v26, %v11907_v59  ;;  %v3294_v53 = vpop.f32.mrf.mxu1  ;;  %v6073_v34 = vrot.slane %v6071_v37, 1  ;;  %v8785_v59 = vld [vmem:[#allocation9 + $0x28] sm:$0xff]   ;;  %v6081_v37 = vrot.slane %v6079_v55, 1  ;;  %v6083_v26 = vshrl.u32 %v7355_v19, 16 }
 0x2d5   : > { %v11986_v48 = vpop.f32.mrf.mxu0  ;;  %v3371_v25 = vadd.f32 %v3294_v53, %v2321_v46  ;;  %8496 = vmatprep.subr.bf16.mxu0 %v8785_v59  ;;  %v6087_v53 = vshll.u32 %v7356_v3, 16  ;;  %v2353_v3 = vadd.f32 %v11841_v62, %v11757_v45 }
 0x2d6   : > { %v8194_v42 = vpop.f32.mrf.mxu1  ;;  %8497 = vmatpush3.bf16.msra.mxu0 %v8785_v59  ;;  %v6077_v47 = vor.u32 %v6075_v1, %v6073_v34 }
 0x2d7   : > { %v8234_v31 = vpop.f32.mrf.mxu0  ;;  %v3376_v57 = vadd.f32 %v8194_v42, %v11784_v29  ;;  %v2337_v29 = vadd.f32 %v11802_v38, %v11722_v9  ;;  %v6089_v19 = vrot.slane %v6087_v53, 1 }
 0x2d8   : > { %v11993_v32 = vadd.f32 %v8234_v31, %v11926_v13  ;;  %v3307_v0 = vpop.f32.mrf.mxu1  ;;  %v6082_v42 = vsel %vm13540_vm3, %v6077_v47, %v6081_v37 }
 0x2d9   : > { %8481 = vmatmul.mubr.bf16.gmra.mxu1 %v6058_v17  ;;  %v3849_v33 = vpop.f32.mrf.mxu0  ;;  %v3374_v43 = vadd.f32 %v3307_v0, %v11791_v22 }
 0x2da   : > { %8484 = vmatprep.mubr.bf16.mxu1 %v6066_v8  ;;  %v11997_v30 = vadd.f32 %v3849_v33, %v11936_v16  ;;  %v8195_v7 = vpop.f32.mrf.mxu1  ;;  %v6074_v16 = vsel %vm13539_vm5, %v6069_v36, %v6073_v34  ;;  %v8786_v8 = vld [vmem:[#allocation9 + $0x20] sm:$0xff]  }
 0x2db   : > { %v8235_v46 = vpop.f32.mrf.mxu0  ;;  %v3377_v13 = vadd.f32 %v8195_v7, %v11800_v18  ;;  %v6085_v18 = vor.u32 %v6083_v26, %v6081_v37  ;;  %8498 = vmatprep.subr.bf16.mxu0 %v8786_v8 }
 0x2dc   : > { %v12003_v5 = vadd.f32 %v8235_v46, %v11944_v4  ;;  %v3310_v22 = vpop.f32.mrf.mxu1  ;;  %8499 = vmatpush3.bf16.msra.mxu0 %v8786_v8 }
 0x2dd   : > { %v12005_v54 = vpop.f32.mrf.mxu0  ;;  %v3375_v17 = vadd.f32 %v3310_v22, %v2337_v29  ;;  %v6090_v33 = vsel %vm13541_vm14, %v6085_v18, %v6089_v19  ;;  %v8788_v18 = vld [vmem:[#allocation9 + $0x10] sm:$0xff]  }
 0x2de   : > { %v8198_v61 = vpop.f32.mrf.mxu1 }
 0x2df   : > { %v8238_v9 = vpop.f32.mrf.mxu0  ;;  %v3380_v38 = vadd.f32 %v8198_v61, %v11819_v12 }
 0x2e0   : > { %v12011_v4 = vadd.f32 %v8238_v9, %v11967_v63  ;;  %v3323_v1 = vpop.f32.mrf.mxu1 }
 0x2e1   : > { %8485 = vmatmul.mubr.bf16.gmra.mxu1 %v6074_v16  ;;  %v3865_v55 = vpop.f32.mrf.mxu0  ;;  %v3378_v59 = vadd.f32 %v3323_v1, %v11826_v21 }
 0x2e2   : > { %8488 = vmatprep.mubr.bf16.mxu1 %v6082_v42  ;;  %v12015_v34 = vadd.f32 %v3865_v55, %v11973_v49  ;;  %v8199_v31 = vpop.f32.mrf.mxu1  ;;  %v8787_v49 = vld [vmem:[#allocation9 + $0x18] sm:$0xff]  }
 0x2e3   : > { %v8239_v12 = vpop.f32.mrf.mxu0  ;;  %v3381_v0 = vadd.f32 %v8199_v31, %v11839_v56  ;;  %8500 = vmatprep.subr.bf16.mxu0 %v8787_v49 }
 0x2e4   : > { %v12021_v63 = vadd.f32 %v8239_v12, %v3373_v2  ;;  %v3326_v36 = vpop.f32.mrf.mxu1  ;;  %8501 = vmatpush3.bf16.msra.mxu0 %v8787_v49 }
 0x2e5   : > { %v3868_v7 = vpop.f32.mrf.mxu0  ;;  %v3379_v47 = vadd.f32 %v3326_v36, %v2353_v3  ;;  %8502 = vmatprep.subr.bf16.mxu0 %v8788_v18  ;;  %v8789_v36 = vld [vmem:[#allocation9 + $0x8] sm:$0xff]  }
 0x2e6   : > { %v12023_v37 = vadd.f32 %v3868_v7, %v3371_v25  ;;  %v8202_v21 = vpop.f32.mrf.mxu1  ;;  %v2369_v25 = vadd.f32 %v11882_v27, %v11793_v40 }
 0x2e7   : > { %v8242_v29 = vpop.f32.mrf.mxu0  ;;  %v3384_v46 = vadd.f32 %v8202_v21, %v11859_v39 }
 0x2e8   : > { %v12026_v26 = vadd.f32 %v8242_v29, %v3376_v57  ;;  %v3339_v45 = vpop.f32.mrf.mxu1  ;;  %8503 = vmatpush3.bf16.msra.mxu0 %v8788_v18 }
 0x2e9   : > { %8489 = vmatmul.mubr.bf16.gmra.mxu1 %v6090_v33  ;;  %v3881_v56 = vpop.f32.mrf.mxu0  ;;  %v3382_v62 = vadd.f32 %v3339_v45, %v11869_v44  ;;  %8504 = vmatprep.subr.bf16.mxu0 %v8789_v36 }
 0x2ea   : > { %v12029_v2 = vadd.f32 %v3881_v56, %v3374_v43  ;;  %v8203_v53 = vpop.f32.mrf.mxu1 }
 0x2eb   : > { %v8243_v22 = vpop.f32.mrf.mxu0  ;;  %v3385_v16 = vadd.f32 %v8203_v53, %v11877_v51 }
 0x2ec   : > { %v12034_v61 = vadd.f32 %v8243_v22, %v3377_v13  ;;  %v3342_v39 = vpop.f32.mrf.mxu1  ;;  %8505 = vmatpush3.bf16.msra.mxu0 %v8789_v36  ;;  %v8790_v22 = vld [vmem:[#allocation9] sm:$0xff]  }
 0x2ed   : > { %v3884_v57 = vpop.f32.mrf.mxu0  ;;  %v3383_v42 = vadd.f32 %v3342_v39, %v2369_v25  ;;  %8506 = vmatprep.subr.bf16.mxu0 %v8790_v22 }
 0x2ee   : > { %v12036_v8 = vadd.f32 %v3884_v57, %v3375_v17  ;;  %v8270_v9 = vpop.f32.mrf.mxu1  ;;  %v3929_v17 = vadd.f32 %v11918_v41, %v11844_v58 }
 0x2ef   : > { %v8246_v44 = vpop.f32.mrf.mxu0  ;;  %v4283_v43 = vadd.f32 %v8270_v9, %v11896_v15 }
 0x2f0   : > { %v12039_v19 = vadd.f32 %v8246_v44, %v3380_v38  ;;  %v4154_v1 = vpop.f32.mrf.mxu1  ;;  %8507 = vmatpush3.bf16.msra.mxu0 %v8790_v22 }
 0x2f1   : > { %v3897_v40 = vpop.f32.mrf.mxu0  ;;  %v4281_v27 = vadd.f32 %v4154_v1, %v11904_v60 }
 0x2f2   : > { %v12042_v51 = vadd.f32 %v3897_v40, %v3378_v59  ;;  %v8271_v13 = vpop.f32.mrf.mxu1 }
 0x2f3   : > { %v8247_v55 = vpop.f32.mrf.mxu0  ;;  %v12047_v31 = vadd.f32 %v8271_v13, %v11914_v20 }
 0x2f4   : > { %v12049_v3 = vadd.f32 %v8247_v55, %v3381_v0  ;;  %v4157_v15 = vpop.f32.mrf.mxu1 }
 0x2f5   : > { %v3900_v38 = vpop.f32.mrf.mxu0  ;;  %v12051_v12 = vadd.f32 %v4157_v15, %v3929_v17 }
 0x2f6   : > { %v12053_v33 = vadd.f32 %v3900_v38, %v3379_v47  ;;  %v8274_v60 = vpop.f32.mrf.mxu1  ;;  %v3933_v47 = vadd.f32 %v11955_v52, %v11885_v50 }
 0x2f7   : > { %v8250_v59 = vpop.f32.mrf.mxu0  ;;  %v4287_v7 = vadd.f32 %v8274_v60, %v11933_v28 }
 0x2f8   : > { %v12056_v21 = vadd.f32 %v8250_v59, %v3384_v46  ;;  %v4170_v58 = vpop.f32.mrf.mxu1 }
 0x2f9   : > { %v3913_v41 = vpop.f32.mrf.mxu0  ;;  %v4285_v20 = vadd.f32 %v4170_v58, %v11939_v11 }
 0x2fa   : > { %v12059_v0 = vadd.f32 %v3913_v41, %v3382_v62  ;;  %v8275_v49 = vpop.f32.mrf.mxu1 }
 0x2fb   : > { %v8251_v29 = vpop.f32.mrf.mxu0  ;;  %v12064_v45 = vadd.f32 %v8275_v49, %v11951_v24 }
 0x2fc   : > { %v12066_v56 = vadd.f32 %v8251_v29, %v3385_v16  ;;  %v4173_v28 = vpop.f32.mrf.mxu1 }
 0x2fd   : > { %v3916_v46 = vpop.f32.mrf.mxu0  ;;  %v12068_v53 = vadd.f32 %v4173_v28, %v3933_v47 }
 0x2fe   : > { %v12070_v25 = vadd.f32 %v3916_v46, %v3383_v42  ;;  %v8278_v11 = vpop.f32.mrf.mxu1  ;;  %v3937_v42 = vadd.f32 %v11986_v48, %v11921_v35 }
 0x2ff   : > { %v8318_v62 = vpop.f32.mrf.mxu0  ;;  %v4291_v39 = vadd.f32 %v8278_v11, %v11970_v6 }
 0x300   : > { %v12073_v57 = vadd.f32 %v8318_v62, %v4283_v43  ;;  %v4186_v50 = vpop.f32.mrf.mxu1 }
 0x301   : > { %v4708_v52 = vpop.f32.mrf.mxu0  ;;  %v4289_v24 = vadd.f32 %v4186_v50, %v11976_v14 }
 0x302   : > { %v12076_v16 = vadd.f32 %v4708_v52, %v4281_v27  ;;  %v8279_v9 = vpop.f32.mrf.mxu1 }
 0x303   : > { %v12080_v18 = vpop.f32.mrf.mxu0  ;;  %v12083_v44 = vadd.f32 %v8279_v9, %v11982_v10  ;;  %v3941_v10 = vadd.f32 %v12005_v54, %v11958_v23 }
 0x304   : > { %v4189_v6 = vpop.f32.mrf.mxu1 }
 0x305   : > { %v12085_v43 = vpop.f32.mrf.mxu0  ;;  %v12087_v1 = vadd.f32 %v4189_v6, %v3937_v42 }
 0x306   : > { %v8282_v40 = vpop.f32.mrf.mxu1 }
 0x307   : > { %v8322_v13 = vpop.f32.mrf.mxu0  ;;  %v4295_v14 = vadd.f32 %v8282_v40, %v11993_v32 }
 0x308   : > { %v12090_v27 = vadd.f32 %v8322_v13, %v4287_v7  ;;  %v4202_v17 = vpop.f32.mrf.mxu1 }
 0x309   : > { %v4724_v55 = vpop.f32.mrf.mxu0  ;;  %v4293_v35 = vadd.f32 %v4202_v17, %v11997_v30 }
 0x30a   : > { %v12093_v48 = vadd.f32 %v4724_v55, %v4285_v20  ;;  %v8283_v15 = vpop.f32.mrf.mxu1 }
 0x30b   : > { %v12097_v38 = vpop.f32.mrf.mxu0  ;;  %v12100_v60 = vadd.f32 %v8283_v15, %v12003_v5 }
 0x30c   : > { %v4205_v36 = vpop.f32.mrf.mxu1 }
 0x30d   : > { %v12102_v59 = vpop.f32.mrf.mxu0  ;;  %v12104_v32 = vadd.f32 %v4205_v36, %v3941_v10 }
 0x30e   : > { %v8286_v7 = vpop.f32.mrf.mxu1 }
 0x30f   : > { %v8326_v58 = vpop.f32.mrf.mxu0  ;;  %v4299_v30 = vadd.f32 %v8286_v7, %v12011_v4 }
 0x310   : > { %v12107_v41 = vadd.f32 %v8326_v58, %v4291_v39  ;;  %v4218_v20 = vpop.f32.mrf.mxu1 }
 0x311   : > { %v4740_v49 = vpop.f32.mrf.mxu0  ;;  %v4297_v23 = vadd.f32 %v4218_v20, %v12015_v34 }
 0x312   : > { %v12110_v54 = vadd.f32 %v4740_v49, %v4289_v24  ;;  %v8287_v47 = vpop.f32.mrf.mxu1 }
 0x313   : > { %v12112_v5 = vpop.f32.mrf.mxu0  ;;  %v12115_v29 = vadd.f32 %v8287_v47, %v12021_v63 }
 0x314   : > { %v4221_v28 = vpop.f32.mrf.mxu1 }
 0x315   : > { %v12117_v46 = vpop.f32.mrf.mxu0  ;;  %v12120_v11 = vadd.f32 %v4221_v28, %v12023_v37 }
 0x316   : > { %v8290_v4 = vpop.f32.mrf.mxu1 }
 0x317   : > { %13542 = vst [vmem:[#allocation83_spill] sm:$0xff] %v12120_v11  ;;  %v8330_v22 = vpop.f32.mrf.mxu0  ;;  %v4303_v62 = vadd.f32 %v8290_v4, %v12026_v26 }
 0x318   : > { %v12123_v39 = vadd.f32 %v8330_v22, %v4295_v14  ;;  %v4234_v34 = vpop.f32.mrf.mxu1 }
 0x319   : > { %v4756_v50 = vpop.f32.mrf.mxu0  ;;  %v4301_v52 = vadd.f32 %v4234_v34, %v12029_v2 }
 0x31a   : > { %v12126_v24 = vadd.f32 %v4756_v50, %v4293_v35  ;;  %v8291_v63 = vpop.f32.mrf.mxu1 }
 0x31b   : > { %v12128_v9 = vpop.f32.mrf.mxu0  ;;  %v12131_v42 = vadd.f32 %v8291_v63, %v12034_v61 }
 0x31c   : > { %v4237_v37 = vpop.f32.mrf.mxu1 }
 0x31d   : > { %13543 = vst [vmem:[#allocation75_spill] sm:$0xff] %v12131_v42  ;;  %v12133_v6 = vpop.f32.mrf.mxu0  ;;  %v12136_v40 = vadd.f32 %v4237_v37, %v12036_v8 }
 0x31f   : > { %13544 = vst [vmem:[#allocation26_spill] sm:$0xff] %v12136_v40  ;;  %v8294_v26 = vpop.f32.mrf.mxu1  ;;  %v8334_v13 = vpop.f32.mrf.mxu0 }
 0x320   : > { %v4307_v14 = vadd.f32 %v8294_v26, %v12039_v19  ;;  %v12139_v17 = vadd.f32 %v8334_v13, %v4299_v30 }
 0x321   : > { %v4250_v2 = vpop.f32.mrf.mxu1  ;;  %v4772_v55 = vpop.f32.mrf.mxu0 }
 0x322   : > { %v4305_v35 = vadd.f32 %v4250_v2, %v12042_v51  ;;  %v12142_v15 = vadd.f32 %v4772_v55, %v4297_v23 }
 0x323   : > { %v8295_v61 = vpop.f32.mrf.mxu1  ;;  %v12144_v10 = vpop.f32.mrf.mxu0 }
 0x324   : > { %v12147_v36 = vadd.f32 %v8295_v61, %v12049_v3 }
 0x325   : > { %v4253_v8 = vpop.f32.mrf.mxu1  ;;  %v12149_v7 = vpop.f32.mrf.mxu0 }
 0x326   : > { %13545 = vst [vmem:[#allocation19_spill] sm:$0xff] %v12147_v36  ;;  %13546 = vst [vmem:[#allocation85_spill] sm:$0xff] %v12149_v7  ;;  %v12152_v58 = vadd.f32 %v4253_v8, %v12053_v33 }
 0x327   : > { %v8338_v30 = vpop.f32.mrf.mxu0 }
 0x328   : > { %13547 = vst [vmem:[#allocation18_spill] sm:$0xff] %v12152_v58  ;;  %v12155_v49 = vadd.f32 %v8338_v30, %v4303_v62 }
 0x329   : > { %v8298_v19 = vpop.f32.mrf.mxu1  ;;  %v4788_v23 = vpop.f32.mrf.mxu0 }
 0x32a   : > { %v4311_v20 = vadd.f32 %v8298_v19, %v12056_v21  ;;  %v12158_v28 = vadd.f32 %v4788_v23, %v4301_v52 }
 0x32b   : > { %v4266_v51 = vpop.f32.mrf.mxu1  ;;  %v12160_v4 = vpop.f32.mrf.mxu0 }
 0x32c   : > { %v4309_v47 = vadd.f32 %v4266_v51, %v12059_v0  ;;  %13548 = vst [vmem:[#allocation84_spill] sm:$0xff] %v12160_v4 }
 0x32d   : > { %v8299_v3 = vpop.f32.mrf.mxu1  ;;  %v12165_v34 = vpop.f32.mrf.mxu0 }
 0x32e   : > { %v12163_v22 = vadd.f32 %v8299_v3, %v12066_v56  ;;  %13550 = vst [vmem:[#allocation27_spill] sm:$0xff] %v12165_v34 }
 0x32f   : > { %v4269_v33 = vpop.f32.mrf.mxu1 }
 0x330   : > { %13549 = vst [vmem:[#allocation62_spill] sm:$0xff] %v12163_v22  ;;  %v12168_v50 = vadd.f32 %v4269_v33, %v12070_v25  ;;  %v8342_v62 = vpop.f32.mrf.mxu0 }
 0x331   : > { %v8366_v21 = vpop.f32.mrf.mxu1  ;;  %v4861_v0 = vadd.f32 %v8342_v62, %v4307_v14 }
 0x332   : > { %13551 = vst [vmem:[#allocation89_spill] sm:$0xff] %v12168_v50  ;;  %v12171_v63 = vadd.f32 %v8366_v21, %v12073_v57  ;;  %v4804_v37 = vpop.f32.mrf.mxu0 }
 0x333   : > { %v5282_v52 = vpop.f32.mrf.mxu1  ;;  %v4859_v13 = vadd.f32 %v4804_v37, %v4305_v35 }
 0x334   : > { %v12174_v26 = vadd.f32 %v5282_v52, %v12076_v16  ;;  %v12178_v2 = vpop.f32.mrf.mxu0 }
 0x335   : > { %v12176_v56 = vpop.f32.mrf.mxu1  ;;  %13552 = vst [vmem:[#allocation21_spill] sm:$0xff] %v12178_v2 }
 0x336   : > { %v12182_v25 = vpop.f32.mrf.mxu0 }
 0x337   : > { %v12180_v55 = vpop.f32.mrf.mxu1  ;;  %13553 = vst [vmem:[#allocation87_spill] sm:$0xff] %v12182_v25 }
 0x338   : > { %v8346_v8 = vpop.f32.mrf.mxu0 }
 0x339   : > { %v8370_v61 = vpop.f32.mrf.mxu1  ;;  %v4865_v14 = vadd.f32 %v8346_v8, %v4311_v20 }
 0x33a   : > { %v12185_v57 = vadd.f32 %v8370_v61, %v12090_v27  ;;  %v4820_v30 = vpop.f32.mrf.mxu0 }
 0x33b   : > { %v5298_v19 = vpop.f32.mrf.mxu1  ;;  %v4863_v35 = vadd.f32 %v4820_v30, %v4309_v47 }
 0x33c   : > { %v12188_v16 = vadd.f32 %v5298_v19, %v12093_v48  ;;  %v12192_v23 = vpop.f32.mrf.mxu0 }
 0x33d   : > { %v12190_v51 = vpop.f32.mrf.mxu1  ;;  %13554 = vst [vmem:[#allocation92_spill] sm:$0xff] %v12192_v23 }
 0x33e   : > { %v12196_v33 = vpop.f32.mrf.mxu0 }
 0x33f   : > { %v12194_v3 = vpop.f32.mrf.mxu1  ;;  %13555 = vst [vmem:[#allocation90_spill] sm:$0xff] %v12196_v33 }
 0x340   : > { %v8414_v62 = vpop.f32.mrf.mxu0 }
 0x341   : > { %v8374_v21 = vpop.f32.mrf.mxu1 }
 0x342   : > { %v12199_v27 = vadd.f32 %v8374_v21, %v12107_v41  ;;  %v5635_v52 = vpop.f32.mrf.mxu0 }
 0x343   : > { %v5314_v20 = vpop.f32.mrf.mxu1 }
 0x344   : > { %v12202_v37 = vadd.f32 %v5314_v20, %v12110_v54  ;;  %v8415_v47 = vpop.f32.mrf.mxu0 }
 0x345   : > { %v12204_v48 = vpop.f32.mrf.mxu1 }
 0x346   : > { %v5638_v8 = vpop.f32.mrf.mxu0 }
 0x347   : > { %v12206_v61 = vpop.f32.mrf.mxu1 }
 0x348   : > { %v8418_v30 = vpop.f32.mrf.mxu0 }
 0x349   : > { %v8378_v19 = vpop.f32.mrf.mxu1 }
 0x34a   : > { %v12209_v33 = vadd.f32 %v8378_v19, %v12123_v39  ;;  %v12211_v23 = vpop.f32.mrf.mxu0 }
 0x34b   : > { %v5330_v50 = vpop.f32.mrf.mxu1 }
 0x34c   : > { %v12214_v41 = vadd.f32 %v5330_v50, %v12126_v24  ;;  %v12218_v54 = vpop.f32.mrf.mxu0 }
 0x34d   : > { %v12216_v21 = vpop.f32.mrf.mxu1 }
 0x34e   : > { %v12222_v22 = vpop.f32.mrf.mxu0 }
 0x34f   : > { %v12220_v20 = vpop.f32.mrf.mxu1 }
 0x350   : > { %v12224_v58 = vpop.f32.mrf.mxu0 }
 0x351   : > { %v8382_v25 = vpop.f32.mrf.mxu1 }
 0x352   : > { %v12227_v39 = vadd.f32 %v8382_v25, %v12139_v17  ;;  %v12229_v2 = vpop.f32.mrf.mxu0 }
 0x353   : > { %v5346_v19 = vpop.f32.mrf.mxu1 }
 0x354   : > { %13556 = vst [vmem:[#allocation30_spill] sm:$0xff] %v12227_v39  ;;  %v12232_v24 = vadd.f32 %v5346_v19, %v12142_v15  ;;  %v12236_v36 = vpop.f32.mrf.mxu0 }
 0x355   : > { %v12234_v50 = vpop.f32.mrf.mxu1 }
 0x356   : > { %13557 = vst [vmem:[#allocation94_spill] sm:$0xff] %v12232_v24  ;;  %13558 = vst [vmem:[#allocation25_spill] sm:$0xff] %v12234_v50  ;;  %v12243_v42 = vpop.f32.mrf.mxu0 }
 0x357   : > { %v12238_v34 = vpop.f32.mrf.mxu1 }
 0x358   : > { %13559 = vst [vmem:[#allocation93_spill] sm:$0xff] %v12238_v34  ;;  %v12250_v15 = vpop.f32.mrf.mxu0 }
 0x359   : > { %v8386_v40 = vpop.f32.mrf.mxu1 }
 0x35a   : > { %v12241_v4 = vadd.f32 %v8386_v40, %v12155_v49  ;;  %v12256_v34 = vpop.f32.mrf.mxu0 }
 0x35b   : > { %v5362_v17 = vpop.f32.mrf.mxu1 }
 0x35c   : > { %13560 = vst [vmem:[#allocation29_spill] sm:$0xff] %v12241_v4  ;;  %v12246_v25 = vadd.f32 %v5362_v17, %v12158_v28  ;;  %v12262_v4 = vpop.f32.mrf.mxu0 }
 0x35d   : > { %v12248_v7 = vpop.f32.mrf.mxu1 }
 0x35e   : > { %13561 = vst [vmem:[#allocation95_spill] sm:$0xff] %v12246_v25  ;;  %13562 = vst [vmem:[#allocation65_spill] sm:$0xff] %v12248_v7  ;;  %v12268_v7 = vpop.f32.mrf.mxu0 }
 0x35f   : > { %v12252_v19 = vpop.f32.mrf.mxu1 }
 0x360   : > { %13563 = vst [vmem:[#allocation97_spill] sm:$0xff] %v12252_v19 }
 0x361   : > { %v8390_v24 = vpop.f32.mrf.mxu1 }
 0x362   : > { %v12254_v50 = vadd.f32 %v8390_v24, %v4861_v0  ;;  %v12274_v24 = vpop.f32.mrf.mxu0 }
 0x363   : > { %v5378_v11 = vpop.f32.mrf.mxu1 }
 0x364   : > { %v12258_v40 = vadd.f32 %v5378_v11, %v4859_v13  ;;  %v4838_v13 = vadd.f32 %v12080_v18, %v12047_v31 }
 0x365   : > { %v12260_v49 = vpop.f32.mrf.mxu1 }
 0x366   : > { %13564 = vst [vmem:[#allocation16_spill] sm:$0xff] %v12258_v40  ;;  %v5764_v40 = vadd.f32 %v8414_v62, %v12171_v63 }
 0x367   : > { %v12264_v28 = vpop.f32.mrf.mxu1 }
 0x368   : > { %13565 = vst [vmem:[#allocation54_spill] sm:$0xff] %v12264_v28 }
 0x369   : > { %v8394_v17 = vpop.f32.mrf.mxu1 }
 0x36a   : > { %v12266_v25 = vadd.f32 %v8394_v17, %v4865_v14  ;;  %v4836_v14 = vadd.f32 %v12085_v43, %v12051_v12  ;;  %v5412_v17 = vadd.f32 %v12176_v56, %v4838_v13 }
 0x36b   : > { %v5394_v19 = vpop.f32.mrf.mxu1 }
 0x36c   : > { %13566 = vst [vmem:[#allocation73_spill] sm:$0xff] %v12266_v25  ;;  %v12270_v39 = vadd.f32 %v5394_v19, %v4863_v35  ;;  %v5762_v35 = vadd.f32 %v5635_v52, %v12174_v26  ;;  %v5410_v31 = vadd.f32 %v12180_v55, %v4836_v14  ;;  %v5765_v18 = vadd.f32 %v8415_v47, %v5412_v17 }
 0x36d   : > { %v12272_v0 = vpop.f32.mrf.mxu1  ;;  %v4842_v26 = vadd.f32 %v12097_v38, %v12064_v45  ;;  %v4840_v47 = vadd.f32 %v12102_v59, %v12068_v53 }
 0x36e   : > { %13567 = vst [vmem:[#allocation61_spill] sm:$0xff] %v12270_v39  ;;  %13568 = vst [vmem:[#allocation68_spill] sm:$0xff] %v12272_v0  ;;  %v12285_v39 = vpop.f32.mrf.mxu0  ;;  %v5763_v25 = vadd.f32 %v5638_v8, %v5410_v31 }
 0x36f   : > { %v12276_v11 = vpop.f32.mrf.mxu1  ;;  %v5416_v8 = vadd.f32 %v12190_v51, %v4842_v26 }
 0x370   : > { %13569 = vst [vmem:[#allocation69_spill] sm:$0xff] %v12276_v11  ;;  %v12290_v11 = vld [vmem:[%s12539_s4] ss:$0 sm:$0xff]  ;;  %v12296_v56 = vpop.f32.mrf.mxu0 }
 0x371   : > { %v8462_v28 = vpop.f32.mrf.mxu1 }
 0x372   : > { %v6318_v19 = vadd.f32 %v8462_v28, %v5764_v40  ;;  %v5768_v40 = vadd.f32 %v8418_v30, %v12185_v57  ;;  %v5414_v57 = vadd.f32 %v12194_v3, %v4840_v47  ;;  %v5769_v30 = vadd.f32 %v12218_v54, %v5416_v8 }
 0x373   : > { %v6189_v0 = vpop.f32.mrf.mxu1 }
 0x374   : > { %v6316_v63 = vadd.f32 %v6189_v0, %v5762_v35  ;;  %v6357_v12 = vadd.f32 %v12290_v11, %v6318_v19  ;;  %v5766_v0 = vadd.f32 %v12211_v23, %v12188_v16  ;;  %v12309_v19 = vpop.f32.mrf.mxu0  ;;  %v5767_v16 = vadd.f32 %v12222_v22, %v5414_v57 }
 0x375   : > { %v8463_v62 = vpop.f32.mrf.mxu1  ;;  %v4844_v22 = vadd.f32 %v12117_v46, %v12087_v1  ;;  %v4850_v57 = vadd.f32 %v12128_v9, %v12100_v60  ;;  %v5774_v60 = vadd.f32 %v12256_v34, %v12214_v41 }
 0x376   : > { %v6319_v43 = vadd.f32 %v8463_v62, %v5765_v18  ;;  %v6355_v28 = vadd.f32 %v12290_v11, %v6316_v63  ;;  %v6389_v45 = vmax.f32 %v6357_v12, 0.0  ;;  %v4846_v12 = vadd.f32 %v12112_v5, %v12083_v44  ;;  %v12315_v3 = vpop.f32.mrf.mxu0 }
 0x377   : > { %v6192_v52 = vpop.f32.mrf.mxu1  ;;  %v5770_v44 = vadd.f32 %v12229_v2, %v12202_v37  ;;  %v5418_v47 = vadd.f32 %v12206_v61, %v4844_v22 }
 0x378   : > { %v6358_v13 = vadd.f32 %v12290_v11, %v6319_v43  ;;  %v6317_v55 = vadd.f32 %v6192_v52, %v5763_v25  ;;  %v6387_v31 = vmax.f32 %v6355_v28, 0.0  ;;  %v5772_v43 = vadd.f32 %v12224_v58, %v12199_v27 }
 0x379   : > { %v8466_v14 = vpop.f32.mrf.mxu1  ;;  %v5420_v28 = vadd.f32 %v12204_v48, %v4846_v12  ;;  %v5771_v2 = vadd.f32 %v12243_v42, %v5418_v47  ;;  %v4848_v42 = vadd.f32 %v12133_v6, %v12104_v32  ;;  %v13574_v47 = vld [vmem:[#allocation94_spill] sm:$0xff] }
 0x37a   : > { %v6390_v38 = vmax.f32 %v6358_v13, 0.0  ;;  %v6356_v17 = vadd.f32 %v12290_v11, %v6317_v55  ;;  %v6322_v35 = vadd.f32 %v8466_v14, %v5768_v40 }
 0x37b   : > { %v6205_v25 = vpop.f32.mrf.mxu1  ;;  %v5773_v8 = vadd.f32 %v12236_v36, %v5420_v28 }
 0x37c   : > { %v6420_v53 = vpack.c.bf16 %v6390_v38, %v6389_v45  ;;  %v6388_v59 = vmax.f32 %v6356_v17, 0.0  ;;  %v6320_v51 = vadd.f32 %v6205_v25, %v5766_v0  ;;  %v6361_v23 = vadd.f32 %v12290_v11, %v6322_v35  ;;  %v12329_v0 = vpop.f32.mrf.mxu0 }
 0x37d   : > { %v8467_v18 = vpop.f32.mrf.mxu1 }
 0x37e   : > { %v6323_v63 = vadd.f32 %v8467_v18, %v5769_v30  ;;  %v6419_v62 = vpack.c.bf16 %v6388_v59, %v6387_v31  ;;  %v6359_v26 = vadd.f32 %v12290_v11, %v6320_v51  ;;  %v6393_v13 = vmax.f32 %v6361_v23, 0.0  ;;  %v12335_v61 = vpop.f32.mrf.mxu0 }
 0x37f   : > { %v6208_v54 = vpop.f32.mrf.mxu1  ;;  %v5776_v30 = vadd.f32 %v12250_v15, %v12209_v33  ;;  %v5424_v59 = vadd.f32 %v12216_v21, %v4850_v57 }
 0x380   : > { %v6362_v52 = vadd.f32 %v12290_v11, %v6323_v63  ;;  %v6321_v40 = vadd.f32 %v6208_v54, %v5767_v16  ;;  %8508 = vmatprep.mubr.bf16.mxu0 %v6419_v62  ;;  %v6391_v1 = vmax.f32 %v6359_v26, 0.0  ;;  %v5422_v16 = vadd.f32 %v12220_v20, %v4848_v42  ;;  %v12349_v63 = vpop.f32.mrf.mxu0  ;;  %v13577_v42 = vld [vmem:[#allocation84_spill] sm:$0xff] }
 0x381   : > { %v8470_v5 = vpop.f32.mrf.mxu1  ;;  %8509 = vmatmul.mubr.bf16.vlgmr.msra.gmra.mxu0 %v6420_v53  ;;  %v5777_v23 = vadd.f32 %v12262_v4, %v5424_v59  ;;  %v13570_v4 = vld [vmem:[#allocation30_spill] sm:$0xff] }
 0x382   : > { %v6394_v55 = vmax.f32 %v6362_v52, 0.0  ;;  %v6360_v58 = vadd.f32 %v12290_v11, %v6321_v40  ;;  %v6326_v27 = vadd.f32 %v8470_v5, %v5772_v43  ;;  %v5775_v34 = vadd.f32 %v12268_v7, %v5422_v16  ;;  %v8438_v20 = vpop.f32.mrf.mxu0  ;;  %v13572_v7 = vld [vmem:[#allocation85_spill] sm:$0xff]  ;;  %v13579_v16 = vld [vmem:[#allocation26_spill] sm:$0xff] }
 0x383   : > { %v6221_v14 = vpop.f32.mrf.mxu1  ;;  %v4854_v52 = vadd.f32 %v12144_v10, %v12115_v29  ;;  %v5780_v22 = vadd.f32 %v12274_v24, %v13570_v4 }
 0x384   : > { %v6422_v46 = vpack.c.bf16 %v6394_v55, %v6393_v13  ;;  %v6392_v48 = vmax.f32 %v6360_v58, 0.0  ;;  %v6324_v45 = vadd.f32 %v6221_v14, %v5770_v44  ;;  %v6365_v37 = vadd.f32 %v12290_v11, %v6326_v27  ;;  %v13571_v13 = vld [vmem:[#allocation83_spill] sm:$0xff]  ;;  %v13573_v58 = vld [vmem:[#allocation25_spill] sm:$0xff] }
 0x385   : > { %v8471_v38 = vpop.f32.mrf.mxu1  ;;  %v4852_v55 = vadd.f32 %v13572_v7, %v13571_v13  ;;  %v5428_v27 = vadd.f32 %v13573_v58, %v4854_v52 }
 0x386   : > { %v6327_v17 = vadd.f32 %v8471_v38, %v5773_v8  ;;  %v6421_v35 = vpack.c.bf16 %v6392_v48, %v6391_v1  ;;  %v6363_v25 = vadd.f32 %v12290_v11, %v6324_v45  ;;  %v6397_v51 = vmax.f32 %v6365_v37, 0.0  ;;  %v5731_v38 = vpop.f32.mrf.mxu0 }
 0x387   : > { %v6224_v36 = vpop.f32.mrf.mxu1  ;;  %v5778_v8 = vadd.f32 %v12285_v39, %v13574_v47  ;;  %v5781_v45 = vadd.f32 %v12296_v56, %v5428_v27  ;;  %v13584_v27 = vld [vmem:[#allocation19_spill] sm:$0xff]  ;;  %v13585_v47 = vld [vmem:[#allocation21_spill] sm:$0xff] }
 0x388   : > { %v6366_v31 = vadd.f32 %v12290_v11, %v6327_v17  ;;  %v6325_v53 = vadd.f32 %v6224_v36, %v5771_v2  ;;  %8512 = vmatprep.mubr.bf16.mxu0 %v6421_v35  ;;  %v6395_v32 = vmax.f32 %v6363_v25, 0.0 }
 0x389   : > { %v8474_v9 = vpop.f32.mrf.mxu1  ;;  %8513 = vmatmul.mubr.bf16.gmra.mxu0 %v6422_v46  ;;  %v13575_v46 = vld [vmem:[#allocation93_spill] sm:$0xff] }
 0x38a   : > { %v6398_v18 = vmax.f32 %v6366_v31, 0.0  ;;  %v6364_v33 = vadd.f32 %v12290_v11, %v6325_v53  ;;  %v6330_v15 = vadd.f32 %v8474_v9, %v5776_v30  ;;  %v5426_v48 = vadd.f32 %v13575_v46, %v4852_v55  ;;  %v13576_v53 = vld [vmem:[#allocation75_spill] sm:$0xff]  ;;  %v13586_v46 = vld [vmem:[#allocation18_spill] sm:$0xff] }
 0x38b   : > { %v6237_v62 = vpop.f32.mrf.mxu1  ;;  %v4858_v59 = vadd.f32 %v13577_v42, %v13576_v53 }
 0x38c   : > { %v6424_v6 = vpack.c.bf16 %v6398_v18, %v6397_v51  ;;  %v6396_v21 = vmax.f32 %v6364_v33, 0.0  ;;  %v6328_v12 = vadd.f32 %v6237_v62, %v5774_v60  ;;  %v6369_v41 = vadd.f32 %v12290_v11, %v6330_v15  ;;  %v8439_v60 = vpop.f32.mrf.mxu0  ;;  %v13578_v51 = vld [vmem:[#allocation29_spill] sm:$0xff] }
 0x38d   : > { %v8475_v54 = vpop.f32.mrf.mxu1  ;;  %v5779_v39 = vadd.f32 %v12309_v19, %v5426_v48  ;;  %v5784_v56 = vadd.f32 %v12315_v3, %v13578_v51  ;;  %v13580_v19 = vld [vmem:[#allocation27_spill] sm:$0xff]  ;;  %v13581_v62 = vld [vmem:[#allocation65_spill] sm:$0xff] }
 0x38e   : > { %v6331_v43 = vadd.f32 %v8475_v54, %v5777_v23  ;;  %v6423_v26 = vpack.c.bf16 %v6396_v21, %v6395_v32  ;;  %v6367_v28 = vadd.f32 %v12290_v11, %v6328_v12  ;;  %v6401_v10 = vmax.f32 %v6369_v41, 0.0  ;;  %v13587_v48 = vld [vmem:[#allocation87_spill] sm:$0xff] }
 0x38f   : > { %v6240_v40 = vpop.f32.mrf.mxu1  ;;  %v4856_v23 = vadd.f32 %v13580_v19, %v13579_v16  ;;  %v5432_v32 = vadd.f32 %v13581_v62, %v4858_v59  ;;  %v13592_v62 = vld [vmem:[#allocation73_spill] sm:$0xff] }
 0x390   : > { %v6370_v44 = vadd.f32 %v12290_v11, %v6331_v43  ;;  %v6329_v5 = vadd.f32 %v6240_v40, %v5775_v34  ;;  %8516 = vmatprep.mubr.bf16.mxu0 %v6423_v26  ;;  %v6399_v37 = vmax.f32 %v6367_v28, 0.0  ;;  %v13583_v43 = vld [vmem:[#allocation97_spill] sm:$0xff]  ;;  %v5734_v40 = vpop.f32.mrf.mxu0 }
 0x391   : > { %v8478_v29 = vpop.f32.mrf.mxu1  ;;  %8517 = vmatmul.mubr.bf16.gmra.mxu0 %v6424_v6  ;;  %v13582_v6 = vld [vmem:[#allocation95_spill] sm:$0xff]  ;;  %v5430_v26 = vadd.f32 %v13583_v43, %v4856_v23  ;;  %v5785_v52 = vadd.f32 %v12335_v61, %v5432_v32  ;;  %v5788_v61 = vadd.f32 %v8438_v20, %v12254_v50  ;;  %v13589_v20 = vld [vmem:[#allocation54_spill] sm:$0xff]  ;;  %v13596_v43 = vld [vmem:[#allocation61_spill] sm:$0xff] }
 0x392   : > { %v6402_v14 = vmax.f32 %v6370_v44, 0.0  ;;  %v6368_v24 = vadd.f32 %v12290_v11, %v6329_v5  ;;  %v6334_v1 = vadd.f32 %v8478_v29, %v5780_v22  ;;  %v5782_v21 = vadd.f32 %v12329_v0, %v13582_v6  ;;  %v8442_v29 = vpop.f32.mrf.mxu0 }
 0x393   : > { %v6253_v2 = vpop.f32.mrf.mxu1  ;;  %v5783_v0 = vadd.f32 %v12349_v63, %v5430_v26  ;;  %v4860_v63 = vadd.f32 %v13587_v48, %v13586_v46  ;;  %v5792_v32 = vadd.f32 %v8442_v29, %v13592_v62 }
 0x394   : > { %v6426_v17 = vpack.c.bf16 %v6402_v14, %v6401_v10  ;;  %v6400_v35 = vmax.f32 %v6368_v24, 0.0  ;;  %v6332_v57 = vadd.f32 %v6253_v2, %v5778_v8  ;;  %v6373_v30 = vadd.f32 %v12290_v11, %v6334_v1  ;;  %v13588_v2 = vld [vmem:[#allocation16_spill] sm:$0xff] }
 0x395   : > { %v8479_v36 = vpop.f32.mrf.mxu1  ;;  %v4862_v8 = vadd.f32 %v13585_v47, %v13584_v27 }
 0x396   : > { %v6335_v25 = vadd.f32 %v8479_v36, %v5781_v45  ;;  %v6425_v31 = vpack.c.bf16 %v6400_v35, %v6399_v37  ;;  %v6371_v18 = vadd.f32 %v12290_v11, %v6332_v57  ;;  %v6405_v54 = vmax.f32 %v6373_v30, 0.0 }
 0x397   : > { %v6256_v9 = vpop.f32.mrf.mxu1  ;;  %v5436_v45 = vadd.f32 %v12260_v49, %v4862_v8  ;;  %v5786_v37 = vadd.f32 %v5731_v38, %v13588_v2 }
 0x398   : > { %v6374_v33 = vadd.f32 %v12290_v11, %v6335_v25  ;;  %v6333_v15 = vadd.f32 %v6256_v9, %v5779_v39  ;;  %8520 = vmatprep.mubr.bf16.mxu0 %v6425_v31  ;;  %v6403_v22 = vmax.f32 %v6371_v18, 0.0  ;;  %v5434_v39 = vadd.f32 %v13589_v20, %v4860_v63  ;;  %v5747_v25 = vpop.f32.mrf.mxu0 }
 0x399   : > { %v8482_v12 = vpop.f32.mrf.mxu1  ;;  %8521 = vmatmul.mubr.bf16.gmra.mxu0 %v6426_v17  ;;  %v5789_v30 = vadd.f32 %v8439_v60, %v5436_v45  ;;  %v5790_v26 = vadd.f32 %v5747_v25, %v13596_v43 }
 0x39a   : > { %v6406_v34 = vmax.f32 %v6374_v33, 0.0  ;;  %v6372_v3 = vadd.f32 %v12290_v11, %v6333_v15  ;;  %v6338_v41 = vadd.f32 %v8482_v12, %v5784_v56  ;;  %v5787_v49 = vadd.f32 %v5734_v40, %v5434_v39  ;;  %v13590_v33 = vld [vmem:[#allocation62_spill] sm:$0xff]  ;;  %v13591_v15 = vld [vmem:[#allocation92_spill] sm:$0xff]  ;;  %v8443_v19 = vpop.f32.mrf.mxu0  ;;  %v13593_v12 = vld [vmem:[#allocation89_spill] sm:$0xff] }
 0x39b   : > { %v6269_v4 = vpop.f32.mrf.mxu1  ;;  %v4866_v16 = vadd.f32 %v13591_v15, %v13590_v33  ;;  %v7559_v39 = vld [vmem:[%s9224_s12] sm:$0xff]  }
 0x39c   : > { %v6428_v28 = vpack.c.bf16 %v6406_v34, %v6405_v54  ;;  %v6404_v44 = vmax.f32 %v6372_v3, 0.0  ;;  %v6336_v5 = vadd.f32 %v6269_v4, %v5782_v21  ;;  %v6377_v7 = vadd.f32 %v12290_v11, %v6338_v41  ;;  %v13594_v54 = vld [vmem:[#allocation90_spill] sm:$0xff]  ;;  %v13595_v3 = vld [vmem:[#allocation68_spill] sm:$0xff] }
 0x39d   : > { %v8483_v13 = vpop.f32.mrf.mxu1  ;;  %v4864_v34 = vadd.f32 %v13594_v54, %v13593_v12  ;;  %v5440_v41 = vadd.f32 %v13595_v3, %v4866_v16  ;;  %v7719_v16 = vld [vmem:[%s9224_s12 + $0x10] sm:$0xff]  }
 0x39e   : > { %v6339_v55 = vadd.f32 %v8483_v13, %v5785_v52  ;;  %v6427_v58 = vpack.c.bf16 %v6404_v44, %v6403_v22  ;;  %v6375_v14 = vadd.f32 %v12290_v11, %v6336_v5  ;;  %v6409_v35 = vmax.f32 %v6377_v7, 0.0  ;;  %v13597_v44 = vld [vmem:[#allocation69_spill] sm:$0xff] }
 0x39f   : > { %v6272_v10 = vpop.f32.mrf.mxu1  ;;  %v5438_v5 = vadd.f32 %v13597_v44, %v4864_v34  ;;  %v5793_v13 = vadd.f32 %v8443_v19, %v5440_v41 }
 0x3a0   : > { %v6378_v24 = vadd.f32 %v12290_v11, %v6339_v55  ;;  %v6337_v1 = vadd.f32 %v6272_v10, %v5783_v0  ;;  %8524 = vmatprep.mubr.bf16.mxu0 %v6427_v58  ;;  %v6407_v53 = vmax.f32 %v6375_v14, 0.0  ;;  %v5750_v0 = vpop.f32.mrf.mxu0 }
 0x3a1   : > { %v8486_v17 = vpop.f32.mrf.mxu1  ;;  %8525 = vmatmul.mubr.bf16.gmra.mxu0 %v6428_v28  ;;  %v5791_v29 = vadd.f32 %v5750_v0, %v5438_v5 }
 0x3a2   : > { %v6410_v57 = vmax.f32 %v6378_v24, 0.0  ;;  %v6376_v36 = vadd.f32 %v12290_v11, %v6337_v1  ;;  %v6342_v50 = vadd.f32 %v8486_v17, %v5788_v61 }
 0x3a3   : > { %v6285_v31 = vpop.f32.mrf.mxu1 }
 0x3a4   : > { %v6430_v42 = vpack.c.bf16 %v6410_v57, %v6409_v35  ;;  %v6408_v59 = vmax.f32 %v6376_v36, 0.0  ;;  %v6340_v9 = vadd.f32 %v6285_v31, %v5786_v37  ;;  %v6381_v38 = vadd.f32 %v12290_v11, %v6342_v50  ;;  %v7718_v36 = vld [vmem:[%s9224_s12 + $0x8] sm:$0xff]   ;;  %v12416_v50 = vld [vmem:[%s12541_s6] ss:$0 sm:$0xff] }
 0x3a5   : > { %v8487_v51 = vpop.f32.mrf.mxu1  ;;  %v7560_v31 = vunpack.c.l.bf16 %v7559_v39 }
 0x3a6   : > { %v6343_v56 = vadd.f32 %v8487_v51, %v5789_v30  ;;  %v6429_v18 = vpack.c.bf16 %v6408_v59, %v6407_v53  ;;  %v6379_v60 = vadd.f32 %v12290_v11, %v6340_v9  ;;  %v6413_v40 = vmax.f32 %v6381_v38, 0.0  ;;  %v7720_v38 = vld [vmem:[%s9224_s12 + $0x18] sm:$0xff]  }
 0x3a7   : > { %v6288_v23 = vpop.f32.mrf.mxu1  ;;  %v7564_v30 = vunpack.c.l.bf16 %v7718_v36  ;;  %v7572_v19 = vunpack.c.l.bf16 %v7720_v38  ;;  %v7573_v54 = vunpack.c.h.bf16 %v7720_v38 }
 0x3a8   : > { %v6382_v6 = vadd.f32 %v12290_v11, %v6343_v56  ;;  %v6341_v21 = vadd.f32 %v6288_v23, %v5787_v49  ;;  %8528 = vmatprep.mubr.bf16.mxu0 %v6429_v18  ;;  %v6411_v55 = vmax.f32 %v6379_v60, 0.0  ;;  %v7561_v49 = vunpack.c.h.bf16 %v7559_v39 }
 0x3a9   : > { %v8490_v52 = vpop.f32.mrf.mxu1  ;;  %8529 = vmatmul.mubr.bf16.gmra.mxu0 %v6430_v42  ;;  %v7565_v42 = vunpack.c.h.bf16 %v7718_v36 }
 0x3aa   : > { %v6414_v4 = vmax.f32 %v6382_v6, 0.0  ;;  %v6380_v22 = vadd.f32 %v12290_v11, %v6341_v21  ;;  %v6346_v28 = vadd.f32 %v8490_v52, %v5792_v32  ;;  %v7568_v21 = vunpack.c.l.bf16 %v7719_v16 }
 0x3ab   : > { %v6301_v7 = vpop.f32.mrf.mxu1 }
 0x3ac   : > { %v6432_v58 = vpack.c.bf16 %v6414_v4, %v6413_v40  ;;  %v6412_v27 = vmax.f32 %v6380_v22, 0.0  ;;  %v6344_v47 = vadd.f32 %v6301_v7, %v5790_v26  ;;  %v6385_v10 = vadd.f32 %v12290_v11, %v6346_v28  ;;  %v7722_v28 = vld [vmem:[%s9224_s12 + $0x28] sm:$0xff]   ;;  %v7721_v7 = vld [vmem:[%s9224_s12 + $0x20] sm:$0xff]  }
 0x3ad   : > { %v8491_v8 = vpop.f32.mrf.mxu1  ;;  %v7569_v22 = vunpack.c.h.bf16 %v7719_v16 }
 0x3ae   : > { %v6347_v61 = vadd.f32 %v8491_v8, %v5793_v13  ;;  %v6431_v14 = vpack.c.bf16 %v6412_v27, %v6411_v55  ;;  %v6383_v1 = vadd.f32 %v12290_v11, %v6344_v47  ;;  %v6417_v63 = vmax.f32 %v6385_v10, 0.0 }
 0x3af   : > { %v6304_v24 = vpop.f32.mrf.mxu1  ;;  %v7580_v55 = vunpack.c.l.bf16 %v7722_v28  ;;  %v7576_v10 = vunpack.c.l.bf16 %v7721_v7 }
 0x3b0   : > { %v6386_v46 = vadd.f32 %v12290_v11, %v6347_v61  ;;  %v6345_v48 = vadd.f32 %v6304_v24, %v5791_v29  ;;  %8532 = vmatprep.mubr.bf16.mxu0 %v6431_v14  ;;  %v6415_v37 = vmax.f32 %v6383_v1, 0.0  ;;  %v7581_v14 = vunpack.c.h.bf16 %v7722_v28 }
 0x3b1   : > { %8533 = vmatmul.mubr.bf16.gmra.mxu0 %v6432_v58 }
 0x3b2   : > { %v6418_v45 = vmax.f32 %v6386_v46, 0.0  ;;  %v6384_v2 = vadd.f32 %v12290_v11, %v6345_v48 }
 0x3b4   : > { %v6434_v17 = vpack.c.bf16 %v6418_v45, %v6417_v63  ;;  %v6416_v35 = vmax.f32 %v6384_v2, 0.0 }
 0x3b6   : > { %v6433_v57 = vpack.c.bf16 %v6416_v35, %v6415_v37  ;;  %v7724_v35 = vld [vmem:[%s9224_s12 + $0x38] sm:$0xff]  }
 0x3b8   : > { %8536 = vmatprep.mubr.bf16.mxu0 %v6433_v57 }
 0x3b9   : > { %8537 = vmatmul.mubr.bf16.gmra.mxu0 %v6434_v17  ;;  %v7577_v17 = vunpack.c.h.bf16 %v7721_v7 }
 0x441   : > { %v8510_v20 = vpop.f32.mrf.mxu0 }
 0x442   : > { %v6613_v25 = vadd.f32 %v8510_v20, %v12416_v50 }
 0x443   : > { %v6604_v11 = vpop.f32.mrf.mxu0 }
 0x444   : > { %v6605_v53 = vadd.f32 %v12416_v50, %v6604_v11  ;;  %v6733_v9 = vadd.f32 %v7564_v30, %v6613_v25  ;;  %v7723_v30 = vld [vmem:[%s9224_s12 + $0x30] sm:$0xff]   ;;  %v7588_v25 = vunpack.c.l.bf16 %v7724_v35 }
 0x445   : > { %v8511_v59 = vpop.f32.mrf.mxu0 }
 0x446   : > { %v6616_v51 = vadd.f32 %v8511_v59, %v12416_v50  ;;  %v6731_v18 = vadd.f32 %v7560_v31, %v6605_v53  ;;  %v6765_v62 = vmax.f32 %v6733_v9, 0.0  ;;  %v7584_v9 = vunpack.c.l.bf16 %v7723_v30 }
 0x447   : > { %v6607_v56 = vpop.f32.mrf.mxu0 }
 0x448   : > { %v6734_v33 = vadd.f32 %v7565_v42, %v6616_v51  ;;  %v6608_v15 = vadd.f32 %v12416_v50, %v6607_v56  ;;  %v6763_v34 = vmax.f32 %v6731_v18, 0.0 }
 0x449   : > { %v8514_v23 = vpop.f32.mrf.mxu0 }
 0x44a   : > { %v6766_v32 = vmax.f32 %v6734_v33, 0.0  ;;  %v6732_v60 = vadd.f32 %v7561_v49, %v6608_v15  ;;  %v6629_v6 = vadd.f32 %v8514_v23, %v12416_v50  ;;  %v7589_v49 = vunpack.c.h.bf16 %v7724_v35 }
 0x44b   : > { %v6620_v12 = vpop.f32.mrf.mxu0 }
 0x44c   : > { %v7630_v3 = vpack.c.bf16 %v6766_v32, %v6765_v62  ;;  %v6764_v41 = vmax.f32 %v6732_v60, 0.0  ;;  %v6621_v43 = vadd.f32 %v12416_v50, %v6620_v12  ;;  %v6737_v40 = vadd.f32 %v7572_v19, %v6629_v6  ;;  %v7726_v32 = vld [vmem:[%s9224_s12 + $0x48] sm:$0xff]  }
 0x44d   : > { %v8515_v26 = vpop.f32.mrf.mxu0  ;;  %v7585_v62 = vunpack.c.h.bf16 %v7723_v30 }
 0x44e   : > { %7733 = vst [vmem:[%s12429_s11 + $0x8] sm:$0xff] %v7630_v3   ;;  %v7625_v52 = vpack.c.bf16 %v6764_v41, %v6763_v34  ;;  %v6632_v4 = vadd.f32 %v8515_v26, %v12416_v50  ;;  %v6735_v5 = vadd.f32 %v7568_v21, %v6621_v43  ;;  %v6769_v27 = vmax.f32 %v6737_v40, 0.0 }
 0x44f   : > { %v6623_v44 = vpop.f32.mrf.mxu0  ;;  %v7596_v34 = vunpack.c.l.bf16 %v7726_v32 }
 0x450   : > { %7626 = vst [vmem:[%s12429_s11] sm:$0xff] %v7625_v52   ;;  %v6738_v13 = vadd.f32 %v7573_v54, %v6632_v4  ;;  %v6624_v0 = vadd.f32 %v12416_v50, %v6623_v44  ;;  %v6767_v24 = vmax.f32 %v6735_v5, 0.0  ;;  %v7725_v54 = vld [vmem:[%s9224_s12 + $0x40] sm:$0xff]  }
 0x451   : > { %v8518_v58 = vpop.f32.mrf.mxu0  ;;  %v7592_v40 = vunpack.c.l.bf16 %v7725_v54 }
 0x452   : > { %v6770_v47 = vmax.f32 %v6738_v13, 0.0  ;;  %v6736_v8 = vadd.f32 %v7569_v22, %v6624_v0  ;;  %v6645_v29 = vadd.f32 %v8518_v58, %v12416_v50  ;;  %v7597_v22 = vunpack.c.h.bf16 %v7726_v32 }
 0x453   : > { %v6636_v61 = vpop.f32.mrf.mxu0 }
 0x454   : > { %v7640_v1 = vpack.c.bf16 %v6770_v47, %v6769_v27  ;;  %v6768_v46 = vmax.f32 %v6736_v8, 0.0  ;;  %v6637_v48 = vadd.f32 %v12416_v50, %v6636_v61  ;;  %v6741_v2 = vadd.f32 %v7580_v55, %v6645_v29  ;;  %v7728_v47 = vld [vmem:[%s9224_s12 + $0x58] sm:$0xff]  }
 0x455   : > { %v8519_v63 = vpop.f32.mrf.mxu0  ;;  %v7593_v27 = vunpack.c.h.bf16 %v7725_v54 }
 0x456   : > { %7735 = vst [vmem:[%s12429_s11 + $0x18] sm:$0xff] %v7640_v1   ;;  %v7635_v45 = vpack.c.bf16 %v6768_v46, %v6767_v24  ;;  %v6648_v37 = vadd.f32 %v8519_v63, %v12416_v50  ;;  %v6739_v36 = vadd.f32 %v7576_v10, %v6637_v48  ;;  %v6773_v31 = vmax.f32 %v6741_v2, 0.0 }
 0x457   : > { %v6639_v57 = vpop.f32.mrf.mxu0  ;;  %v7604_v24 = vunpack.c.l.bf16 %v7728_v47 }
 0x458   : > { %7734 = vst [vmem:[%s12429_s11 + $0x10] sm:$0xff] %v7635_v45   ;;  %v6742_v20 = vadd.f32 %v7581_v14, %v6648_v37  ;;  %v6640_v39 = vadd.f32 %v12416_v50, %v6639_v57  ;;  %v6771_v38 = vmax.f32 %v6739_v36, 0.0  ;;  %v7727_v14 = vld [vmem:[%s9224_s12 + $0x50] sm:$0xff]  }
 0x459   : > { %v8522_v11 = vpop.f32.mrf.mxu0  ;;  %v7600_v2 = vunpack.c.l.bf16 %v7727_v14 }
 0x45a   : > { %v6774_v53 = vmax.f32 %v6742_v20, 0.0  ;;  %v6740_v42 = vadd.f32 %v7577_v17, %v6640_v39  ;;  %v6661_v59 = vadd.f32 %v8522_v11, %v12416_v50  ;;  %v7605_v17 = vunpack.c.h.bf16 %v7728_v47 }
 0x45b   : > { %v6652_v51 = vpop.f32.mrf.mxu0 }
 0x45c   : > { %v7650_v56 = vpack.c.bf16 %v6774_v53, %v6773_v31  ;;  %v6772_v18 = vmax.f32 %v6740_v42, 0.0  ;;  %v6653_v33 = vadd.f32 %v12416_v50, %v6652_v51  ;;  %v6745_v19 = vadd.f32 %v7588_v25, %v6661_v59  ;;  %v7730_v53 = vld [vmem:[%s9224_s12 + $0x68] sm:$0xff]  }
 0x45d   : > { %v8523_v15 = vpop.f32.mrf.mxu0  ;;  %v7601_v31 = vunpack.c.h.bf16 %v7727_v14 }
 0x45e   : > { %7737 = vst [vmem:[%s12429_s11 + $0x28] sm:$0xff] %v7650_v56   ;;  %v7645_v16 = vpack.c.bf16 %v6772_v18, %v6771_v38  ;;  %v6664_v23 = vadd.f32 %v8523_v15, %v12416_v50  ;;  %v6743_v6 = vadd.f32 %v7584_v9, %v6653_v33  ;;  %v6777_v41 = vmax.f32 %v6745_v19, 0.0 }
 0x45f   : > { %v6655_v60 = vpop.f32.mrf.mxu0  ;;  %v7612_v38 = vunpack.c.l.bf16 %v7730_v53 }
 0x460   : > { %7736 = vst [vmem:[%s12429_s11 + $0x20] sm:$0xff] %v7645_v16   ;;  %v6746_v21 = vadd.f32 %v7589_v49, %v6664_v23  ;;  %v6656_v12 = vadd.f32 %v12416_v50, %v6655_v60  ;;  %v6775_v28 = vmax.f32 %v6743_v6, 0.0  ;;  %v7729_v49 = vld [vmem:[%s9224_s12 + $0x60] sm:$0xff]  }
 0x461   : > { %v8526_v3 = vpop.f32.mrf.mxu0  ;;  %v7608_v19 = vunpack.c.l.bf16 %v7729_v49 }
 0x462   : > { %v6778_v43 = vmax.f32 %v6746_v21, 0.0  ;;  %v6744_v26 = vadd.f32 %v7585_v62, %v6656_v12  ;;  %v6677_v52 = vadd.f32 %v8526_v3, %v12416_v50  ;;  %v7613_v62 = vunpack.c.h.bf16 %v7730_v53 }
 0x463   : > { %v6668_v4 = vpop.f32.mrf.mxu0 }
 0x464   : > { %v7660_v44 = vpack.c.bf16 %v6778_v43, %v6777_v41  ;;  %v6776_v5 = vmax.f32 %v6744_v26, 0.0  ;;  %v6669_v13 = vadd.f32 %v12416_v50, %v6668_v4  ;;  %v6749_v55 = vadd.f32 %v7596_v34, %v6677_v52  ;;  %v7732_v43 = vld [vmem:[%s9224_s12 + $0x78] sm:$0xff]  }
 0x465   : > { %v8527_v0 = vpop.f32.mrf.mxu0  ;;  %v7609_v41 = vunpack.c.h.bf16 %v7729_v49 }
 0x466   : > { %7739 = vst [vmem:[%s12429_s11 + $0x38] sm:$0xff] %v7660_v44   ;;  %v7655_v7 = vpack.c.bf16 %v6776_v5, %v6775_v28  ;;  %v6680_v58 = vadd.f32 %v8527_v0, %v12416_v50  ;;  %v6747_v29 = vadd.f32 %v7592_v40, %v6669_v13  ;;  %v6781_v46 = vmax.f32 %v6749_v55, 0.0 }
 0x467   : > { %v6671_v8 = vpop.f32.mrf.mxu0  ;;  %v7620_v28 = vunpack.c.l.bf16 %v7732_v43 }
 0x468   : > { %7738 = vst [vmem:[%s12429_s11 + $0x30] sm:$0xff] %v7655_v7   ;;  %v6750_v10 = vadd.f32 %v7597_v22, %v6680_v58  ;;  %v6672_v61 = vadd.f32 %v12416_v50, %v6671_v8  ;;  %v6779_v35 = vmax.f32 %v6747_v29, 0.0  ;;  %v7731_v22 = vld [vmem:[%s9224_s12 + $0x70] sm:$0xff]   ;;  %s8946_s12 = scalar_lea.vmem %s12490_s22, 2048 }
 0x469   : > { %v8530_v1 = vpop.f32.mrf.mxu0  ;;  %v7616_v55 = vunpack.c.l.bf16 %v7731_v22  ;;  %p8947_p7 = scmp.ne.s32.totalorder %s12490_s22, %s8946_s12  ;;  %p8954_p0 = scmp.lt.s32.totalorder %s8952_s9, %s8946_s12 }
 0x46a   : > { %v6782_v48 = vmax.f32 %v6750_v10, 0.0  ;;  %v6748_v63 = vadd.f32 %v7593_v27, %v6672_v61  ;;  %v6693_v45 = vadd.f32 %v8530_v1, %v12416_v50  ;;  %v7621_v27 = vunpack.c.h.bf16 %v7732_v43 }
 0x46b   : > { %v6684_v37 = vpop.f32.mrf.mxu0  ;;  %p8948_p12 = pnand %p8947_p7, %p13598_p1  ;;  %p8955_p2 = por %p8954_p0, %p8953_p13 }
 0x46c   : > { %v7670_v57 = vpack.c.bf16 %v6782_v48, %v6781_v46  ;;  %v6780_v36 = vmax.f32 %v6748_v63, 0.0  ;;  %v6685_v20 = vadd.f32 %v12416_v50, %v6684_v37  ;;  %v6753_v25 = vadd.f32 %v7604_v24, %v6693_v45 }
 0x46d   : > { %v8531_v39 = vpop.f32.mrf.mxu0  ;;  %v7617_v46 = vunpack.c.h.bf16 %v7731_v22  ;;  %p8949_p9 = pneg %p8948_p12 }
 0x46e   : > { %7741 = vst [vmem:[%s12429_s11 + $0x48] sm:$0xff] %v7670_v57   ;;  %v7665_v30 = vpack.c.bf16 %v6780_v36, %v6779_v35  ;;  %v6696_v11 = vadd.f32 %v8531_v39, %v12416_v50  ;;  %v6751_v59 = vadd.f32 %v7600_v2, %v6685_v20  ;;  %v6785_v18 = vmax.f32 %v6753_v25, 0.0 }
 0x46f   : > { %v6687_v42 = vpop.f32.mrf.mxu0  ;;  %p8956_p10 = pnand %p8955_p2, %p8949_p9 }
 0x470   : > { %7740 = vst [vmem:[%s12429_s11 + $0x40] sm:$0xff] %v7665_v30   ;;  %v6754_v9 = vadd.f32 %v7605_v17, %v6696_v11  ;;  %v6688_v51 = vadd.f32 %v12416_v50, %v6687_v42  ;;  %v6783_v32 = vmax.f32 %v6751_v59, 0.0 }
 0x471   : > { %v8534_v56 = vpop.f32.mrf.mxu0 }
 0x472   : > { %v6786_v33 = vmax.f32 %v6754_v9, 0.0  ;;  %v6752_v15 = vadd.f32 %v7601_v31, %v6688_v51  ;;  %v6709_v16 = vadd.f32 %v8534_v56, %v12416_v50 }
 0x473   : > { %v6700_v23 = vpop.f32.mrf.mxu0 }
 0x474   : > { %v7680_v60 = vpack.c.bf16 %v6786_v33, %v6785_v18  ;;  %v6784_v6 = vmax.f32 %v6752_v15, 0.0  ;;  %v6701_v21 = vadd.f32 %v12416_v50, %v6700_v23  ;;  %v6757_v34 = vadd.f32 %v7612_v38, %v6709_v16 }
 0x475   : > { %v8535_v12 = vpop.f32.mrf.mxu0 }
 0x476   : > { %7743 = vst [vmem:[%s12429_s11 + $0x58] sm:$0xff] %v7680_v60   ;;  %v7675_v54 = vpack.c.bf16 %v6784_v6, %v6783_v32  ;;  %v6712_v3 = vadd.f32 %v8535_v12, %v12416_v50  ;;  %v6755_v52 = vadd.f32 %v7608_v19, %v6701_v21  ;;  %v6789_v5 = vmax.f32 %v6757_v34, 0.0 }
 0x477   : > { %v6703_v26 = vpop.f32.mrf.mxu0 }
 0x478   : > { %7742 = vst [vmem:[%s12429_s11 + $0x50] sm:$0xff] %v7675_v54   ;;  %v6758_v40 = vadd.f32 %v7613_v62, %v6712_v3  ;;  %v6704_v4 = vadd.f32 %v12416_v50, %v6703_v26  ;;  %v6787_v47 = vmax.f32 %v6755_v52, 0.0 }
 0x479   : > { %v8538_v44 = vpop.f32.mrf.mxu0 }
 0x47a   : > { %v6790_v13 = vmax.f32 %v6758_v40, 0.0  ;;  %v6756_v0 = vadd.f32 %v7609_v41, %v6704_v4  ;;  %v6725_v7 = vadd.f32 %v8538_v44, %v12416_v50 }
 0x47b   : > { %v6716_v58 = vpop.f32.mrf.mxu0 }
 0x47c   : > { %v7690_v8 = vpack.c.bf16 %v6790_v13, %v6789_v5  ;;  %v6788_v29 = vmax.f32 %v6756_v0, 0.0  ;;  %v6717_v10 = vadd.f32 %v12416_v50, %v6716_v58  ;;  %v6761_v24 = vadd.f32 %v7620_v28, %v6725_v7 }
 0x47d   : > { %v8539_v61 = vpop.f32.mrf.mxu0 }
 0x47e   : > { %7745 = vst [vmem:[%s12429_s11 + $0x68] sm:$0xff] %v7690_v8   ;;  %v7685_v14 = vpack.c.bf16 %v6788_v29, %v6787_v47  ;;  %v6728_v1 = vadd.f32 %v8539_v61, %v12416_v50  ;;  %v6759_v63 = vadd.f32 %v7616_v55, %v6717_v10  ;;  %v6793_v37 = vmax.f32 %v6761_v24, 0.0 }
 0x47f   : > { %v6719_v48 = vpop.f32.mrf.mxu0 }
 0x480   : > { %7744 = vst [vmem:[%s12429_s11 + $0x60] sm:$0xff] %v7685_v14   ;;  %v6762_v45 = vadd.f32 %v7621_v27, %v6728_v1  ;;  %v6720_v2 = vadd.f32 %v12416_v50, %v6719_v48  ;;  %v6791_v57 = vmax.f32 %v6759_v63, 0.0 }
 0x482   : > { %v6794_v17 = vmax.f32 %v6762_v45, 0.0  ;;  %v6760_v35 = vadd.f32 %v7617_v46, %v6720_v2 }
 0x484   : > { %v7700_v36 = vpack.c.bf16 %v6794_v17, %v6793_v37  ;;  %v6792_v20 = vmax.f32 %v6760_v35, 0.0 }
 0x486   : > { %7747 = vst [vmem:[%s12429_s11 + $0x78] sm:$0xff] %v7700_v36   ;;  %v7695_v50 = vpack.c.bf16 %v6792_v20, %v6791_v57 }
 0x488   : > { %7746 = vst [vmem:[%s12429_s11 + $0x70] sm:$0xff] %v7695_v50  }
 0x489   : > { %8959 = shalt.err (!%p8956_p10)
}
 0x48a   : > { %s8960_s10 = scalar_lea.hbm %s12488_s1, 2048  ;;  %s8964_s29 = scalar_lea.hbm %s12542_s7, 4096 }
 0x48b   : > { %p8961_p6 = scmp.ne.s32.totalorder %s12488_s1, %s8960_s10  ;;  %p8965_p3 = scmp.lt.s32.totalorder %s12488_s1, %s12542_s7 }
 0x48c   : > { %p8966_p11 = scmp.lt.s32.totalorder %s8964_s29, %s8960_s10 }
 0x48d   : > { %p8962_p4 = pnand %p8961_p6, %p13598_p1 }
 0x48e   : > { %p8967_p5 = por %p8966_p11, %p8965_p3 }
 0x48f   : > { %p8963_p8 = pneg %p8962_p4 }
 0x491   : > { %p8968_p7 = pnand %p8967_p5, %p8963_p8 }
 0x493   : > { %8971 = shalt.err (!%p8968_p7)
}
 0x494   : > { %s9029_s18 = smov 64   ;;  %s9030_s23 = smov 4  }
 0x495   : > { %8570 = dma.vmem_to_hbm [thread:$0]  (%p13598_p1), %s12490_s22, 2048, %s12488_s1, %s6956_s16, %s9029_s18, %s9029_s18, %s9030_s23  }
 0x496 PF: > { %s6984_s12 = sand.u32 1, %s9006_s24   ;;  %p13599_p12 = scmp.ne.s32.totalorder %s12788_s8, 0 }
 0x497   : > { %p13600_p9 = scmp.ge.s32.totalorder %s9018_s27, 2  ;;  %s6985_s28 = scalar_lea.sflag [#allocation5], %s6984_s12 }
 0x499   : > { %p8587_p13 = pnand %p13600_p9, %p13599_p12 }
 0x49b   : > { %p8588_p0 = pneg %p8587_p13 }
 0x49d   : > { %9001 = dma.done.wait (%p8588_p0), %s6985_s28, 2048  }
 0x49e   : > { %9003 = vsyncadd (%p8588_p0), %s6985_s28, 4294965248  ;;  %p22_p2 = scmp.ge.s32.totalorder %s9160_s14, 4   ;;  %s13601_s24 = smov %s9010_s25 }
 0x49f   : > { %s13602_s25 = smov %s9014_s26  ;;  %s13603_s26 = smov %s9170_s17 }
 0x4a0   : > { %s13604_s27 = smov %s9160_s14  ;;  %24 = sbr.rel (!%p22_p2) target bundleno = 9 (0x9), region = 105 }
 0x4a5   :  { %6990 = vsyncpa [#allocation4], 1 }
 0x4a6   :  { %6992 = vsyncpa [#allocation4 + $0x1], 1 }
 0x4a7   :  { %6993 = vsyncpa [#allocation7], 1 }
 0x4a8   :  { %6994 = vsyncpa [#allocation10], 1 }
 0x4a9   :  { %6995 = vsyncpa [#allocation5], 1 }
 0x4aa   :  { %6997 = vsyncpa [#allocation5 + $0x1], 1 }

</bundles_post_ra>
